<compile_context>
chip_gen: v7x
topology: tpu7x:2x2x1
jax: 0.10.0
libtpu: 0.0.40
codegen_flags: <defaults>
</compile_context>

<pallas_src>
import math

import jax
import jax.numpy as jnp
from jax.experimental import pallas as pl
from jax.experimental.pallas import tpu as pltpu


# ----------------------------------------------------------------------------
# Fused Pallas kernel: LSTM layer 0 + LSTM layer 1 (wavefront) -> FC head
# ----------------------------------------------------------------------------
def improved_lstm_kernel(
    x_ref,       # (B, T, D)   f32  batch-first input
    wih0_ref,    # (D, 4H)     f32  layer-0 input->hidden, gate cols [i|g|f|o]
    whh0_ref,    # (2H, 4H)    bf16 layer-0 hidden->hidden, rows [0:H) are zero
    b0_ref,      # (1, 4H)     f32  layer-0 combined bias (b_ih + b_hh), permuted
    wih1_ref,    # (2H, 4H)    bf16 layer-1 input->hidden, rows [0:H) are zero
    whh1_ref,    # (2H, 4H)    bf16 layer-1 hidden->hidden, rows [0:H) are zero
    b1_ref,      # (1, 4H)     f32
    wfc1_ref,    # (2H, H/2)   f32  rows [0:H) are zero
    bfc1_ref,    # (1, H/2)
    wfc2_ref,    # (H/2, H/4)
    bfc2_ref,    # (1, H/4)
    wfc3_ref,    # (H/4, O)
    bfc3_ref,    # (1, O)
    out_ref,     # (B, O)
):
    B, T, D = x_ref.shape
    H2, H4 = whh0_ref.shape          # 2H, 4H
    H = H2 // 2
    f32 = jnp.float32
    bf16 = jnp.bfloat16

    # Lane mask selecting lanes [0, H) of a 2H-wide (one-vreg) vector.
    lane = jax.lax.broadcasted_iota(jnp.int32, (B, H2), 1)
    first_half = lane < H

    whh0 = whh0_ref[...]             # bf16 weights, loaded once
    wih1 = wih1_ref[...]
    whh1 = whh1_ref[...]
    b1 = b1_ref[...]

    def cell(gates, c):
        """One LSTM cell update in the 128-lane-wide layout.

        gates: (B, 4H) pre-activations with column order [i | g | f | o].
        State layout:  h = [junk | h_true],  c = [c | c] (replicated halves).
        Zero-padded weight rows absorb the junk half downstream.
        """
        g1 = gates[:, :H2]                                              # [i | g]
        g2 = gates[:, H2:]                                              # [f | o]
        a1 = jnp.where(first_half, jax.nn.sigmoid(g1), jnp.tanh(g1))    # [i | g]
        a2 = jax.nn.sigmoid(g2)                                         # [f | o]
        # i*g lands in both halves (shift by exactly half -> direction-free roll)
        ig = a1 * pltpu.roll(a1, shift=H, axis=1)                       # [i*g | i*g]
        pre = a2 * c + ig                                               # [f*c+i*g | junk]
        c_new = jnp.where(first_half, pre, pltpu.roll(pre, shift=H, axis=1))  # [c'|c']
        h_new = a2 * jnp.tanh(c_new)                                    # [junk | o*tanh(c')]
        return h_new, c_new

    # ---- layer-0 input projection hoisted out of the recurrence: ONE matmul ----
    x = x_ref[...]                                                      # (B, T, D) f32
    xw0 = (jnp.dot(x.reshape(B * T, D), wih0_ref[...],
                   preferred_element_type=f32) + b0_ref[...]).reshape(B, T, H4)

    h0 = jnp.zeros((B, H2), f32)
    c0 = jnp.zeros((B, H2), f32)
    h1 = jnp.zeros((B, H2), f32)
    c1 = jnp.zeros((B, H2), f32)

    # ---- wavefront over time: layer-0 step t, then layer-1 step t ---------------
    for t in range(T):                       # fully unrolled (T static, tiny)
        # Layer-1 recurrent half of the gates: depends only on h1_{t-1};
        # issued first so its MXU latency hides under the layer-0 step.
        rec1 = jnp.dot(h1.astype(bf16), whh1, preferred_element_type=f32)

        # Layer-0 step t
        g0 = xw0[:, t, :] + jnp.dot(h0.astype(bf16), whh0, preferred_element_type=f32)
        h0, c0 = cell(g0, c0)

        # Layer-1 step t (input projection straight from the fresh h0, no HBM trip)
        g1 = jnp.dot(h0.astype(bf16), wih1, preferred_element_type=f32) + rec1 + b1
        h1, c1 = cell(g1, c1)

    # ---- FC head on hn[-1] (dropout = inference no-op) --------------------------
    y = jnp.dot(h1, wfc1_ref[...], preferred_element_type=f32) + bfc1_ref[...]
    y = jnp.maximum(y, 0.0)
    y = jnp.dot(y, wfc2_ref[...], preferred_element_type=f32) + bfc2_ref[...]
    y = jnp.maximum(y, 0.0)
    out_ref[...] = jnp.dot(y, wfc3_ref[...], preferred_element_type=f32) + bfc3_ref[...]


# ----------------------------------------------------------------------------
# Wrapper
# ----------------------------------------------------------------------------
_VMEM = pl.BlockSpec(memory_space=pltpu.MemorySpace.VMEM)


def improved_lstm_forward(x, p):
    """x: (B, T, 8) batch-first, like the PyTorch module. Returns (B, 3)."""
    B = x.shape[0]
    out_dim = p["wfc3"].shape[1]
    return pl.pallas_call(
        improved_lstm_kernel,
        out_shape=jax.ShapeDtypeStruct((B, out_dim), jnp.float32),
        in_specs=[_VMEM] * 13,
        out_specs=_VMEM,
    )(x, p["wih0"], p["whh0"], p["b0"],
      p["wih1"], p["whh1"], p["b1"],
      p["wfc1"], p["bfc1"], p["wfc2"], p["bfc2"], p["wfc3"], p["bfc3"])


forward = jax.jit(improved_lstm_forward)


# ----------------------------------------------------------------------------
# Parameters: PyTorch-layout init, then conversion to the kernel layout
# ----------------------------------------------------------------------------
def init_torch_params(key, input_size=8, hidden_size=64, output_size=3):
    """Matches PyTorch default uniform init shapes/bounds (LSTM gate order i,f,g,o)."""
    H = hidden_size
    k = 1.0 / math.sqrt(H)
    ks = jax.random.split(key, 14)

    def u(kk, shape, bound):
        return jax.random.uniform(kk, shape, jnp.float32, -bound, bound)

    return {
        "w_ih0": u(ks[0], (4 * H, input_size), k),
        "w_hh0": u(ks[1], (4 * H, H), k),
        "b_ih0": u(ks[2], (4 * H,), k),
        "b_hh0": u(ks[3], (4 * H,), k),
        "w_ih1": u(ks[4], (4 * H, H), k),
        "w_hh1": u(ks[5], (4 * H, H), k),
        "b_ih1": u(ks[6], (4 * H,), k),
        "b_hh1": u(ks[7], (4 * H,), k),
        "w_fc1": u(ks[8], (H // 2, H), 1.0 / math.sqrt(H)),
        "b_fc1": u(ks[9], (H // 2,), 1.0 / math.sqrt(H)),
        "w_fc2": u(ks[10], (H // 4, H // 2), 1.0 / math.sqrt(H // 2)),
        "b_fc2": u(ks[11], (H // 4,), 1.0 / math.sqrt(H // 2)),
        "w_fc3": u(ks[12], (output_size, H // 4), 1.0 / math.sqrt(H // 4)),
        "b_fc3": u(ks[13], (output_size,), 1.0 / math.sqrt(H // 4)),
    }


def prep_kernel_params(tp, hidden_size=64):
    H = hidden_size

    def perm_gates(w):
        # PyTorch gate blocks [i; f; g; o] -> kernel order [i; g; f; o]
        return jnp.concatenate([w[0:H], w[2 * H:3 * H], w[H:2 * H], w[3 * H:4 * H]], axis=0)

    def pad_rows(w_t):
        # (H, N) -> (2H, N): zero top half meets the junk half of the wide hidden state
        return jnp.concatenate([jnp.zeros_like(w_t), w_t], axis=0)

    bf16 = jnp.bfloat16
    return {
        "wih0": perm_gates(tp["w_ih0"]).T,                                 # (D, 4H)  f32
        "whh0": pad_rows(perm_gates(tp["w_hh0"]).T).astype(bf16),          # (2H, 4H) bf16
        "b0": perm_gates(tp["b_ih0"] + tp["b_hh0"]).reshape(1, 4 * H),
        "wih1": pad_rows(perm_gates(tp["w_ih1"]).T).astype(bf16),          # (2H, 4H) bf16
        "whh1": pad_rows(perm_gates(tp["w_hh1"]).T).astype(bf16),          # (2H, 4H) bf16
        "b1": perm_gates(tp["b_ih1"] + tp["b_hh1"]).reshape(1, 4 * H),
        "wfc1": pad_rows(tp["w_fc1"].T),                                   # (2H, H/2)
        "bfc1": tp["b_fc1"].reshape(1, -1),
        "wfc2": tp["w_fc2"].T,                                             # (H/2, H/4)
        "bfc2": tp["b_fc2"].reshape(1, -1),
        "wfc3": tp["w_fc3"].T,                                             # (H/4, O)
        "bfc3": tp["b_fc3"].reshape(1, -1),
    }


# ----------------------------------------------------------------------------
# Pure-JAX reference of the PyTorch forward (inference path) for validation
# ----------------------------------------------------------------------------
def reference_forward(x, tp, hidden_size=64):
    H = hidden_size

    def layer(xs, w_ih, w_hh, b):
        B, T, _ = xs.shape
        h = jnp.zeros((B, H), jnp.float32)
        c = jnp.zeros((B, H), jnp.float32)
        hs = []
        for t in range(T):
            z = xs[:, t, :] @ w_ih.T + h @ w_hh.T + b
            i, f, g, o = jnp.split(z, 4, axis=-1)
            i, f, o = jax.nn.sigmoid(i), jax.nn.sigmoid(f), jax.nn.sigmoid(o)
            g = jnp.tanh(g)
            c = f * c + i * g
            h = o * jnp.tanh(c)
            hs.append(h)
        return jnp.stack(hs, axis=1), h

    hs0, _ = layer(x, tp["w_ih0"], tp["w_hh0"], tp["b_ih0"] + tp["b_hh0"])
    _, h1 = layer(hs0, tp["w_ih1"], tp["w_hh1"], tp["b_ih1"] + tp["b_hh1"])
    y = jax.nn.relu(h1 @ tp["w_fc1"].T + tp["b_fc1"])
    y = jax.nn.relu(y @ tp["w_fc2"].T + tp["b_fc2"])
    return y @ tp["w_fc3"].T + tp["b_fc3"]


# ----------------------------------------------------------------------------
if __name__ == "__main__":
    key = jax.random.PRNGKey(0)
    k_x, k_p = jax.random.split(key)

    batch, seq, input_size, hidden_size, output_size = 2, 8, 8, 64, 3
    x = jax.random.normal(k_x, (batch, seq, input_size), jnp.float32)

    torch_params = init_torch_params(k_p, input_size, hidden_size, output_size)
    params = prep_kernel_params(torch_params, hidden_size)

    out = forward(x, params)
    jax.block_until_ready(out)
    assert out.shape == (batch, output_size)

    ref = reference_forward(x, torch_params, hidden_size)
    # Recurrent / layer-1 matmul operands are deliberately bf16 (f32 accumulate),
    # so tolerance vs the pure-f32 reference is loose.
    assert jnp.allclose(out, ref, atol=5e-2, rtol=5e-2), (out, ref)

    print("KERNEL_OK")
</pallas_src>

<mosaic_0001>
module attributes {stable_mosaic.version = 11 : i64} {
  func.func @improved_lstm_kernel(%arg0: memref<2x8x8xf32, #tpu.memory_space<vmem>>, %arg1: memref<8x256xf32, #tpu.memory_space<vmem>>, %arg2: memref<128x256xbf16, #tpu.memory_space<vmem>>, %arg3: memref<1x256xf32, #tpu.memory_space<vmem>>, %arg4: memref<128x256xbf16, #tpu.memory_space<vmem>>, %arg5: memref<128x256xbf16, #tpu.memory_space<vmem>>, %arg6: memref<1x256xf32, #tpu.memory_space<vmem>>, %arg7: memref<128x32xf32, #tpu.memory_space<vmem>>, %arg8: memref<1x32xf32, #tpu.memory_space<vmem>>, %arg9: memref<32x16xf32, #tpu.memory_space<vmem>>, %arg10: memref<1x16xf32, #tpu.memory_space<vmem>>, %arg11: memref<16x3xf32, #tpu.memory_space<vmem>>, %arg12: memref<1x3xf32, #tpu.memory_space<vmem>>, %arg13: memref<2x3xf32, #tpu.memory_space<vmem>>) attributes {dimension_semantics = [], scalar_prefetch = 0 : i64, scratch_operands = 0 : i64, tpu.core_type = #tpu.core_type<tc>} {
    %0 = tpu.iota {dimensions = array<i32: 1>} : vector<2x128xi32>
    %c64_i32 = arith.constant 64 : i32
    %1 = vector.broadcast %c64_i32 : i32 to vector<2x128xi32>
    %2 = arith.cmpi slt, %0, %1 : vector<2x128xi32>
    %c0 = arith.constant 0 : index
    %c0_0 = arith.constant 0 : index
    %3 = vector.load %arg2[%c0, %c0_0] : memref<128x256xbf16, #tpu.memory_space<vmem>>, vector<128x256xbf16>
    %c0_1 = arith.constant 0 : index
    %c0_2 = arith.constant 0 : index
    %4 = vector.load %arg4[%c0_1, %c0_2] : memref<128x256xbf16, #tpu.memory_space<vmem>>, vector<128x256xbf16>
    %c0_3 = arith.constant 0 : index
    %c0_4 = arith.constant 0 : index
    %5 = vector.load %arg5[%c0_3, %c0_4] : memref<128x256xbf16, #tpu.memory_space<vmem>>, vector<128x256xbf16>
    %c0_5 = arith.constant 0 : index
    %c0_6 = arith.constant 0 : index
    %6 = vector.load %arg6[%c0_5, %c0_6] : memref<1x256xf32, #tpu.memory_space<vmem>>, vector<1x256xf32>
    %c0_7 = arith.constant 0 : index
    %c0_8 = arith.constant 0 : index
    %c0_9 = arith.constant 0 : index
    %7 = vector.load %arg0[%c0_7, %c0_8, %c0_9] : memref<2x8x8xf32, #tpu.memory_space<vmem>>, vector<2x8x8xf32>
    %8 = vector.shape_cast %7 : vector<2x8x8xf32> to vector<16x8xf32>
    %c0_10 = arith.constant 0 : index
    %c0_11 = arith.constant 0 : index
    %9 = vector.load %arg1[%c0_10, %c0_11] : memref<8x256xf32, #tpu.memory_space<vmem>>, vector<8x256xf32>
    %cst = arith.constant dense<0.000000e+00> : vector<16x256xf32>
    %10 = tpu.matmul %8, %9, %cst {dimension_numbers = #tpu.dot_dimension_numbers<[1], [0], [0], [1], [0, 0, 1, 1], [], []>} : vector<16x8xf32>, vector<8x256xf32>, vector<16x256xf32> -> vector<16x256xf32>
    %c0_12 = arith.constant 0 : index
    %c0_13 = arith.constant 0 : index
    %11 = vector.load %arg3[%c0_12, %c0_13] : memref<1x256xf32, #tpu.memory_space<vmem>>, vector<1x256xf32>
    %12 = vector.broadcast %11 : vector<1x256xf32> to vector<16x256xf32>
    %13 = arith.addf %10, %12 : vector<16x256xf32>
    %14 = vector.shape_cast %13 : vector<16x256xf32> to vector<2x8x256xf32>
    %cst_14 = arith.constant 0.000000e+00 : f32
    %15 = vector.broadcast %cst_14 : f32 to vector<2x128xf32>
    %cst_15 = arith.constant 0.000000e+00 : f32
    %16 = vector.broadcast %cst_15 : f32 to vector<2x128xf32>
    %cst_16 = arith.constant 0.000000e+00 : f32
    %17 = vector.broadcast %cst_16 : f32 to vector<2x128xf32>
    %cst_17 = arith.constant 0.000000e+00 : f32
    %18 = vector.broadcast %cst_17 : f32 to vector<2x128xf32>
    %19 = arith.truncf %17 : vector<2x128xf32> to vector<2x128xbf16>
    %cst_18 = arith.constant dense<0.000000e+00> : vector<2x256xf32>
    %20 = tpu.matmul %19, %5, %cst_18 {dimension_numbers = #tpu.dot_dimension_numbers<[1], [0], [0], [1], [0, 0, 1, 1], [], []>} : vector<2x128xbf16>, vector<128x256xbf16>, vector<2x256xf32> -> vector<2x256xf32>
    %21 = vector.extract_strided_slice %14 {offsets = [0, 0, 0], sizes = [2, 1, 256], strides = [1, 1, 1]} : vector<2x8x256xf32> to vector<2x1x256xf32>
    %22 = vector.shape_cast %21 : vector<2x1x256xf32> to vector<2x256xf32>
    %23 = arith.truncf %15 : vector<2x128xf32> to vector<2x128xbf16>
    %cst_19 = arith.constant dense<0.000000e+00> : vector<2x256xf32>
    %24 = tpu.matmul %23, %3, %cst_19 {dimension_numbers = #tpu.dot_dimension_numbers<[1], [0], [0], [1], [0, 0, 1, 1], [], []>} : vector<2x128xbf16>, vector<128x256xbf16>, vector<2x256xf32> -> vector<2x256xf32>
    %25 = arith.addf %22, %24 : vector<2x256xf32>
    %26 = vector.extract_strided_slice %25 {offsets = [0, 0], sizes = [2, 128], strides = [1, 1]} : vector<2x256xf32> to vector<2x128xf32>
    %27 = vector.extract_strided_slice %25 {offsets = [0, 128], sizes = [2, 128], strides = [1, 1]} : vector<2x256xf32> to vector<2x128xf32>
    %28 = arith.negf %26 : vector<2x128xf32>
    %29 = math.exp %28 : vector<2x128xf32>
    %cst_20 = arith.constant 1.000000e+00 : f32
    %30 = vector.broadcast %cst_20 : f32 to vector<2x128xf32>
    %31 = arith.addf %30, %29 : vector<2x128xf32>
    %32 = arith.divf %30, %31 : vector<2x128xf32>
    %33 = math.tanh %26 : vector<2x128xf32>
    %34 = arith.select %2, %32, %33 : vector<2x128xi1>, vector<2x128xf32>
    %35 = arith.negf %27 : vector<2x128xf32>
    %36 = math.exp %35 : vector<2x128xf32>
    %cst_21 = arith.constant 1.000000e+00 : f32
    %37 = vector.broadcast %cst_21 : f32 to vector<2x128xf32>
    %38 = arith.addf %37, %36 : vector<2x128xf32>
    %39 = arith.divf %37, %38 : vector<2x128xf32>
    %c64_i32_22 = arith.constant 64 : i32
    %40 = tpu.dynamic_rotate %34 by %c64_i32_22 dim 1 : vector<2x128xf32>, i32 -> vector<2x128xf32>
    %41 = arith.mulf %34, %40 : vector<2x128xf32>
    %42 = arith.mulf %39, %16 : vector<2x128xf32>
    %43 = arith.addf %42, %41 : vector<2x128xf32>
    %c64_i32_23 = arith.constant 64 : i32
    %44 = tpu.dynamic_rotate %43 by %c64_i32_23 dim 1 : vector<2x128xf32>, i32 -> vector<2x128xf32>
    %45 = arith.select %2, %43, %44 : vector<2x128xi1>, vector<2x128xf32>
    %46 = math.tanh %45 : vector<2x128xf32>
    %47 = arith.mulf %39, %46 : vector<2x128xf32>
    %48 = arith.truncf %47 : vector<2x128xf32> to vector<2x128xbf16>
    %cst_24 = arith.constant dense<0.000000e+00> : vector<2x256xf32>
    %49 = tpu.matmul %48, %4, %cst_24 {dimension_numbers = #tpu.dot_dimension_numbers<[1], [0], [0], [1], [0, 0, 1, 1], [], []>} : vector<2x128xbf16>, vector<128x256xbf16>, vector<2x256xf32> -> vector<2x256xf32>
    %50 = arith.addf %49, %20 : vector<2x256xf32>
    %51 = vector.broadcast %6 : vector<1x256xf32> to vector<2x256xf32>
    %52 = arith.addf %50, %51 : vector<2x256xf32>
    %53 = vector.extract_strided_slice %52 {offsets = [0, 0], sizes = [2, 128], strides = [1, 1]} : vector<2x256xf32> to vector<2x128xf32>
    %54 = vector.extract_strided_slice %52 {offsets = [0, 128], sizes = [2, 128], strides = [1, 1]} : vector<2x256xf32> to vector<2x128xf32>
    %55 = arith.negf %53 : vector<2x128xf32>
    %56 = math.exp %55 : vector<2x128xf32>
    %cst_25 = arith.constant 1.000000e+00 : f32
    %57 = vector.broadcast %cst_25 : f32 to vector<2x128xf32>
    %58 = arith.addf %57, %56 : vector<2x128xf32>
    %59 = arith.divf %57, %58 : vector<2x128xf32>
    %60 = math.tanh %53 : vector<2x128xf32>
    %61 = arith.select %2, %59, %60 : vector<2x128xi1>, vector<2x128xf32>
    %62 = arith.negf %54 : vector<2x128xf32>
    %63 = math.exp %62 : vector<2x128xf32>
    %cst_26 = arith.constant 1.000000e+00 : f32
    %64 = vector.broadcast %cst_26 : f32 to vector<2x128xf32>
    %65 = arith.addf %64, %63 : vector<2x128xf32>
    %66 = arith.divf %64, %65 : vector<2x128xf32>
    %c64_i32_27 = arith.constant 64 : i32
    %67 = tpu.dynamic_rotate %61 by %c64_i32_27 dim 1 : vector<2x128xf32>, i32 -> vector<2x128xf32>
    %68 = arith.mulf %61, %67 : vector<2x128xf32>
    %69 = arith.mulf %66, %18 : vector<2x128xf32>
    %70 = arith.addf %69, %68 : vector<2x128xf32>
    %c64_i32_28 = arith.constant 64 : i32
    %71 = tpu.dynamic_rotate %70 by %c64_i32_28 dim 1 : vector<2x128xf32>, i32 -> vector<2x128xf32>
    %72 = arith.select %2, %70, %71 : vector<2x128xi1>, vector<2x128xf32>
    %73 = math.tanh %72 : vector<2x128xf32>
    %74 = arith.mulf %66, %73 : vector<2x128xf32>
    %75 = arith.truncf %74 : vector<2x128xf32> to vector<2x128xbf16>
    %cst_29 = arith.constant dense<0.000000e+00> : vector<2x256xf32>
    %76 = tpu.matmul %75, %5, %cst_29 {dimension_numbers = #tpu.dot_dimension_numbers<[1], [0], [0], [1], [0, 0, 1, 1], [], []>} : vector<2x128xbf16>, vector<128x256xbf16>, vector<2x256xf32> -> vector<2x256xf32>
    %77 = vector.extract_strided_slice %14 {offsets = [0, 1, 0], sizes = [2, 1, 256], strides = [1, 1, 1]} : vector<2x8x256xf32> to vector<2x1x256xf32>
    %78 = vector.shape_cast %77 : vector<2x1x256xf32> to vector<2x256xf32>
    %79 = arith.truncf %47 : vector<2x128xf32> to vector<2x128xbf16>
    %cst_30 = arith.constant dense<0.000000e+00> : vector<2x256xf32>
    %80 = tpu.matmul %79, %3, %cst_30 {dimension_numbers = #tpu.dot_dimension_numbers<[1], [0], [0], [1], [0, 0, 1, 1], [], []>} : vector<2x128xbf16>, vector<128x256xbf16>, vector<2x256xf32> -> vector<2x256xf32>
    %81 = arith.addf %78, %80 : vector<2x256xf32>
    %82 = vector.extract_strided_slice %81 {offsets = [0, 0], sizes = [2, 128], strides = [1, 1]} : vector<2x256xf32> to vector<2x128xf32>
    %83 = vector.extract_strided_slice %81 {offsets = [0, 128], sizes = [2, 128], strides = [1, 1]} : vector<2x256xf32> to vector<2x128xf32>
    %84 = arith.negf %82 : vector<2x128xf32>
    %85 = math.exp %84 : vector<2x128xf32>
    %cst_31 = arith.constant 1.000000e+00 : f32
    %86 = vector.broadcast %cst_31 : f32 to vector<2x128xf32>
    %87 = arith.addf %86, %85 : vector<2x128xf32>
    %88 = arith.divf %86, %87 : vector<2x128xf32>
    %89 = math.tanh %82 : vector<2x128xf32>
    %90 = arith.select %2, %88, %89 : vector<2x128xi1>, vector<2x128xf32>
    %91 = arith.negf %83 : vector<2x128xf32>
    %92 = math.exp %91 : vector<2x128xf32>
    %cst_32 = arith.constant 1.000000e+00 : f32
    %93 = vector.broadcast %cst_32 : f32 to vector<2x128xf32>
    %94 = arith.addf %93, %92 : vector<2x128xf32>
    %95 = arith.divf %93, %94 : vector<2x128xf32>
    %c64_i32_33 = arith.constant 64 : i32
    %96 = tpu.dynamic_rotate %90 by %c64_i32_33 dim 1 : vector<2x128xf32>, i32 -> vector<2x128xf32>
    %97 = arith.mulf %90, %96 : vector<2x128xf32>
    %98 = arith.mulf %95, %45 : vector<2x128xf32>
    %99 = arith.addf %98, %97 : vector<2x128xf32>
    %c64_i32_34 = arith.constant 64 : i32
    %100 = tpu.dynamic_rotate %99 by %c64_i32_34 dim 1 : vector<2x128xf32>, i32 -> vector<2x128xf32>
    %101 = arith.select %2, %99, %100 : vector<2x128xi1>, vector<2x128xf32>
    %102 = math.tanh %101 : vector<2x128xf32>
    %103 = arith.mulf %95, %102 : vector<2x128xf32>
    %104 = arith.truncf %103 : vector<2x128xf32> to vector<2x128xbf16>
    %cst_35 = arith.constant dense<0.000000e+00> : vector<2x256xf32>
    %105 = tpu.matmul %104, %4, %cst_35 {dimension_numbers = #tpu.dot_dimension_numbers<[1], [0], [0], [1], [0, 0, 1, 1], [], []>} : vector<2x128xbf16>, vector<128x256xbf16>, vector<2x256xf32> -> vector<2x256xf32>
    %106 = arith.addf %105, %76 : vector<2x256xf32>
    %107 = vector.broadcast %6 : vector<1x256xf32> to vector<2x256xf32>
    %108 = arith.addf %106, %107 : vector<2x256xf32>
    %109 = vector.extract_strided_slice %108 {offsets = [0, 0], sizes = [2, 128], strides = [1, 1]} : vector<2x256xf32> to vector<2x128xf32>
    %110 = vector.extract_strided_slice %108 {offsets = [0, 128], sizes = [2, 128], strides = [1, 1]} : vector<2x256xf32> to vector<2x128xf32>
    %111 = arith.negf %109 : vector<2x128xf32>
    %112 = math.exp %111 : vector<2x128xf32>
    %cst_36 = arith.constant 1.000000e+00 : f32
    %113 = vector.broadcast %cst_36 : f32 to vector<2x128xf32>
    %114 = arith.addf %113, %112 : vector<2x128xf32>
    %115 = arith.divf %113, %114 : vector<2x128xf32>
    %116 = math.tanh %109 : vector<2x128xf32>
    %117 = arith.select %2, %115, %116 : vector<2x128xi1>, vector<2x128xf32>
    %118 = arith.negf %110 : vector<2x128xf32>
    %119 = math.exp %118 : vector<2x128xf32>
    %cst_37 = arith.constant 1.000000e+00 : f32
    %120 = vector.broadcast %cst_37 : f32 to vector<2x128xf32>
    %121 = arith.addf %120, %119 : vector<2x128xf32>
    %122 = arith.divf %120, %121 : vector<2x128xf32>
    %c64_i32_38 = arith.constant 64 : i32
    %123 = tpu.dynamic_rotate %117 by %c64_i32_38 dim 1 : vector<2x128xf32>, i32 -> vector<2x128xf32>
    %124 = arith.mulf %117, %123 : vector<2x128xf32>
    %125 = arith.mulf %122, %72 : vector<2x128xf32>
    %126 = arith.addf %125, %124 : vector<2x128xf32>
    %c64_i32_39 = arith.constant 64 : i32
    %127 = tpu.dynamic_rotate %126 by %c64_i32_39 dim 1 : vector<2x128xf32>, i32 -> vector<2x128xf32>
    %128 = arith.select %2, %126, %127 : vector<2x128xi1>, vector<2x128xf32>
    %129 = math.tanh %128 : vector<2x128xf32>
    %130 = arith.mulf %122, %129 : vector<2x128xf32>
    %131 = arith.truncf %130 : vector<2x128xf32> to vector<2x128xbf16>
    %cst_40 = arith.constant dense<0.000000e+00> : vector<2x256xf32>
    %132 = tpu.matmul %131, %5, %cst_40 {dimension_numbers = #tpu.dot_dimension_numbers<[1], [0], [0], [1], [0, 0, 1, 1], [], []>} : vector<2x128xbf16>, vector<128x256xbf16>, vector<2x256xf32> -> vector<2x256xf32>
    %133 = vector.extract_strided_slice %14 {offsets = [0, 2, 0], sizes = [2, 1, 256], strides = [1, 1, 1]} : vector<2x8x256xf32> to vector<2x1x256xf32>
    %134 = vector.shape_cast %133 : vector<2x1x256xf32> to vector<2x256xf32>
    %135 = arith.truncf %103 : vector<2x128xf32> to vector<2x128xbf16>
    %cst_41 = arith.constant dense<0.000000e+00> : vector<2x256xf32>
    %136 = tpu.matmul %135, %3, %cst_41 {dimension_numbers = #tpu.dot_dimension_numbers<[1], [0], [0], [1], [0, 0, 1, 1], [], []>} : vector<2x128xbf16>, vector<128x256xbf16>, vector<2x256xf32> -> vector<2x256xf32>
    %137 = arith.addf %134, %136 : vector<2x256xf32>
    %138 = vector.extract_strided_slice %137 {offsets = [0, 0], sizes = [2, 128], strides = [1, 1]} : vector<2x256xf32> to vector<2x128xf32>
    %139 = vector.extract_strided_slice %137 {offsets = [0, 128], sizes = [2, 128], strides = [1, 1]} : vector<2x256xf32> to vector<2x128xf32>
    %140 = arith.negf %138 : vector<2x128xf32>
    %141 = math.exp %140 : vector<2x128xf32>
    %cst_42 = arith.constant 1.000000e+00 : f32
    %142 = vector.broadcast %cst_42 : f32 to vector<2x128xf32>
    %143 = arith.addf %142, %141 : vector<2x128xf32>
    %144 = arith.divf %142, %143 : vector<2x128xf32>
    %145 = math.tanh %138 : vector<2x128xf32>
    %146 = arith.select %2, %144, %145 : vector<2x128xi1>, vector<2x128xf32>
    %147 = arith.negf %139 : vector<2x128xf32>
    %148 = math.exp %147 : vector<2x128xf32>
    %cst_43 = arith.constant 1.000000e+00 : f32
    %149 = vector.broadcast %cst_43 : f32 to vector<2x128xf32>
    %150 = arith.addf %149, %148 : vector<2x128xf32>
    %151 = arith.divf %149, %150 : vector<2x128xf32>
    %c64_i32_44 = arith.constant 64 : i32
    %152 = tpu.dynamic_rotate %146 by %c64_i32_44 dim 1 : vector<2x128xf32>, i32 -> vector<2x128xf32>
    %153 = arith.mulf %146, %152 : vector<2x128xf32>
    %154 = arith.mulf %151, %101 : vector<2x128xf32>
    %155 = arith.addf %154, %153 : vector<2x128xf32>
    %c64_i32_45 = arith.constant 64 : i32
    %156 = tpu.dynamic_rotate %155 by %c64_i32_45 dim 1 : vector<2x128xf32>, i32 -> vector<2x128xf32>
    %157 = arith.select %2, %155, %156 : vector<2x128xi1>, vector<2x128xf32>
    %158 = math.tanh %157 : vector<2x128xf32>
    %159 = arith.mulf %151, %158 : vector<2x128xf32>
    %160 = arith.truncf %159 : vector<2x128xf32> to vector<2x128xbf16>
    %cst_46 = arith.constant dense<0.000000e+00> : vector<2x256xf32>
    %161 = tpu.matmul %160, %4, %cst_46 {dimension_numbers = #tpu.dot_dimension_numbers<[1], [0], [0], [1], [0, 0, 1, 1], [], []>} : vector<2x128xbf16>, vector<128x256xbf16>, vector<2x256xf32> -> vector<2x256xf32>
    %162 = arith.addf %161, %132 : vector<2x256xf32>
    %163 = vector.broadcast %6 : vector<1x256xf32> to vector<2x256xf32>
    %164 = arith.addf %162, %163 : vector<2x256xf32>
    %165 = vector.extract_strided_slice %164 {offsets = [0, 0], sizes = [2, 128], strides = [1, 1]} : vector<2x256xf32> to vector<2x128xf32>
    %166 = vector.extract_strided_slice %164 {offsets = [0, 128], sizes = [2, 128], strides = [1, 1]} : vector<2x256xf32> to vector<2x128xf32>
    %167 = arith.negf %165 : vector<2x128xf32>
    %168 = math.exp %167 : vector<2x128xf32>
    %cst_47 = arith.constant 1.000000e+00 : f32
    %169 = vector.broadcast %cst_47 : f32 to vector<2x128xf32>
    %170 = arith.addf %169, %168 : vector<2x128xf32>
    %171 = arith.divf %169, %170 : vector<2x128xf32>
    %172 = math.tanh %165 : vector<2x128xf32>
    %173 = arith.select %2, %171, %172 : vector<2x128xi1>, vector<2x128xf32>
    %174 = arith.negf %166 : vector<2x128xf32>
    %175 = math.exp %174 : vector<2x128xf32>
    %cst_48 = arith.constant 1.000000e+00 : f32
    %176 = vector.broadcast %cst_48 : f32 to vector<2x128xf32>
    %177 = arith.addf %176, %175 : vector<2x128xf32>
    %178 = arith.divf %176, %177 : vector<2x128xf32>
    %c64_i32_49 = arith.constant 64 : i32
    %179 = tpu.dynamic_rotate %173 by %c64_i32_49 dim 1 : vector<2x128xf32>, i32 -> vector<2x128xf32>
    %180 = arith.mulf %173, %179 : vector<2x128xf32>
    %181 = arith.mulf %178, %128 : vector<2x128xf32>
    %182 = arith.addf %181, %180 : vector<2x128xf32>
    %c64_i32_50 = arith.constant 64 : i32
    %183 = tpu.dynamic_rotate %182 by %c64_i32_50 dim 1 : vector<2x128xf32>, i32 -> vector<2x128xf32>
    %184 = arith.select %2, %182, %183 : vector<2x128xi1>, vector<2x128xf32>
    %185 = math.tanh %184 : vector<2x128xf32>
    %186 = arith.mulf %178, %185 : vector<2x128xf32>
    %187 = arith.truncf %186 : vector<2x128xf32> to vector<2x128xbf16>
    %cst_51 = arith.constant dense<0.000000e+00> : vector<2x256xf32>
    %188 = tpu.matmul %187, %5, %cst_51 {dimension_numbers = #tpu.dot_dimension_numbers<[1], [0], [0], [1], [0, 0, 1, 1], [], []>} : vector<2x128xbf16>, vector<128x256xbf16>, vector<2x256xf32> -> vector<2x256xf32>
    %189 = vector.extract_strided_slice %14 {offsets = [0, 3, 0], sizes = [2, 1, 256], strides = [1, 1, 1]} : vector<2x8x256xf32> to vector<2x1x256xf32>
    %190 = vector.shape_cast %189 : vector<2x1x256xf32> to vector<2x256xf32>
    %191 = arith.truncf %159 : vector<2x128xf32> to vector<2x128xbf16>
    %cst_52 = arith.constant dense<0.000000e+00> : vector<2x256xf32>
    %192 = tpu.matmul %191, %3, %cst_52 {dimension_numbers = #tpu.dot_dimension_numbers<[1], [0], [0], [1], [0, 0, 1, 1], [], []>} : vector<2x128xbf16>, vector<128x256xbf16>, vector<2x256xf32> -> vector<2x256xf32>
    %193 = arith.addf %190, %192 : vector<2x256xf32>
    %194 = vector.extract_strided_slice %193 {offsets = [0, 0], sizes = [2, 128], strides = [1, 1]} : vector<2x256xf32> to vector<2x128xf32>
    %195 = vector.extract_strided_slice %193 {offsets = [0, 128], sizes = [2, 128], strides = [1, 1]} : vector<2x256xf32> to vector<2x128xf32>
    %196 = arith.negf %194 : vector<2x128xf32>
    %197 = math.exp %196 : vector<2x128xf32>
    %cst_53 = arith.constant 1.000000e+00 : f32
    %198 = vector.broadcast %cst_53 : f32 to vector<2x128xf32>
    %199 = arith.addf %198, %197 : vector<2x128xf32>
    %200 = arith.divf %198, %199 : vector<2x128xf32>
    %201 = math.tanh %194 : vector<2x128xf32>
    %202 = arith.select %2, %200, %201 : vector<2x128xi1>, vector<2x128xf32>
    %203 = arith.negf %195 : vector<2x128xf32>
    %204 = math.exp %203 : vector<2x128xf32>
    %cst_54 = arith.constant 1.000000e+00 : f32
    %205 = vector.broadcast %cst_54 : f32 to vector<2x128xf32>
    %206 = arith.addf %205, %204 : vector<2x128xf32>
    %207 = arith.divf %205, %206 : vector<2x128xf32>
    %c64_i32_55 = arith.constant 64 : i32
    %208 = tpu.dynamic_rotate %202 by %c64_i32_55 dim 1 : vector<2x128xf32>, i32 -> vector<2x128xf32>
    %209 = arith.mulf %202, %208 : vector<2x128xf32>
    %210 = arith.mulf %207, %157 : vector<2x128xf32>
    %211 = arith.addf %210, %209 : vector<2x128xf32>
    %c64_i32_56 = arith.constant 64 : i32
    %212 = tpu.dynamic_rotate %211 by %c64_i32_56 dim 1 : vector<2x128xf32>, i32 -> vector<2x128xf32>
    %213 = arith.select %2, %211, %212 : vector<2x128xi1>, vector<2x128xf32>
    %214 = math.tanh %213 : vector<2x128xf32>
    %215 = arith.mulf %207, %214 : vector<2x128xf32>
    %216 = arith.truncf %215 : vector<2x128xf32> to vector<2x128xbf16>
    %cst_57 = arith.constant dense<0.000000e+00> : vector<2x256xf32>
    %217 = tpu.matmul %216, %4, %cst_57 {dimension_numbers = #tpu.dot_dimension_numbers<[1], [0], [0], [1], [0, 0, 1, 1], [], []>} : vector<2x128xbf16>, vector<128x256xbf16>, vector<2x256xf32> -> vector<2x256xf32>
    %218 = arith.addf %217, %188 : vector<2x256xf32>
    %219 = vector.broadcast %6 : vector<1x256xf32> to vector<2x256xf32>
    %220 = arith.addf %218, %219 : vector<2x256xf32>
    %221 = vector.extract_strided_slice %220 {offsets = [0, 0], sizes = [2, 128], strides = [1, 1]} : vector<2x256xf32> to vector<2x128xf32>
    %222 = vector.extract_strided_slice %220 {offsets = [0, 128], sizes = [2, 128], strides = [1, 1]} : vector<2x256xf32> to vector<2x128xf32>
    %223 = arith.negf %221 : vector<2x128xf32>
    %224 = math.exp %223 : vector<2x128xf32>
    %cst_58 = arith.constant 1.000000e+00 : f32
    %225 = vector.broadcast %cst_58 : f32 to vector<2x128xf32>
    %226 = arith.addf %225, %224 : vector<2x128xf32>
    %227 = arith.divf %225, %226 : vector<2x128xf32>
    %228 = math.tanh %221 : vector<2x128xf32>
    %229 = arith.select %2, %227, %228 : vector<2x128xi1>, vector<2x128xf32>
    %230 = arith.negf %222 : vector<2x128xf32>
    %231 = math.exp %230 : vector<2x128xf32>
    %cst_59 = arith.constant 1.000000e+00 : f32
    %232 = vector.broadcast %cst_59 : f32 to vector<2x128xf32>
    %233 = arith.addf %232, %231 : vector<2x128xf32>
    %234 = arith.divf %232, %233 : vector<2x128xf32>
    %c64_i32_60 = arith.constant 64 : i32
    %235 = tpu.dynamic_rotate %229 by %c64_i32_60 dim 1 : vector<2x128xf32>, i32 -> vector<2x128xf32>
    %236 = arith.mulf %229, %235 : vector<2x128xf32>
    %237 = arith.mulf %234, %184 : vector<2x128xf32>
    %238 = arith.addf %237, %236 : vector<2x128xf32>
    %c64_i32_61 = arith.constant 64 : i32
    %239 = tpu.dynamic_rotate %238 by %c64_i32_61 dim 1 : vector<2x128xf32>, i32 -> vector<2x128xf32>
    %240 = arith.select %2, %238, %239 : vector<2x128xi1>, vector<2x128xf32>
    %241 = math.tanh %240 : vector<2x128xf32>
    %242 = arith.mulf %234, %241 : vector<2x128xf32>
    %243 = arith.truncf %242 : vector<2x128xf32> to vector<2x128xbf16>
    %cst_62 = arith.constant dense<0.000000e+00> : vector<2x256xf32>
    %244 = tpu.matmul %243, %5, %cst_62 {dimension_numbers = #tpu.dot_dimension_numbers<[1], [0], [0], [1], [0, 0, 1, 1], [], []>} : vector<2x128xbf16>, vector<128x256xbf16>, vector<2x256xf32> -> vector<2x256xf32>
    %245 = vector.extract_strided_slice %14 {offsets = [0, 4, 0], sizes = [2, 1, 256], strides = [1, 1, 1]} : vector<2x8x256xf32> to vector<2x1x256xf32>
    %246 = vector.shape_cast %245 : vector<2x1x256xf32> to vector<2x256xf32>
    %247 = arith.truncf %215 : vector<2x128xf32> to vector<2x128xbf16>
    %cst_63 = arith.constant dense<0.000000e+00> : vector<2x256xf32>
    %248 = tpu.matmul %247, %3, %cst_63 {dimension_numbers = #tpu.dot_dimension_numbers<[1], [0], [0], [1], [0, 0, 1, 1], [], []>} : vector<2x128xbf16>, vector<128x256xbf16>, vector<2x256xf32> -> vector<2x256xf32>
    %249 = arith.addf %246, %248 : vector<2x256xf32>
    %250 = vector.extract_strided_slice %249 {offsets = [0, 0], sizes = [2, 128], strides = [1, 1]} : vector<2x256xf32> to vector<2x128xf32>
    %251 = vector.extract_strided_slice %249 {offsets = [0, 128], sizes = [2, 128], strides = [1, 1]} : vector<2x256xf32> to vector<2x128xf32>
    %252 = arith.negf %250 : vector<2x128xf32>
    %253 = math.exp %252 : vector<2x128xf32>
    %cst_64 = arith.constant 1.000000e+00 : f32
    %254 = vector.broadcast %cst_64 : f32 to vector<2x128xf32>
    %255 = arith.addf %254, %253 : vector<2x128xf32>
    %256 = arith.divf %254, %255 : vector<2x128xf32>
    %257 = math.tanh %250 : vector<2x128xf32>
    %258 = arith.select %2, %256, %257 : vector<2x128xi1>, vector<2x128xf32>
    %259 = arith.negf %251 : vector<2x128xf32>
    %260 = math.exp %259 : vector<2x128xf32>
    %cst_65 = arith.constant 1.000000e+00 : f32
    %261 = vector.broadcast %cst_65 : f32 to vector<2x128xf32>
    %262 = arith.addf %261, %260 : vector<2x128xf32>
    %263 = arith.divf %261, %262 : vector<2x128xf32>
    %c64_i32_66 = arith.constant 64 : i32
    %264 = tpu.dynamic_rotate %258 by %c64_i32_66 dim 1 : vector<2x128xf32>, i32 -> vector<2x128xf32>
    %265 = arith.mulf %258, %264 : vector<2x128xf32>
    %266 = arith.mulf %263, %213 : vector<2x128xf32>
    %267 = arith.addf %266, %265 : vector<2x128xf32>
    %c64_i32_67 = arith.constant 64 : i32
    %268 = tpu.dynamic_rotate %267 by %c64_i32_67 dim 1 : vector<2x128xf32>, i32 -> vector<2x128xf32>
    %269 = arith.select %2, %267, %268 : vector<2x128xi1>, vector<2x128xf32>
    %270 = math.tanh %269 : vector<2x128xf32>
    %271 = arith.mulf %263, %270 : vector<2x128xf32>
    %272 = arith.truncf %271 : vector<2x128xf32> to vector<2x128xbf16>
    %cst_68 = arith.constant dense<0.000000e+00> : vector<2x256xf32>
    %273 = tpu.matmul %272, %4, %cst_68 {dimension_numbers = #tpu.dot_dimension_numbers<[1], [0], [0], [1], [0, 0, 1, 1], [], []>} : vector<2x128xbf16>, vector<128x256xbf16>, vector<2x256xf32> -> vector<2x256xf32>
    %274 = arith.addf %273, %244 : vector<2x256xf32>
    %275 = vector.broadcast %6 : vector<1x256xf32> to vector<2x256xf32>
    %276 = arith.addf %274, %275 : vector<2x256xf32>
    %277 = vector.extract_strided_slice %276 {offsets = [0, 0], sizes = [2, 128], strides = [1, 1]} : vector<2x256xf32> to vector<2x128xf32>
    %278 = vector.extract_strided_slice %276 {offsets = [0, 128], sizes = [2, 128], strides = [1, 1]} : vector<2x256xf32> to vector<2x128xf32>
    %279 = arith.negf %277 : vector<2x128xf32>
    %280 = math.exp %279 : vector<2x128xf32>
    %cst_69 = arith.constant 1.000000e+00 : f32
    %281 = vector.broadcast %cst_69 : f32 to vector<2x128xf32>
    %282 = arith.addf %281, %280 : vector<2x128xf32>
    %283 = arith.divf %281, %282 : vector<2x128xf32>
    %284 = math.tanh %277 : vector<2x128xf32>
    %285 = arith.select %2, %283, %284 : vector<2x128xi1>, vector<2x128xf32>
    %286 = arith.negf %278 : vector<2x128xf32>
    %287 = math.exp %286 : vector<2x128xf32>
    %cst_70 = arith.constant 1.000000e+00 : f32
    %288 = vector.broadcast %cst_70 : f32 to vector<2x128xf32>
    %289 = arith.addf %288, %287 : vector<2x128xf32>
    %290 = arith.divf %288, %289 : vector<2x128xf32>
    %c64_i32_71 = arith.constant 64 : i32
    %291 = tpu.dynamic_rotate %285 by %c64_i32_71 dim 1 : vector<2x128xf32>, i32 -> vector<2x128xf32>
    %292 = arith.mulf %285, %291 : vector<2x128xf32>
    %293 = arith.mulf %290, %240 : vector<2x128xf32>
    %294 = arith.addf %293, %292 : vector<2x128xf32>
    %c64_i32_72 = arith.constant 64 : i32
    %295 = tpu.dynamic_rotate %294 by %c64_i32_72 dim 1 : vector<2x128xf32>, i32 -> vector<2x128xf32>
    %296 = arith.select %2, %294, %295 : vector<2x128xi1>, vector<2x128xf32>
    %297 = math.tanh %296 : vector<2x128xf32>
    %298 = arith.mulf %290, %297 : vector<2x128xf32>
    %299 = arith.truncf %298 : vector<2x128xf32> to vector<2x128xbf16>
    %cst_73 = arith.constant dense<0.000000e+00> : vector<2x256xf32>
    %300 = tpu.matmul %299, %5, %cst_73 {dimension_numbers = #tpu.dot_dimension_numbers<[1], [0], [0], [1], [0, 0, 1, 1], [], []>} : vector<2x128xbf16>, vector<128x256xbf16>, vector<2x256xf32> -> vector<2x256xf32>
    %301 = vector.extract_strided_slice %14 {offsets = [0, 5, 0], sizes = [2, 1, 256], strides = [1, 1, 1]} : vector<2x8x256xf32> to vector<2x1x256xf32>
    %302 = vector.shape_cast %301 : vector<2x1x256xf32> to vector<2x256xf32>
    %303 = arith.truncf %271 : vector<2x128xf32> to vector<2x128xbf16>
    %cst_74 = arith.constant dense<0.000000e+00> : vector<2x256xf32>
    %304 = tpu.matmul %303, %3, %cst_74 {dimension_numbers = #tpu.dot_dimension_numbers<[1], [0], [0], [1], [0, 0, 1, 1], [], []>} : vector<2x128xbf16>, vector<128x256xbf16>, vector<2x256xf32> -> vector<2x256xf32>
    %305 = arith.addf %302, %304 : vector<2x256xf32>
    %306 = vector.extract_strided_slice %305 {offsets = [0, 0], sizes = [2, 128], strides = [1, 1]} : vector<2x256xf32> to vector<2x128xf32>
    %307 = vector.extract_strided_slice %305 {offsets = [0, 128], sizes = [2, 128], strides = [1, 1]} : vector<2x256xf32> to vector<2x128xf32>
    %308 = arith.negf %306 : vector<2x128xf32>
    %309 = math.exp %308 : vector<2x128xf32>
    %cst_75 = arith.constant 1.000000e+00 : f32
    %310 = vector.broadcast %cst_75 : f32 to vector<2x128xf32>
    %311 = arith.addf %310, %309 : vector<2x128xf32>
    %312 = arith.divf %310, %311 : vector<2x128xf32>
    %313 = math.tanh %306 : vector<2x128xf32>
    %314 = arith.select %2, %312, %313 : vector<2x128xi1>, vector<2x128xf32>
    %315 = arith.negf %307 : vector<2x128xf32>
    %316 = math.exp %315 : vector<2x128xf32>
    %cst_76 = arith.constant 1.000000e+00 : f32
    %317 = vector.broadcast %cst_76 : f32 to vector<2x128xf32>
    %318 = arith.addf %317, %316 : vector<2x128xf32>
    %319 = arith.divf %317, %318 : vector<2x128xf32>
    %c64_i32_77 = arith.constant 64 : i32
    %320 = tpu.dynamic_rotate %314 by %c64_i32_77 dim 1 : vector<2x128xf32>, i32 -> vector<2x128xf32>
    %321 = arith.mulf %314, %320 : vector<2x128xf32>
    %322 = arith.mulf %319, %269 : vector<2x128xf32>
    %323 = arith.addf %322, %321 : vector<2x128xf32>
    %c64_i32_78 = arith.constant 64 : i32
    %324 = tpu.dynamic_rotate %323 by %c64_i32_78 dim 1 : vector<2x128xf32>, i32 -> vector<2x128xf32>
    %325 = arith.select %2, %323, %324 : vector<2x128xi1>, vector<2x128xf32>
    %326 = math.tanh %325 : vector<2x128xf32>
    %327 = arith.mulf %319, %326 : vector<2x128xf32>
    %328 = arith.truncf %327 : vector<2x128xf32> to vector<2x128xbf16>
    %cst_79 = arith.constant dense<0.000000e+00> : vector<2x256xf32>
    %329 = tpu.matmul %328, %4, %cst_79 {dimension_numbers = #tpu.dot_dimension_numbers<[1], [0], [0], [1], [0, 0, 1, 1], [], []>} : vector<2x128xbf16>, vector<128x256xbf16>, vector<2x256xf32> -> vector<2x256xf32>
    %330 = arith.addf %329, %300 : vector<2x256xf32>
    %331 = vector.broadcast %6 : vector<1x256xf32> to vector<2x256xf32>
    %332 = arith.addf %330, %331 : vector<2x256xf32>
    %333 = vector.extract_strided_slice %332 {offsets = [0, 0], sizes = [2, 128], strides = [1, 1]} : vector<2x256xf32> to vector<2x128xf32>
    %334 = vector.extract_strided_slice %332 {offsets = [0, 128], sizes = [2, 128], strides = [1, 1]} : vector<2x256xf32> to vector<2x128xf32>
    %335 = arith.negf %333 : vector<2x128xf32>
    %336 = math.exp %335 : vector<2x128xf32>
    %cst_80 = arith.constant 1.000000e+00 : f32
    %337 = vector.broadcast %cst_80 : f32 to vector<2x128xf32>
    %338 = arith.addf %337, %336 : vector<2x128xf32>
    %339 = arith.divf %337, %338 : vector<2x128xf32>
    %340 = math.tanh %333 : vector<2x128xf32>
    %341 = arith.select %2, %339, %340 : vector<2x128xi1>, vector<2x128xf32>
    %342 = arith.negf %334 : vector<2x128xf32>
    %343 = math.exp %342 : vector<2x128xf32>
    %cst_81 = arith.constant 1.000000e+00 : f32
    %344 = vector.broadcast %cst_81 : f32 to vector<2x128xf32>
    %345 = arith.addf %344, %343 : vector<2x128xf32>
    %346 = arith.divf %344, %345 : vector<2x128xf32>
    %c64_i32_82 = arith.constant 64 : i32
    %347 = tpu.dynamic_rotate %341 by %c64_i32_82 dim 1 : vector<2x128xf32>, i32 -> vector<2x128xf32>
    %348 = arith.mulf %341, %347 : vector<2x128xf32>
    %349 = arith.mulf %346, %296 : vector<2x128xf32>
    %350 = arith.addf %349, %348 : vector<2x128xf32>
    %c64_i32_83 = arith.constant 64 : i32
    %351 = tpu.dynamic_rotate %350 by %c64_i32_83 dim 1 : vector<2x128xf32>, i32 -> vector<2x128xf32>
    %352 = arith.select %2, %350, %351 : vector<2x128xi1>, vector<2x128xf32>
    %353 = math.tanh %352 : vector<2x128xf32>
    %354 = arith.mulf %346, %353 : vector<2x128xf32>
    %355 = arith.truncf %354 : vector<2x128xf32> to vector<2x128xbf16>
    %cst_84 = arith.constant dense<0.000000e+00> : vector<2x256xf32>
    %356 = tpu.matmul %355, %5, %cst_84 {dimension_numbers = #tpu.dot_dimension_numbers<[1], [0], [0], [1], [0, 0, 1, 1], [], []>} : vector<2x128xbf16>, vector<128x256xbf16>, vector<2x256xf32> -> vector<2x256xf32>
    %357 = vector.extract_strided_slice %14 {offsets = [0, 6, 0], sizes = [2, 1, 256], strides = [1, 1, 1]} : vector<2x8x256xf32> to vector<2x1x256xf32>
    %358 = vector.shape_cast %357 : vector<2x1x256xf32> to vector<2x256xf32>
    %359 = arith.truncf %327 : vector<2x128xf32> to vector<2x128xbf16>
    %cst_85 = arith.constant dense<0.000000e+00> : vector<2x256xf32>
    %360 = tpu.matmul %359, %3, %cst_85 {dimension_numbers = #tpu.dot_dimension_numbers<[1], [0], [0], [1], [0, 0, 1, 1], [], []>} : vector<2x128xbf16>, vector<128x256xbf16>, vector<2x256xf32> -> vector<2x256xf32>
    %361 = arith.addf %358, %360 : vector<2x256xf32>
    %362 = vector.extract_strided_slice %361 {offsets = [0, 0], sizes = [2, 128], strides = [1, 1]} : vector<2x256xf32> to vector<2x128xf32>
    %363 = vector.extract_strided_slice %361 {offsets = [0, 128], sizes = [2, 128], strides = [1, 1]} : vector<2x256xf32> to vector<2x128xf32>
    %364 = arith.negf %362 : vector<2x128xf32>
    %365 = math.exp %364 : vector<2x128xf32>
    %cst_86 = arith.constant 1.000000e+00 : f32
    %366 = vector.broadcast %cst_86 : f32 to vector<2x128xf32>
    %367 = arith.addf %366, %365 : vector<2x128xf32>
    %368 = arith.divf %366, %367 : vector<2x128xf32>
    %369 = math.tanh %362 : vector<2x128xf32>
    %370 = arith.select %2, %368, %369 : vector<2x128xi1>, vector<2x128xf32>
    %371 = arith.negf %363 : vector<2x128xf32>
    %372 = math.exp %371 : vector<2x128xf32>
    %cst_87 = arith.constant 1.000000e+00 : f32
    %373 = vector.broadcast %cst_87 : f32 to vector<2x128xf32>
    %374 = arith.addf %373, %372 : vector<2x128xf32>
    %375 = arith.divf %373, %374 : vector<2x128xf32>
    %c64_i32_88 = arith.constant 64 : i32
    %376 = tpu.dynamic_rotate %370 by %c64_i32_88 dim 1 : vector<2x128xf32>, i32 -> vector<2x128xf32>
    %377 = arith.mulf %370, %376 : vector<2x128xf32>
    %378 = arith.mulf %375, %325 : vector<2x128xf32>
    %379 = arith.addf %378, %377 : vector<2x128xf32>
    %c64_i32_89 = arith.constant 64 : i32
    %380 = tpu.dynamic_rotate %379 by %c64_i32_89 dim 1 : vector<2x128xf32>, i32 -> vector<2x128xf32>
    %381 = arith.select %2, %379, %380 : vector<2x128xi1>, vector<2x128xf32>
    %382 = math.tanh %381 : vector<2x128xf32>
    %383 = arith.mulf %375, %382 : vector<2x128xf32>
    %384 = arith.truncf %383 : vector<2x128xf32> to vector<2x128xbf16>
    %cst_90 = arith.constant dense<0.000000e+00> : vector<2x256xf32>
    %385 = tpu.matmul %384, %4, %cst_90 {dimension_numbers = #tpu.dot_dimension_numbers<[1], [0], [0], [1], [0, 0, 1, 1], [], []>} : vector<2x128xbf16>, vector<128x256xbf16>, vector<2x256xf32> -> vector<2x256xf32>
    %386 = arith.addf %385, %356 : vector<2x256xf32>
    %387 = vector.broadcast %6 : vector<1x256xf32> to vector<2x256xf32>
    %388 = arith.addf %386, %387 : vector<2x256xf32>
    %389 = vector.extract_strided_slice %388 {offsets = [0, 0], sizes = [2, 128], strides = [1, 1]} : vector<2x256xf32> to vector<2x128xf32>
    %390 = vector.extract_strided_slice %388 {offsets = [0, 128], sizes = [2, 128], strides = [1, 1]} : vector<2x256xf32> to vector<2x128xf32>
    %391 = arith.negf %389 : vector<2x128xf32>
    %392 = math.exp %391 : vector<2x128xf32>
    %cst_91 = arith.constant 1.000000e+00 : f32
    %393 = vector.broadcast %cst_91 : f32 to vector<2x128xf32>
    %394 = arith.addf %393, %392 : vector<2x128xf32>
    %395 = arith.divf %393, %394 : vector<2x128xf32>
    %396 = math.tanh %389 : vector<2x128xf32>
    %397 = arith.select %2, %395, %396 : vector<2x128xi1>, vector<2x128xf32>
    %398 = arith.negf %390 : vector<2x128xf32>
    %399 = math.exp %398 : vector<2x128xf32>
    %cst_92 = arith.constant 1.000000e+00 : f32
    %400 = vector.broadcast %cst_92 : f32 to vector<2x128xf32>
    %401 = arith.addf %400, %399 : vector<2x128xf32>
    %402 = arith.divf %400, %401 : vector<2x128xf32>
    %c64_i32_93 = arith.constant 64 : i32
    %403 = tpu.dynamic_rotate %397 by %c64_i32_93 dim 1 : vector<2x128xf32>, i32 -> vector<2x128xf32>
    %404 = arith.mulf %397, %403 : vector<2x128xf32>
    %405 = arith.mulf %402, %352 : vector<2x128xf32>
    %406 = arith.addf %405, %404 : vector<2x128xf32>
    %c64_i32_94 = arith.constant 64 : i32
    %407 = tpu.dynamic_rotate %406 by %c64_i32_94 dim 1 : vector<2x128xf32>, i32 -> vector<2x128xf32>
    %408 = arith.select %2, %406, %407 : vector<2x128xi1>, vector<2x128xf32>
    %409 = math.tanh %408 : vector<2x128xf32>
    %410 = arith.mulf %402, %409 : vector<2x128xf32>
    %411 = arith.truncf %410 : vector<2x128xf32> to vector<2x128xbf16>
    %cst_95 = arith.constant dense<0.000000e+00> : vector<2x256xf32>
    %412 = tpu.matmul %411, %5, %cst_95 {dimension_numbers = #tpu.dot_dimension_numbers<[1], [0], [0], [1], [0, 0, 1, 1], [], []>} : vector<2x128xbf16>, vector<128x256xbf16>, vector<2x256xf32> -> vector<2x256xf32>
    %413 = vector.extract_strided_slice %14 {offsets = [0, 7, 0], sizes = [2, 1, 256], strides = [1, 1, 1]} : vector<2x8x256xf32> to vector<2x1x256xf32>
    %414 = vector.shape_cast %413 : vector<2x1x256xf32> to vector<2x256xf32>
    %415 = arith.truncf %383 : vector<2x128xf32> to vector<2x128xbf16>
    %cst_96 = arith.constant dense<0.000000e+00> : vector<2x256xf32>
    %416 = tpu.matmul %415, %3, %cst_96 {dimension_numbers = #tpu.dot_dimension_numbers<[1], [0], [0], [1], [0, 0, 1, 1], [], []>} : vector<2x128xbf16>, vector<128x256xbf16>, vector<2x256xf32> -> vector<2x256xf32>
    %417 = arith.addf %414, %416 : vector<2x256xf32>
    %418 = vector.extract_strided_slice %417 {offsets = [0, 0], sizes = [2, 128], strides = [1, 1]} : vector<2x256xf32> to vector<2x128xf32>
    %419 = vector.extract_strided_slice %417 {offsets = [0, 128], sizes = [2, 128], strides = [1, 1]} : vector<2x256xf32> to vector<2x128xf32>
    %420 = arith.negf %418 : vector<2x128xf32>
    %421 = math.exp %420 : vector<2x128xf32>
    %cst_97 = arith.constant 1.000000e+00 : f32
    %422 = vector.broadcast %cst_97 : f32 to vector<2x128xf32>
    %423 = arith.addf %422, %421 : vector<2x128xf32>
    %424 = arith.divf %422, %423 : vector<2x128xf32>
    %425 = math.tanh %418 : vector<2x128xf32>
    %426 = arith.select %2, %424, %425 : vector<2x128xi1>, vector<2x128xf32>
    %427 = arith.negf %419 : vector<2x128xf32>
    %428 = math.exp %427 : vector<2x128xf32>
    %cst_98 = arith.constant 1.000000e+00 : f32
    %429 = vector.broadcast %cst_98 : f32 to vector<2x128xf32>
    %430 = arith.addf %429, %428 : vector<2x128xf32>
    %431 = arith.divf %429, %430 : vector<2x128xf32>
    %c64_i32_99 = arith.constant 64 : i32
    %432 = tpu.dynamic_rotate %426 by %c64_i32_99 dim 1 : vector<2x128xf32>, i32 -> vector<2x128xf32>
    %433 = arith.mulf %426, %432 : vector<2x128xf32>
    %434 = arith.mulf %431, %381 : vector<2x128xf32>
    %435 = arith.addf %434, %433 : vector<2x128xf32>
    %c64_i32_100 = arith.constant 64 : i32
    %436 = tpu.dynamic_rotate %435 by %c64_i32_100 dim 1 : vector<2x128xf32>, i32 -> vector<2x128xf32>
    %437 = arith.select %2, %435, %436 : vector<2x128xi1>, vector<2x128xf32>
    %438 = math.tanh %437 : vector<2x128xf32>
    %439 = arith.mulf %431, %438 : vector<2x128xf32>
    %440 = arith.truncf %439 : vector<2x128xf32> to vector<2x128xbf16>
    %cst_101 = arith.constant dense<0.000000e+00> : vector<2x256xf32>
    %441 = tpu.matmul %440, %4, %cst_101 {dimension_numbers = #tpu.dot_dimension_numbers<[1], [0], [0], [1], [0, 0, 1, 1], [], []>} : vector<2x128xbf16>, vector<128x256xbf16>, vector<2x256xf32> -> vector<2x256xf32>
    %442 = arith.addf %441, %412 : vector<2x256xf32>
    %443 = vector.broadcast %6 : vector<1x256xf32> to vector<2x256xf32>
    %444 = arith.addf %442, %443 : vector<2x256xf32>
    %445 = vector.extract_strided_slice %444 {offsets = [0, 0], sizes = [2, 128], strides = [1, 1]} : vector<2x256xf32> to vector<2x128xf32>
    %446 = vector.extract_strided_slice %444 {offsets = [0, 128], sizes = [2, 128], strides = [1, 1]} : vector<2x256xf32> to vector<2x128xf32>
    %447 = arith.negf %445 : vector<2x128xf32>
    %448 = math.exp %447 : vector<2x128xf32>
    %cst_102 = arith.constant 1.000000e+00 : f32
    %449 = vector.broadcast %cst_102 : f32 to vector<2x128xf32>
    %450 = arith.addf %449, %448 : vector<2x128xf32>
    %451 = arith.divf %449, %450 : vector<2x128xf32>
    %452 = math.tanh %445 : vector<2x128xf32>
    %453 = arith.select %2, %451, %452 : vector<2x128xi1>, vector<2x128xf32>
    %454 = arith.negf %446 : vector<2x128xf32>
    %455 = math.exp %454 : vector<2x128xf32>
    %cst_103 = arith.constant 1.000000e+00 : f32
    %456 = vector.broadcast %cst_103 : f32 to vector<2x128xf32>
    %457 = arith.addf %456, %455 : vector<2x128xf32>
    %458 = arith.divf %456, %457 : vector<2x128xf32>
    %c64_i32_104 = arith.constant 64 : i32
    %459 = tpu.dynamic_rotate %453 by %c64_i32_104 dim 1 : vector<2x128xf32>, i32 -> vector<2x128xf32>
    %460 = arith.mulf %453, %459 : vector<2x128xf32>
    %461 = arith.mulf %458, %408 : vector<2x128xf32>
    %462 = arith.addf %461, %460 : vector<2x128xf32>
    %c64_i32_105 = arith.constant 64 : i32
    %463 = tpu.dynamic_rotate %462 by %c64_i32_105 dim 1 : vector<2x128xf32>, i32 -> vector<2x128xf32>
    %464 = arith.select %2, %462, %463 : vector<2x128xi1>, vector<2x128xf32>
    %465 = math.tanh %464 : vector<2x128xf32>
    %466 = arith.mulf %458, %465 : vector<2x128xf32>
    %c0_106 = arith.constant 0 : index
    %c0_107 = arith.constant 0 : index
    %467 = vector.load %arg7[%c0_106, %c0_107] : memref<128x32xf32, #tpu.memory_space<vmem>>, vector<128x32xf32>
    %cst_108 = arith.constant dense<0.000000e+00> : vector<2x32xf32>
    %468 = tpu.matmul %466, %467, %cst_108 {dimension_numbers = #tpu.dot_dimension_numbers<[1], [0], [0], [1], [0, 0, 1, 1], [], []>} : vector<2x128xf32>, vector<128x32xf32>, vector<2x32xf32> -> vector<2x32xf32>
    %c0_109 = arith.constant 0 : index
    %c0_110 = arith.constant 0 : index
    %469 = vector.load %arg8[%c0_109, %c0_110] : memref<1x32xf32, #tpu.memory_space<vmem>>, vector<1x32xf32>
    %470 = vector.broadcast %469 : vector<1x32xf32> to vector<2x32xf32>
    %471 = arith.addf %468, %470 : vector<2x32xf32>
    %cst_111 = arith.constant 0.000000e+00 : f32
    %472 = vector.broadcast %cst_111 : f32 to vector<2x32xf32>
    %473 = arith.maximumf %471, %472 : vector<2x32xf32>
    %c0_112 = arith.constant 0 : index
    %c0_113 = arith.constant 0 : index
    %474 = vector.load %arg9[%c0_112, %c0_113] : memref<32x16xf32, #tpu.memory_space<vmem>>, vector<32x16xf32>
    %cst_114 = arith.constant dense<0.000000e+00> : vector<2x16xf32>
    %475 = tpu.matmul %473, %474, %cst_114 {dimension_numbers = #tpu.dot_dimension_numbers<[1], [0], [0], [1], [0, 0, 1, 1], [], []>} : vector<2x32xf32>, vector<32x16xf32>, vector<2x16xf32> -> vector<2x16xf32>
    %c0_115 = arith.constant 0 : index
    %c0_116 = arith.constant 0 : index
    %476 = vector.load %arg10[%c0_115, %c0_116] : memref<1x16xf32, #tpu.memory_space<vmem>>, vector<1x16xf32>
    %477 = vector.broadcast %476 : vector<1x16xf32> to vector<2x16xf32>
    %478 = arith.addf %475, %477 : vector<2x16xf32>
    %cst_117 = arith.constant 0.000000e+00 : f32
    %479 = vector.broadcast %cst_117 : f32 to vector<2x16xf32>
    %480 = arith.maximumf %478, %479 : vector<2x16xf32>
    %c0_118 = arith.constant 0 : index
    %c0_119 = arith.constant 0 : index
    %481 = vector.load %arg11[%c0_118, %c0_119] : memref<16x3xf32, #tpu.memory_space<vmem>>, vector<16x3xf32>
    %cst_120 = arith.constant dense<0.000000e+00> : vector<2x3xf32>
    %482 = tpu.matmul %480, %481, %cst_120 {dimension_numbers = #tpu.dot_dimension_numbers<[1], [0], [0], [1], [0, 0, 1, 1], [], []>} : vector<2x16xf32>, vector<16x3xf32>, vector<2x3xf32> -> vector<2x3xf32>
    %c0_121 = arith.constant 0 : index
    %c0_122 = arith.constant 0 : index
    %483 = vector.load %arg12[%c0_121, %c0_122] : memref<1x3xf32, #tpu.memory_space<vmem>>, vector<1x3xf32>
    %484 = vector.broadcast %483 : vector<1x3xf32> to vector<2x3xf32>
    %485 = arith.addf %482, %484 : vector<2x3xf32>
    %c0_123 = arith.constant 0 : index
    %c0_124 = arith.constant 0 : index
    %486 = vector.load %arg13[%c0_123, %c0_124] : memref<2x3xf32, #tpu.memory_space<vmem>>, vector<2x3xf32>
    tpu.vector_store %arg13[%c0_123, %c0_124], %485 {strides = array<i32>} : memref<2x3xf32, #tpu.memory_space<vmem>>, vector<2x3xf32>,
    return
  }
}

</mosaic_0001>

<bundles_post_ra>
// kernel: improved_lstm_forward.1
= control target key start
LH: loop header
LB: loop body
LE: loop exit
PB: predicated region body
PF: predicated region fallthrough
CT: control target
= control target key end

     0   :  { %18 = vsyncpa [#allocation3], 0  ;;  %s5096_s0 = inlined_call_operand.hbm [shape: f32[2,8,8], index: 0, kind: input, shape index: {}]   ;;  %s5097_s1 = inlined_call_operand.hbm [shape: f32[8,256], index: 1, kind: input, shape index: {}]   ;;  %s5098_s2 = inlined_call_operand.vmem [shape: bf16[128,256], index: 2, kind: input, shape index: {}]   ;;  %s5099_s3 = inlined_call_operand.vmem [shape: f32[1,256], index: 3, kind: input, shape index: {}]   ;;  %s5100_s4 = inlined_call_operand.vmem [shape: bf16[128,256], index: 4, kind: input, shape index: {}]   ;;  %s5101_s5 = inlined_call_operand.hbm [shape: bf16[128,256], index: 5, kind: input, shape index: {}]   ;;  %s5102_s6 = inlined_call_operand.hbm [shape: f32[1,256], index: 6, kind: input, shape index: {}]   ;;  %s5103_s7 = inlined_call_operand.vmem [shape: f32[128,32], index: 7, kind: input, shape index: {}]   ;;  %s5104_s8 = inlined_call_operand.hbm [shape: f32[1,32], index: 8, kind: input, shape index: {}]   ;;  %s5105_s9 = inlined_call_operand.vmem [shape: f32[32,16], index: 9, kind: input, shape index: {}]   ;;  %s5106_s10 = inlined_call_operand.hbm [shape: f32[1,16], index: 10, kind: input, shape index: {}]   ;;  %s5107_s11 = inlined_call_operand.vmem [shape: f32[16,3], index: 11, kind: input, shape index: {}]   ;;  %s5108_s12 = inlined_call_operand.hbm [shape: f32[1,3], index: 12, kind: input, shape index: {}]   ;;  %s5109_s13 = inlined_call_operand.hbm [shape: f32[2,3], index: 13, kind: output, shape index: {}]  }
   0x1   :  { %19 = vsyncpa [#allocation6], 0 }
   0x2   :  { %20 = vsyncpa [#allocation9], 0 }
   0x3   :  { %21 = vsyncpa [#allocation12], 0 }
   0x4   :  { %22 = vsyncpa [#allocation4], 0  ;;  %s3611_s25 = smov [#allocation5]   ;;  %s3612_s27 = smov [#allocation8]  }
   0x5   :  { %s41_s26 = sshll.u32 %s3611_s25, 4  ;;  %s69_s28 = sshll.u32 %s3612_s27, 4  ;;  %s42_s26 = int_to_ptr.vmem [resolvable:$true] %s41_s26  ;;  %s70_s28 = int_to_ptr.vmem [resolvable:$true] %s69_s28 }
   0x6   :  { %s3425_s14 = scalar_lea.hbm %s5097_s1, 256 }
   0x7   :  { %p3426_p0 = scmp.ne.s32.totalorder %s5097_s1, %s3425_s14  ;;  %p3429_p1 = scmp.lt.u32.totalorder %s3425_s14, %s5097_s1 }
   0x9   :  { %p3431_p2 = pnand %p3429_p1, %p3426_p0 }
   0xb   :  { %3434 = shalt.err (!%p3431_p2)
}
   0xc   :  { %s3435_s19 = scalar_lea.vmem %s42_s26, 256  ;;  %p3440_p4 = scmp.lt.s32.totalorder %s42_s26, %s42_s26 }
   0xd   :  { %p3436_p3 = scmp.ne.s32.totalorder %s42_s26, %s3435_s19  ;;  %p3441_p5 = scmp.lt.s32.totalorder %s3435_s19, %s3435_s19 }
   0xf   :  { %p3442_p6 = por %p3441_p5, %p3440_p4 }
  0x11   :  { %p3443_p7 = pnand %p3442_p6, %p3436_p3 }
  0x13   :  { %3446 = shalt.err (!%p3443_p7)
}
  0x14   :  { %44 = dma.hbm_to_vmem [thread:$0]  %s5097_s1, 256, %s42_s26, [#allocation6]  }
  0x15   :  { %s3447_s24 = scalar_lea.hbm %s5102_s6, 32 }
  0x16   :  { %p3448_p8 = scmp.ne.s32.totalorder %s5102_s6, %s3447_s24  ;;  %p3451_p9 = scmp.lt.u32.totalorder %s3447_s24, %s5102_s6 }
  0x18   :  { %p3453_p10 = pnand %p3451_p9, %p3448_p8 }
  0x1a   :  { %3456 = shalt.err (!%p3453_p10)
}
  0x1b   :  { %s3457_s14 = scalar_lea.vmem %s70_s28, 32  ;;  %p3462_p12 = scmp.lt.s32.totalorder %s70_s28, %s70_s28 }
  0x1c   :  { %p3458_p11 = scmp.ne.s32.totalorder %s70_s28, %s3457_s14  ;;  %p3463_p13 = scmp.lt.s32.totalorder %s3457_s14, %s3457_s14 }
  0x1e   :  { %p3464_p0 = por %p3463_p13, %p3462_p12 }
  0x20   :  { %p3465_p1 = pnand %p3464_p0, %p3458_p11 }
  0x22   :  { %3468 = shalt.err (!%p3465_p1)
}
  0x23   :  { %72 = dma.hbm_to_vmem [thread:$0]  %s5102_s6, 32, %s70_s28, [#allocation9]  }
  0x24   :  { %s3613_s15 = smov [#allocation11]   ;;  %s3614_s17 = smov [#allocation2]  }
  0x25   :  { %s93_s16 = sshll.u32 %s3613_s15, 4  ;;  %s28_s18 = sshll.u32 %s3614_s17, 4  ;;  %s94_s16 = int_to_ptr.vmem [resolvable:$true] %s93_s16  ;;  %s3720_s18 = int_to_ptr.vmem [resolvable:$true] %s28_s18 }
  0x26   :  { %s3469_s21 = scalar_lea.hbm %s5106_s10, 16 }
  0x27   :  { %p3470_p2 = scmp.ne.s32.totalorder %s5106_s10, %s3469_s21  ;;  %p3473_p3 = scmp.lt.u32.totalorder %s3469_s21, %s5106_s10 }
  0x29   :  { %p3475_p4 = pnand %p3473_p3, %p3470_p2 }
  0x2b   :  { %3478 = shalt.err (!%p3475_p4)
}
  0x2c   :  { %s3479_s6 = scalar_lea.vmem %s94_s16, 16  ;;  %s3483_s28 = scalar_lea.vmem %s94_s16, 32 }
  0x2d   :  { %p3480_p5 = scmp.ne.s32.totalorder %s94_s16, %s3479_s6  ;;  %p3484_p6 = scmp.lt.s32.totalorder %s94_s16, %s94_s16 }
  0x2e   :  { %p3485_p7 = scmp.lt.s32.totalorder %s3483_s28, %s3479_s6 }
  0x30   :  { %p3486_p8 = por %p3485_p7, %p3484_p6 }
  0x32   :  { %p3487_p9 = pnand %p3486_p8, %p3480_p5 }
  0x34   :  { %3490 = shalt.err (!%p3487_p9)
}
  0x35   :  { %96 = dma.hbm_to_vmem [thread:$0]  %s5106_s10, 16, %s94_s16, [#allocation12]  }
  0x36   :  { %s3491_s1 = scalar_lea.hbm %s5096_s0, 256 }
  0x37   :  { %p3492_p10 = scmp.ne.s32.totalorder %s5096_s0, %s3491_s1  ;;  %p3495_p11 = scmp.lt.u32.totalorder %s3491_s1, %s5096_s0 }
  0x39   :  { %p3497_p12 = pnand %p3495_p11, %p3492_p10 }
  0x3b   :  { %3500 = shalt.err (!%p3497_p12)
}
  0x3c   :  { %s3501_s20 = scalar_lea.vmem %s3720_s18, 256  ;;  %p3506_p0 = scmp.lt.s32.totalorder %s3720_s18, %s3720_s18 }
  0x3d   :  { %p3502_p13 = scmp.ne.s32.totalorder %s3720_s18, %s3501_s20  ;;  %p3507_p1 = scmp.lt.s32.totalorder %s3501_s20, %s3501_s20 }
  0x3f   :  { %p3508_p2 = por %p3507_p1, %p3506_p0 }
  0x41   :  { %p3509_p3 = pnand %p3508_p2, %p3502_p13 }
  0x43   :  { %3512 = shalt.err (!%p3509_p3)
}
  0x44   :  { %s3615_s10 = smov 128   ;;  %s3616_s16 = smov 8  }
  0x45   :  { %34 = dma.hbm_to_vmem [thread:$0]  %s5096_s0, 256, %s3720_s18, [#allocation3], %s3615_s10, %s3615_s10, %s3616_s16  }
  0x46   :  { %s3617_s23 = smov [#allocation7]   ;;  %s3618_s25 = smov [#allocation10]  }
  0x47   :  { %s56_s24 = sshll.u32 %s3617_s23, 4  ;;  %s81_s6 = sshll.u32 %s3618_s25, 4  ;;  %s57_s24 = int_to_ptr.vmem [resolvable:$true] %s56_s24  ;;  %s82_s6 = int_to_ptr.vmem [resolvable:$true] %s81_s6 }
  0x48   :  { %s3513_s29 = scalar_lea.hbm %s5101_s5, 2048 }
  0x49   :  { %p3514_p4 = scmp.ne.s32.totalorder %s5101_s5, %s3513_s29  ;;  %p3517_p5 = scmp.lt.u32.totalorder %s3513_s29, %s5101_s5 }
  0x4b   :  { %p3519_p6 = pnand %p3517_p5, %p3514_p4 }
  0x4d   :  { %3522 = shalt.err (!%p3519_p6)
}
  0x4e   :  { %s3523_s0 = scalar_lea.vmem %s57_s24, 2048  ;;  %p3528_p8 = scmp.lt.s32.totalorder %s57_s24, %s57_s24 }
  0x4f   :  { %p3524_p7 = scmp.ne.s32.totalorder %s57_s24, %s3523_s0  ;;  %p3529_p9 = scmp.lt.s32.totalorder %s3523_s0, %s3523_s0 }
  0x51   :  { %p3530_p10 = por %p3529_p9, %p3528_p8 }
  0x53   :  { %p3531_p11 = pnand %p3530_p10, %p3524_p7 }
  0x55   :  { %3534 = shalt.err (!%p3531_p11)
}
  0x56   :  { %62 = dma.hbm_to_vmem [thread:$0]  %s5101_s5, 2048, %s57_s24, [#allocation6], %s3615_s10, %s3615_s10, %s3616_s16  }
  0x57   :  { %s3535_s20 = scalar_lea.hbm %s5104_s8, 16 }
  0x58   :  { %p3536_p12 = scmp.ne.s32.totalorder %s5104_s8, %s3535_s20  ;;  %p3539_p13 = scmp.lt.u32.totalorder %s3535_s20, %s5104_s8 }
  0x5a   :  { %p3541_p0 = pnand %p3539_p13, %p3536_p12 }
  0x5c   :  { %3544 = shalt.err (!%p3541_p0)
}
  0x5d   :  { %s3545_s28 = scalar_lea.vmem %s82_s6, 16  ;;  %s3549_s27 = scalar_lea.vmem %s82_s6, 32 }
  0x5e   :  { %p3546_p1 = scmp.ne.s32.totalorder %s82_s6, %s3545_s28  ;;  %p3550_p2 = scmp.lt.s32.totalorder %s82_s6, %s82_s6 }
  0x5f   :  { %p3551_p3 = scmp.lt.s32.totalorder %s3549_s27, %s3545_s28 }
  0x61   :  { %p3552_p4 = por %p3551_p3, %p3550_p2 }
  0x63   :  { %p3553_p5 = pnand %p3552_p4, %p3546_p1 }
  0x65   :  { %3556 = shalt.err (!%p3553_p5)
}
  0x66   :  { %84 = dma.hbm_to_vmem [thread:$0]  %s5104_s8, 16, %s82_s6, [#allocation9]  }
  0x67   :  { %s3619_s16 = smov [#allocation13]   ;;  %s3557_s14 = scalar_lea.hbm %s5108_s12, 16 }
  0x68   :  { %s105_s24 = sshll.u32 %s3619_s16, 4  ;;  %p3558_p6 = scmp.ne.s32.totalorder %s5108_s12, %s3557_s14  ;;  %s106_s24 = int_to_ptr.vmem [resolvable:$true] %s105_s24 }
  0x69   :  { %p3561_p7 = scmp.lt.u32.totalorder %s3557_s14, %s5108_s12 }
  0x6b   :  { %p3563_p8 = pnand %p3561_p7, %p3558_p6 }
  0x6d   :  { %3566 = shalt.err (!%p3563_p8)
}
  0x6e   :  { %s3567_s15 = scalar_lea.vmem %s106_s24, 16  ;;  %s3571_s8 = scalar_lea.vmem %s106_s24, 32 }
  0x6f   :  { %p3568_p9 = scmp.ne.s32.totalorder %s106_s24, %s3567_s15  ;;  %p3572_p10 = scmp.lt.s32.totalorder %s106_s24, %s106_s24 }
  0x70   :  { %p3573_p11 = scmp.lt.s32.totalorder %s3571_s8, %s3567_s15 }
  0x72   :  { %p3574_p12 = por %p3573_p11, %p3572_p10 }
  0x74   :  { %p3575_p13 = pnand %p3574_p12, %p3568_p9 }
  0x76   :  { %3578 = shalt.err (!%p3575_p13)
}
  0x77   :  { %108 = dma.hbm_to_vmem [thread:$0]  %s5108_s12, 16, %s106_s24, [#allocation12]  }
  0x78   :  { %3601 = dma.done.wait [#allocation3], 256  }
  0x79   :  { %3602 = vsyncadd [#allocation3], 4294967040 }
  0x7a   :  { %3603 = dma.done.wait [#allocation6], 2304  }
  0x7b   :  { %3604 = vsyncadd [#allocation6], 4294964992 }
  0x7c   :  { %3605 = dma.done.wait [#allocation9], 48  }
  0x7d   :  { %3606 = vsyncadd [#allocation9], 4294967248 }
  0x7e   :  { %3607 = dma.done.wait [#allocation12], 32  }
  0x7f   :  { %3608 = vsyncadd [#allocation12], 4294967264  ;;  %v5110_v0 = vmov 0.0   ;;  %v5113_v1 = vmov 0   ;;  %v186_v2 = vld [vmem:[#allocation5 + $0x8] sm:$0xff]  ;;  %v185_v3 = vld [vmem:[#allocation5] sm:$0xff]  ;;  %v131_v22 = vlaneseq }
  0x80   :  { %270 = vmatprep.mubr.f32.mxu0 %v5110_v0  ;;  %395 = vmatprep.mubr.bf16.mxu1 %v5113_v1  ;;  %v183_v4 = vld [vmem:[#allocation2] sm:$0xff]  ;;  %vm199_vm0 = vcmask 64512   ;;  %v3804_v7 = vld [vmem:[%s5098_s2 + $0x14] ss:$8 sps:$4 sm:$0xff]   ;;  %v3810_v8 = vld [vmem:[%s5098_s2 + $0x10] ss:$8 sps:$4 sm:$0xff]  }
  0x81   :  { %206 = vmatprep.subr.mxu0 %v186_v2  ;;  %v3792_v5 = vld [vmem:[%s5098_s2 + $0x4] ss:$8 sps:$4 sm:$0xff]   ;;  %v3797_v6 = vld [vmem:[%s5098_s2] ss:$8 sps:$4 sm:$0xff]   ;;  %v3829_v11 = vld [vmem:[%s5098_s2 + $0x34] ss:$8 sps:$4 sm:$0xff]  }
  0x82   :  { %5156 = vst [vmem:[#allocation20_spill] sm:$0xff] %v3792_v5  ;;  %207 = vmatpush1.msra.mxu0 %v185_v3  ;;  %v3817_v9 = vld [vmem:[%s5098_s2 + $0x24] ss:$8 sps:$4 sm:$0xff]   ;;  %v3823_v10 = vld [vmem:[%s5098_s2 + $0x20] ss:$8 sps:$4 sm:$0xff]   ;;  %v3891_v23 = vshrl.u32 %v131_v22, 7 }
  0x83   :  { %2779 = vmatmul.mubr.msk.f32.vlgmr.msra.gmra.mrb[0].mxu0 %vm199_vm0, %v183_v4  ;;  %484 = vmatprep.subr.bf16.mxu0 %v3792_v5  ;;  %v184_v12 = vld [vmem:[#allocation2 + $0x8] sm:$0xff]  ;;  %v3836_v13 = vld [vmem:[%s5098_s2 + $0x30] ss:$8 sps:$4 sm:$0xff]   ;;  %v3853_v16 = vld [vmem:[%s5098_s2 + $0x54] ss:$8 sps:$4 sm:$0xff]   ;;  %v3922_v50 = vand.u32 127, %v131_v22 }
  0x84   :  { %485 = vmatpush1.bf16.msra.mxu0 %v3797_v6  ;;  %276 = vmatprep.mubr.f32.mxu0 %v5110_v0  ;;  %v3841_v14 = vld [vmem:[%s5098_s2 + $0x44] ss:$8 sps:$4 sm:$0xff]   ;;  %v3848_v15 = vld [vmem:[%s5098_s2 + $0x40] ss:$8 sps:$4 sm:$0xff]   ;;  %v3860_v17 = vld [vmem:[%s5098_s2 + $0x50] ss:$8 sps:$4 sm:$0xff]  }
  0x85   :  { %486 = vmatprep.subr.bf16.mxu0 %v3804_v7  ;;  %v3865_v18 = vld [vmem:[%s5098_s2 + $0x64] ss:$8 sps:$4 sm:$0xff]   ;;  %v3873_v19 = vld [vmem:[%s5098_s2 + $0x60] ss:$8 sps:$4 sm:$0xff]   ;;  %v3879_v20 = vld [vmem:[%s5098_s2 + $0x74] ss:$8 sps:$4 sm:$0xff]  }
  0x86   :  { %v3885_v21 = vld [vmem:[%s5098_s2 + $0x70] ss:$8 sps:$4 sm:$0xff]   ;;  %v3893_v24 = vld [vmem:[#allocation8] sm:$0x3]  ;;  %v195_v25 = vsub.s32 1, %v3891_v23  ;;  %v5112_v31 = vsub.s32 0, %v3891_v23 }
  0x87   :  { %2780 = vmatmul.mubr.msk.f32.gmra.mrb[2].mxu0 %vm199_vm0, %v184_v12  ;;  %v3909_v32 = vld [vmem:[%s5099_s3] sm:$0x3]  ;;  %vm554_vm1 = vcmask 1041409   ;;  %vm133_vm2 = vcmp.lt.s32.totalorder %v3922_v50, 64  ;;  %v3925_v55 = vld [vmem:[#allocation7 + $0x4] ss:$8 sps:$4 sm:$0xff]  }
  0x88   :  { %487 = vmatpush1.bf16.msra.mxu0 %v3810_v8  ;;  %516 = vmatprep.mubr.bf16.mxu0 %v5113_v1  ;;  %v3899_v26 = vrot.slane %v3893_v24, %v195_v25  ;;  %v192_v33 = vrot.slane %v3909_v32, %v5112_v31  ;;  %v3927_v56 = vld [vmem:[#allocation7] ss:$8 sps:$4 sm:$0xff]   ;;  %v3929_v58 = vld [vmem:[#allocation7 + $0x14] ss:$8 sps:$4 sm:$0xff]   ;;  %v3940_v62 = vld [vmem:[#allocation7 + $0x10] ss:$8 sps:$4 sm:$0xff]  }
  0x89   :  { %488 = vmatprep.subr.bf16.mxu0 %v3817_v9  ;;  %363 = vmatprep.subr.bf16.mxu1 %v3925_v55  ;;  %s3622_s3 = smov 64   ;;  %v3946_v63 = vld [vmem:[#allocation7 + $0x24] ss:$8 sps:$4 sm:$0xff]   ;;  %v3950_v2 = vld [vmem:[#allocation7 + $0x20] ss:$8 sps:$4 sm:$0xff]   ;;  %vm3624_vm3 = vmmov 0  }
  0x8a   :  { %364 = vmatpush1.bf16.msra.mxu1 %v3927_v56  ;;  %v3954_v3 = vld [vmem:[#allocation7 + $0x34] ss:$8 sps:$4 sm:$0xff]   ;;  %v3958_v4 = vld [vmem:[#allocation7 + $0x30] ss:$8 sps:$4 sm:$0xff]   ;;  %v3962_v12 = vld [vmem:[#allocation7 + $0x44] ss:$8 sps:$4 sm:$0xff]  }
  0x8b   :  { %365 = vmatprep.subr.bf16.mxu1 %v3929_v58  ;;  %v3966_v22 = vld [vmem:[#allocation7 + $0x40] ss:$8 sps:$4 sm:$0xff]   ;;  %vm2601_vm4 = vcmask 261120   ;;  %vm2685_vm5 = vcmask 130048   ;;  %s3625_s12 = smov [#allocation14]   ;;  %vm2759_vm6 = vcmask 17408  }
  0x8c   :  { %489 = vmatpush1.bf16.msra.mxu0 %v3823_v10  ;;  %s2767_s19 = sshll.u32 %s3625_s12, 4  ;;  %s2768_s19 = int_to_ptr.vmem [resolvable:$true] %s2767_s19 }
  0x8d   :  { %490 = vmatprep.subr.bf16.mxu0 %v3829_v11  ;;  %s3579_s20 = scalar_lea.vmem %s2768_s19, 32  ;;  %p3584_p1 = scmp.lt.s32.totalorder %s2768_s19, %s2768_s19 }
  0x8e   :  { %366 = vmatpush1.bf16.msra.mxu1 %v3940_v62  ;;  %p3580_p0 = scmp.ne.s32.totalorder %s2768_s19, %s3579_s20  ;;  %p3585_p2 = scmp.lt.s32.totalorder %s3579_s20, %s3579_s20 }
  0x8f   :  { %367 = vmatprep.subr.bf16.mxu1 %v3946_v63 }
  0x90   :  { %491 = vmatpush1.bf16.msra.mxu0 %v3836_v13  ;;  %p3586_p3 = por %p3585_p2, %p3584_p1 }
  0x91   :  { %492 = vmatprep.subr.bf16.mxu0 %v3841_v14 }
  0x92   :  { %368 = vmatpush1.bf16.msra.mxu1 %v3950_v2  ;;  %p3587_p4 = pnand %p3586_p3, %p3580_p0 }
  0x93   :  { %369 = vmatprep.subr.bf16.mxu1 %v3954_v3 }
  0x94   :  { %493 = vmatpush1.bf16.msra.mxu0 %v3848_v15 }
  0x95   :  { %494 = vmatprep.subr.bf16.mxu0 %v3853_v16 }
  0x96   :  { %370 = vmatpush1.bf16.msra.mxu1 %v3958_v4 }
  0x97   :  { %371 = vmatprep.subr.bf16.mxu1 %v3962_v12 }
  0x98   :  { %495 = vmatpush1.bf16.msra.mxu0 %v3860_v17 }
  0x99   :  { %496 = vmatprep.subr.bf16.mxu0 %v3865_v18 }
  0x9a   :  { %372 = vmatpush1.bf16.msra.mxu1 %v3966_v22 }
  0x9c   :  { %497 = vmatpush1.bf16.msra.mxu0 %v3873_v19 }
  0x9d   :  { %498 = vmatprep.subr.bf16.mxu0 %v3879_v20 }
  0xa0   :  { %499 = vmatpush1.bf16.msra.mxu0 %v3885_v21 }
  0xa1   :  { %770 = vmatprep.subr.bf16.mxu0 %v3925_v55 }
  0xa3   :  { %517 = vmatmul.mubr.bf16.vlgmr.msra.gmra.mrb[4].mxu0 %v5113_v1 }
  0xa4   :  { %802 = vmatprep.mubr.bf16.mxu0 %v5113_v1  ;;  %771 = vmatpush1.bf16.msra.mxu0 %v3927_v56 }
  0xa5   :  { %772 = vmatprep.subr.bf16.mxu0 %v3929_v58 }
  0xa8   :  { %773 = vmatpush1.bf16.msra.mxu0 %v3940_v62 }
  0xa9   :  { %774 = vmatprep.subr.bf16.mxu0 %v3946_v63 }
  0xac   :  { %775 = vmatpush1.bf16.msra.mxu0 %v3950_v2 }
  0xad   :  { %776 = vmatprep.subr.bf16.mxu0 %v3954_v3 }
  0xb0   :  { %777 = vmatpush1.bf16.msra.mxu0 %v3958_v4 }
  0xb1   :  { %778 = vmatprep.subr.bf16.mxu0 %v3962_v12 }
  0xb4   :  { %779 = vmatpush1.bf16.msra.mxu0 %v3966_v22 }
 0x156   :  { %v272_v27 = vpop.f32.mrb[0].mxu0 }
 0x157   :  { %v3901_v28 = vpop.f32.mrb[1].mxu0  ;;  %v3914_v34 = vadd.f32 %v272_v27, %v192_v33  ;;  %v3970_v27 = vld [vmem:[#allocation7 + $0x54] ss:$8 sps:$4 sm:$0xff]  }
 0x158   :  { %373 = vmatprep.subr.bf16.mxu1 %v3970_v27  ;;  %780 = vmatprep.subr.bf16.mxu0 %v3970_v27 }
 0x159   :  { %5157 = vst [vmem:[#allocation21_spill] sm:$0xff] %v3914_v34 }
 0x15a   :  { %v278_v29 = vpop.f32.mrb[2].mxu0 }
 0x15b   :  { %v3903_v30 = vpop.f32.mrb[3].mxu0  ;;  %v3916_v36 = vadd.f32 %v278_v29, %v192_v33  ;;  %v3974_v29 = vld [vmem:[#allocation7 + $0x50] ss:$8 sps:$4 sm:$0xff]   ;;  %v3978_v33 = vld [vmem:[#allocation7 + $0x64] ss:$8 sps:$4 sm:$0xff]  }
 0x15c   :  { %374 = vmatpush1.bf16.msra.mxu1 %v3974_v29  ;;  %781 = vmatpush1.bf16.msra.mxu0 %v3974_v29 }
 0x15d   :  { %5158 = vst [vmem:[#allocation22_spill] sm:$0xff] %v3916_v36  ;;  %375 = vmatprep.subr.bf16.mxu1 %v3978_v33  ;;  %782 = vmatprep.subr.bf16.mxu0 %v3978_v33 }
 0x176   :  { %v518_v35 = vpop.f32.mrb[4].mxu0 }
 0x177   :  { %v527_v37 = vrot.slane %v518_v35, 1  ;;  %v533_v38 = vadd.f32 %v518_v35, %v3914_v34  ;;  %v3919_v39 = vpop.f32.mrb[5].mxu0  ;;  %v3982_v35 = vld [vmem:[#allocation7 + $0x60] ss:$8 sps:$4 sm:$0xff]  }
 0x178   :  { %v522_v40 = vpop.f32.mrb[6].mxu0  ;;  %376 = vmatpush1.bf16.msra.mxu1 %v3982_v35  ;;  %783 = vmatpush1.bf16.msra.mxu0 %v3982_v35 }
 0x179   :  { %v535_v41 = vadd.f32 %v527_v37, %v3916_v36  ;;  %v2813_v42 = vmul.f32 -1.442695, %v533_v38  ;;  %v523_v43 = vpop.f32.mrb[7].mxu0  ;;  %v3986_v37 = vld [vmem:[#allocation7 + $0x74] ss:$8 sps:$4 sm:$0xff]  }
 0x17a   :  { %377 = vmatprep.subr.bf16.mxu1 %v3986_v37  ;;  %v3997_v40 = vld [vmem:[%s5100_s4 + $0x4] ss:$8 sps:$4 sm:$0xff]   ;;  %784 = vmatprep.subr.bf16.mxu0 %v3986_v37  ;;  %v4019_v43 = vld [vmem:[%s5100_s4 + $0x10] ss:$8 sps:$4 sm:$0xff]  }
 0x17b   :  { %3080 = vpow2.f32 %v2813_v42  ;;  %v2814_v44 = vmul.f32 -1.442695, %v535_v41  ;;  %v4011_v42 = vld [vmem:[%s5100_s4 + $0x14] ss:$8 sps:$4 sm:$0xff]  }
 0x17d   :  { %3082 = vpow2.f32 %v2814_v44  ;;  %v196_v44 = vrot.slane %v3909_v32, %v195_v25 }
 0x17e   :  { %3084 = vtanh.f32 %v535_v41  ;;  %v4004_v41 = vld [vmem:[%s5100_s4] ss:$8 sps:$4 sm:$0xff]  }
 0x185   :  { %v3081_v45 = vpop.eup %3080 }
 0x186   :  { %v543_v47 = vadd.f32 1.0, %v3081_v45  ;;  %v528_v45 = vrot.slane %v3919_v39, 1 }
 0x187   :  { %v3083_v46 = vpop.eup %3082 }
 0x188   :  { %v544_v48 = vadd.f32 1.0, %v3083_v46  ;;  %v3085_v49 = vpop.eup %3084  ;;  %v4029_v46 = vadd.f32 %v3903_v30, %v196_v44  ;;  %v4045_v30 = vld [vmem:[%s5100_s4 + $0x20] ss:$8 sps:$4 sm:$0xff]  }
 0x189   :  { %v559_v51 = vrot.slane %v3085_v49, 7  ;;  %5159 = vst [vmem:[#allocation23_spill] sm:$0xff] %v4045_v30 }
 0x18a   :  { %3086 = vrcp.f32 %v544_v48  ;;  %v536_v48 = vadd.f32 %v528_v45, %v4029_v46  ;;  %v4058_v45 = vld [vmem:[%s5100_s4 + $0x30] ss:$8 sps:$4 sm:$0xff]  }
 0x18b   :  { %3088 = vtanh.f32 %v533_v38  ;;  %v3990_v38 = vld [vmem:[#allocation7 + $0x70] ss:$8 sps:$4 sm:$0xff]   ;;  %5161 = vst [vmem:[#allocation25_spill] sm:$0xff] %v4058_v45 }
 0x18c   :  { %3090 = vrcp.f32 %v543_v47  ;;  %378 = vmatpush1.bf16.msra.mxu1 %v3990_v38  ;;  %785 = vmatpush1.bf16.msra.mxu0 %v3990_v38  ;;  %v4032_v47 = vadd.f32 %v3901_v28, %v196_v44  ;;  %v4040_v28 = vld [vmem:[%s5100_s4 + $0x24] ss:$8 sps:$4 sm:$0xff]  }
 0x18d   :  { %691 = vmatprep.subr.bf16.mxu1 %v3997_v40  ;;  %941 = vmatprep.subr.bf16.mxu0 %v3997_v40 }
 0x18e   :  { %v534_v49 = vadd.f32 %v3919_v39, %v4032_v47 }
 0x18f   :  { %396 = vmatmul.mubr.bf16.vlgmr.msra.gmra.mrb[0].mxu1 %v5113_v1 }
 0x190   :  { %692 = vmatpush1.bf16.msra.mxu1 %v4004_v41  ;;  %723 = vmatprep.mubr.bf16.mxu1 %v5113_v1 }
 0x191   :  { %693 = vmatprep.subr.bf16.mxu1 %v4011_v42 }
 0x194   :  { %v3087_v52 = vpop.eup %3086  ;;  %694 = vmatpush1.bf16.msra.mxu1 %v4019_v43 }
 0x195   :  { %v3089_v53 = vpop.eup %3088  ;;  %v553_v54 = vrot.slane %v3087_v52, 7  ;;  %v2815_v52 = vmul.f32 -1.442695, %v534_v49  ;;  %695 = vmatprep.subr.bf16.mxu1 %v4040_v28 }
 0x196   :  { %v3091_v57 = vpop.eup %3090  ;;  %v560_v60 = vsel %vm554_vm1, %v559_v51, %v3089_v53  ;;  %v2816_v51 = vmul.f32 -1.442695, %v536_v48 }
 0x197   :  { %v555_v59 = vsel %vm554_vm1, %v553_v54, %v3091_v57 }
 0x198   :  { %v3937_v61 = vsel %vm133_vm2, %v555_v59, %v560_v60  ;;  %3092 = vpow2.f32 %v2816_v51  ;;  %696 = vmatpush1.bf16.msra.mxu1 %v4045_v30  ;;  %v4053_v60 = vld [vmem:[%s5100_s4 + $0x34] ss:$8 sps:$4 sm:$0xff]  }
 0x199   :  { %575 = vrot.lane.b32.xlu0 %v3937_v61, %s3622_s3  ;;  %3094 = vpow2.f32 %v2815_v52  ;;  %5160 = vst [vmem:[#allocation24_spill] sm:$0xff] %v4053_v60  ;;  %697 = vmatprep.subr.bf16.mxu1 %v4053_v60 }
 0x19c   :  { %698 = vmatpush1.bf16.msra.mxu1 %v4058_v45 }
 0x1a2   :  { %v3093_v53 = vpop.eup %3092 }
 0x1a3   :  { %v3095_v54 = vpop.eup %3094  ;;  %v570_v25 = vadd.f32 1.0, %v3093_v53  ;;  %v4070_v53 = vld [vmem:[%s5100_s4 + $0x40] ss:$8 sps:$4 sm:$0xff]  }
 0x1a4   :  { %v569_v32 = vadd.f32 1.0, %v3095_v54  ;;  %5163 = vst [vmem:[#allocation27_spill] sm:$0xff] %v4070_v53 }
 0x1a5   :  { %3096 = vrcp.f32 %v570_v25 }
 0x1a6   :  { %3098 = vrcp.f32 %v569_v32 }
 0x1af   :  { %v3097_v39 = vpop.eup %3096 }
 0x1b0   :  { %v3099_v44 = vpop.eup %3098  ;;  %v579_v48 = vmul.f32 0.0, %v3097_v39 }
 0x1b1   :  { %v578_v51 = vmul.f32 0.0, %v3099_v44 }
 0x20b   :  { %v576_v57 = vpop.permute.xlu0 %575 }
 0x20c   :  { %v577_v59 = vmul.f32 %v576_v57, %v3937_v61  ;;  %v4065_v61 = vld [vmem:[%s5100_s4 + $0x44] ss:$8 sps:$4 sm:$0xff]   ;;  %v4078_v57 = vld [vmem:[%s5100_s4 + $0x54] ss:$8 sps:$4 sm:$0xff]  }
 0x20d   :  { %5162 = vst [vmem:[#allocation26_spill] sm:$0xff] %v4065_v61  ;;  %699 = vmatprep.subr.bf16.mxu1 %v4065_v61  ;;  %5164 = vst [vmem:[#allocation28_spill] sm:$0xff] %v4078_v57 }
 0x20e   :  { %v581_v49 = vrot.slane %v577_v59, 1  ;;  %v584_v54 = vadd.f32 %v578_v51, %v577_v59  ;;  %700 = vmatpush1.bf16.msra.mxu1 %v4070_v53  ;;  %v4088_v59 = vld [vmem:[%s5100_s4 + $0x64] ss:$8 sps:$4 sm:$0xff]   ;;  %v4102_v51 = vld [vmem:[%s5100_s4 + $0x74] ss:$8 sps:$4 sm:$0xff]  }
 0x20f   :  { %5166 = vst [vmem:[#allocation30_spill] sm:$0xff] %v4088_v59  ;;  %701 = vmatprep.subr.bf16.mxu1 %v4078_v57  ;;  %5168 = vst [vmem:[#allocation32_spill] sm:$0xff] %v4102_v51 }
 0x210   :  { %v585_v52 = vadd.f32 %v581_v49, %v579_v48  ;;  %v4083_v48 = vld [vmem:[%s5100_s4 + $0x50] ss:$8 sps:$4 sm:$0xff]   ;;  %v4096_v49 = vld [vmem:[%s5100_s4 + $0x60] ss:$8 sps:$4 sm:$0xff]  }
 0x211   :  { %5165 = vst [vmem:[#allocation29_spill] sm:$0xff] %v4083_v48  ;;  %5167 = vst [vmem:[#allocation31_spill] sm:$0xff] %v4096_v49 }
 0x212   :  { %v588_v25 = vrot.slane %v585_v52, 7  ;;  %702 = vmatpush1.bf16.msra.mxu1 %v4083_v48  ;;  %v4108_v52 = vld [vmem:[%s5100_s4 + $0x70] ss:$8 sps:$4 sm:$0xff]  }
 0x213   :  { %703 = vmatprep.subr.bf16.mxu1 %v4088_v59  ;;  %5169 = vst [vmem:[#allocation33_spill] sm:$0xff] %v4108_v52 }
 0x214   :  { %v589_v32 = vsel %vm554_vm1, %v588_v25, %v584_v54 }
 0x215   :  { %591 = vrot.lane.b32.xlu0 %v589_v32, %s3622_s3 }
 0x216   :  { %704 = vmatpush1.bf16.msra.mxu1 %v4096_v49 }
 0x217   :  { %705 = vmatprep.subr.bf16.mxu1 %v4102_v51 }
 0x21a   :  { %706 = vmatpush1.bf16.msra.mxu1 %v4108_v52 }
 0x21b   :  { %811 = vmatprep.subr.bf16.mxu1 %v3792_v5 }
 0x262   :  { %v397_v0 = vpop.f32.mrb[0].mxu1 }
 0x263   :  { %v399_v31 = vpop.f32.mrb[1].mxu1 }
 0x264   :  { %v401_v1 = vpop.f32.mrb[2].mxu1 }
 0x265   :  { %v402_v49 = vpop.f32.mrb[3].mxu1  ;;  %v5171_v1 = vsub.s32 0, %v3891_v23 }
 0x287   :  { %v592_v54 = vpop.permute.xlu0 %591 }
 0x288   :  { %v4115_v25 = vsel %vm133_vm2, %v589_v32, %v592_v54  ;;  %v5170_v32 = vmov 0  }
 0x289   :  { %3100 = vtanh.f32 %v4115_v25 }
 0x293   :  { %v3101_v59 = vpop.eup %3100 }
 0x294   :  { %v596_v48 = vrot.slane %v3101_v59, 1  ;;  %v599_v57 = vmul.f32 %v3101_v59, %v3099_v44 }
 0x296   :  { %v600_v53 = vmul.f32 %v3097_v39, %v596_v48  ;;  %v601_v51 = vpack.c.bf16 %v599_v57, %v599_v57 }
 0x298   :  { %v602_v61 = vpack.c.bf16 %v600_v53, %v600_v53  ;;  %v605_v45 = vunpack.c.l.b16 %v601_v51 }
 0x29a   :  { %v606_v52 = vunpack.c.l.b16 %v602_v61 }
 0x29c   :  { %v607_v5 = vrot.slane %v606_v52, 7 }
 0x29e   :  { %v608_v60 = vsel %vm554_vm1, %v607_v5, %v605_v45  ;;  %v4156_v5 = vrot.slane %v3893_v24, %v5171_v1 }
 0x29f   :  { %v609_v30 = vpack.c.b16 %v608_v60, %v608_v60 }
 0x2a0   :  { %5172 = vst [vmem:[#allocation34_spill] sm:$0xff] %v4156_v5 }
 0x2a1   :  { %724 = vmatmul.mubr.bf16.vlgmr.msra.gmra.mrb[4].mxu1 %v609_v30 }
 0x2a2   :  { %812 = vmatpush1.bf16.msra.mxu1 %v3797_v6  ;;  %843 = vmatprep.mubr.bf16.mxu1 %v5170_v32 }
 0x2a3   :  { %813 = vmatprep.subr.bf16.mxu1 %v3804_v7 }
 0x2a6   :  { %814 = vmatpush1.bf16.msra.mxu1 %v3810_v8 }
 0x2a7   :  { %815 = vmatprep.subr.bf16.mxu1 %v3817_v9 }
 0x2aa   :  { %816 = vmatpush1.bf16.msra.mxu1 %v3823_v10 }
 0x2ab   :  { %817 = vmatprep.subr.bf16.mxu1 %v3829_v11 }
 0x2ae   :  { %818 = vmatpush1.bf16.msra.mxu1 %v3836_v13 }
 0x2af   :  { %819 = vmatprep.subr.bf16.mxu1 %v3841_v14 }
 0x2b2   :  { %820 = vmatpush1.bf16.msra.mxu1 %v3848_v15 }
 0x2b3   :  { %821 = vmatprep.subr.bf16.mxu1 %v3853_v16 }
 0x2b6   :  { %822 = vmatpush1.bf16.msra.mxu1 %v3860_v17 }
 0x2b7   :  { %823 = vmatprep.subr.bf16.mxu1 %v3865_v18 }
 0x2ba   :  { %824 = vmatpush1.bf16.msra.mxu1 %v3873_v19 }
 0x2bb   :  { %825 = vmatprep.subr.bf16.mxu1 %v3879_v20 }
 0x2be   :  { %826 = vmatpush1.bf16.msra.mxu1 %v3885_v21 }
 0x2bf   :  { %1009 = vmatprep.subr.bf16.mxu1 %v3925_v55 }
 0x2c1   :  { %844 = vmatmul.mubr.bf16.vlgmr.msra.gmra.mrb[8].mxu1 %v609_v30 }
 0x2c2   :  { %1010 = vmatpush1.bf16.msra.mxu1 %v3927_v56  ;;  %1041 = vmatprep.mubr.bf16.mxu1 %v5170_v32 }
 0x2c3   :  { %1011 = vmatprep.subr.bf16.mxu1 %v3929_v58 }
 0x2c6   :  { %1012 = vmatpush1.bf16.msra.mxu1 %v3940_v62 }
 0x2c7   :  { %1013 = vmatprep.subr.bf16.mxu1 %v3946_v63 }
 0x2ca   :  { %1014 = vmatpush1.bf16.msra.mxu1 %v3950_v2 }
 0x2cb   :  { %1015 = vmatprep.subr.bf16.mxu1 %v3954_v3 }
 0x2ce   :  { %1016 = vmatpush1.bf16.msra.mxu1 %v3958_v4 }
 0x2cf   :  { %1017 = vmatprep.subr.bf16.mxu1 %v3962_v12 }
 0x2d2   :  { %1018 = vmatpush1.bf16.msra.mxu1 %v3966_v22 }
 0x2d3   :  { %1019 = vmatprep.subr.bf16.mxu1 %v3970_v27 }
 0x2d6   :  { %1020 = vmatpush1.bf16.msra.mxu1 %v3974_v29 }
 0x2d7   :  { %1021 = vmatprep.subr.bf16.mxu1 %v3978_v33 }
 0x2da   :  { %1022 = vmatpush1.bf16.msra.mxu1 %v3982_v35 }
 0x2db   :  { %1023 = vmatprep.subr.bf16.mxu1 %v3986_v37 }
 0x2de   :  { %1024 = vmatpush1.bf16.msra.mxu1 %v3990_v38 }
 0x2df   :  { %1189 = vmatprep.subr.bf16.mxu1 %v3997_v40 }
 0x374   :  { %v725_v30 = vpop.f32.mrb[4].mxu1 }
 0x375   :  { %v726_v39 = vadd.f32 %v725_v30, %v397_v0  ;;  %v727_v60 = vpop.f32.mrb[5].mxu1 }
 0x376   :  { %v728_v44 = vadd.f32 %v727_v60, %v399_v31  ;;  %v729_v45 = vpop.f32.mrb[6].mxu1 }
 0x377   :  { %v743_v61 = vadd.f32 %v4156_v5, %v726_v39  ;;  %v730_v53 = vpop.f32.mrb[7].mxu1 }
 0x379   :  { %v2833_v57 = vmul.f32 -1.442695, %v743_v61 }
 0x37b   :  { %3102 = vpow2.f32 %v2833_v57 }
 0x37c   :  { %3104 = vtanh.f32 %v743_v61 }
 0x385   :  { %v3103_v48 = vpop.eup %3102 }
 0x386   :  { %v748_v59 = vadd.f32 1.0, %v3103_v48  ;;  %v3105_v49 = vpop.eup %3104 }
 0x388   :  { %3106 = vrcp.f32 %v748_v59 }
 0x392   :  { %v3107_v51 = vpop.eup %3106 }
 0x393   :  { %v752_v23 = vsel %vm133_vm2, %v3107_v51, %v3105_v49 }
 0x394   :  { %v845_v24 = vpop.f32.mrb[8].mxu1  ;;  %759 = vrot.lane.b32.xlu1 %v752_v23, %s3622_s3 }
 0x395   :  { %v854_v0 = vrot.slane %v845_v24, 7  ;;  %v862_v31 = vadd.f32 %v845_v24, %v3916_v36  ;;  %v847_v52 = vpop.f32.mrb[9].mxu1 }
 0x396   :  { %v849_v54 = vpop.f32.mrb[10].mxu1 }
 0x397   :  { %v860_v1 = vadd.f32 %v854_v0, %v3914_v34  ;;  %v2836_v30 = vmul.f32 -1.442695, %v862_v31  ;;  %v850_v39 = vpop.f32.mrb[11].mxu1 }
 0x399   :  { %v2835_v60 = vmul.f32 -1.442695, %v860_v1  ;;  %3108 = vpow2.f32 %v2836_v30 }
 0x39b   :  { %3110 = vpow2.f32 %v2835_v60 }
 0x39c   :  { %3112 = vtanh.f32 %v860_v1  ;;  %v744_v1 = vadd.f32 %v3899_v26, %v728_v44 }
 0x39e   :  { %v2834_v60 = vmul.f32 -1.442695, %v744_v1 }
 0x3a3   :  { %v3109_v45 = vpop.eup %3108 }
 0x3a4   :  { %v871_v57 = vadd.f32 1.0, %v3109_v45 }
 0x3a5   :  { %v3111_v61 = vpop.eup %3110 }
 0x3a6   :  { %v870_v53 = vadd.f32 1.0, %v3111_v61  ;;  %v3113_v48 = vpop.eup %3112  ;;  %v855_v61 = vrot.slane %v847_v52, 7 }
 0x3a7   :  { %v885_v59 = vrot.slane %v3113_v48, 1 }
 0x3a8   :  { %3114 = vrcp.f32 %v870_v53 }
 0x3a9   :  { %3116 = vtanh.f32 %v862_v31 }
 0x3aa   :  { %3118 = vrcp.f32 %v871_v57  ;;  %v861_v57 = vadd.f32 %v855_v61, %v4032_v47  ;;  %v905_v61 = vrot.slane %v4115_v25, 7 }
 0x3ab   :  { %3120 = vpow2.f32 %v2834_v60 }
 0x3b2   :  { %v3115_v49 = vpop.eup %3114 }
 0x3b3   :  { %v3117_v51 = vpop.eup %3116  ;;  %v880_v24 = vrot.slane %v3115_v49, 1 }
 0x3b4   :  { %v3119_v54 = vpop.eup %3118  ;;  %v886_v39 = vsel %vm554_vm1, %v3117_v51, %v885_v59  ;;  %v863_v59 = vadd.f32 %v847_v52, %v4029_v46 }
 0x3b5   :  { %v881_v0 = vsel %vm554_vm1, %v3119_v54, %v880_v24  ;;  %v3121_v31 = vpop.eup %3120  ;;  %v2837_v54 = vmul.f32 -1.442695, %v861_v57 }
 0x3b6   :  { %v888_v30 = vsel %vm133_vm2, %v881_v0, %v886_v39  ;;  %v756_v45 = vadd.f32 1.0, %v3121_v31  ;;  %v2838_v0 = vmul.f32 -1.442695, %v863_v59 }
 0x3b7   :  { %901 = vrot.lane.b32.xlu1 %v888_v30, %s3622_s3 }
 0x3b8   :  { %3122 = vrcp.f32 %v756_v45 }
 0x3b9   :  { %3124 = vpow2.f32 %v2837_v54 }
 0x3ba   :  { %3126 = vpow2.f32 %v2838_v0 }
 0x3c2   :  { %v3123_v53 = vpop.eup %3122 }
 0x3c3   :  { %v762_v49 = vmul.f32 0.0, %v3123_v53  ;;  %v3125_v44 = vpop.eup %3124 }
 0x3c4   :  { %v3127_v39 = vpop.eup %3126  ;;  %v895_v1 = vadd.f32 1.0, %v3125_v44 }
 0x3c5   :  { %v896_v60 = vadd.f32 1.0, %v3127_v39 }
 0x3c6   :  { %3128 = vrcp.f32 %v895_v1 }
 0x3c7   :  { %3130 = vrcp.f32 %v896_v60 }
 0x3d0   :  { %v3129_v31 = vpop.eup %3128 }
 0x3d1   :  { %v908_v52 = vmul.f32 %v3129_v31, %v905_v61  ;;  %v5176_v61 = vld [vmem:[#allocation26_spill] sm:$0xff] }
 0x406   :  { %v760_v48 = vpop.permute.xlu1 %759 }
 0x407   :  { %v761_v24 = vmul.f32 %v760_v48, %v752_v23  ;;  %v3131_v48 = vpop.eup %3130 }
 0x408   :  { %v909_v57 = vmul.f32 %v3131_v48, %v4115_v25  ;;  %v5173_v25 = vld [vmem:[#allocation23_spill] sm:$0xff] }
 0x409   :  { %v763_v51 = vadd.f32 %v762_v49, %v761_v24 }
 0x40b   :  { %764 = vrot.lane.b32.xlu0 %v763_v51, %s3622_s3 }
 0x429   :  { %v902_v45 = vpop.permute.xlu1 %901 }
 0x42a   :  { %v903_v23 = vmul.f32 %v902_v45, %v888_v30  ;;  %v5175_v45 = vld [vmem:[#allocation25_spill] sm:$0xff] }
 0x42c   :  { %v911_v49 = vrot.slane %v903_v23, 7  ;;  %v915_v59 = vadd.f32 %v909_v57, %v903_v23  ;;  %v5178_v23 = vld [vmem:[#allocation28_spill] sm:$0xff] }
 0x42e   :  { %v914_v24 = vadd.f32 %v911_v49, %v908_v52  ;;  %v5179_v52 = vld [vmem:[#allocation29_spill] sm:$0xff]  ;;  %v5180_v49 = vld [vmem:[#allocation30_spill] sm:$0xff] }
 0x430   :  { %v918_v54 = vrot.slane %v914_v24, 1 }
 0x432   :  { %v919_v0 = vsel %vm554_vm1, %v915_v59, %v918_v54  ;;  %v5181_v59 = vld [vmem:[#allocation31_spill] sm:$0xff]  ;;  %v5182_v54 = vld [vmem:[#allocation32_spill] sm:$0xff] }
 0x433   :  { %921 = vrot.lane.b32.xlu1 %v919_v0, %s3622_s3 }
 0x47d   :  { %v765_v44 = vpop.permute.xlu0 %764 }
 0x47e   :  { %v4179_v39 = vsel %vm133_vm2, %v763_v51, %v765_v44  ;;  %v5174_v51 = vld [vmem:[#allocation24_spill] sm:$0xff]  ;;  %v5183_v44 = vld [vmem:[#allocation33_spill] sm:$0xff] }
 0x47f   :  { %3132 = vtanh.f32 %v4179_v39 }
 0x489   :  { %v3133_v30 = vpop.eup %3132 }
 0x48a   :  { %v768_v1 = vmul.f32 %v3133_v30, %v3123_v53  ;;  %v5177_v53 = vld [vmem:[#allocation27_spill] sm:$0xff]  ;;  %v5184_v30 = vld [vmem:[#allocation20_spill] sm:$0xff] }
 0x48c   :  { %v769_v60 = vpack.c.bf16 %v768_v1, %v768_v1 }
 0x48e   :  { %803 = vmatmul.mubr.bf16.vlgmr.msra.gmra.mrb[8].mxu0 %v769_v60 }
 0x48f   :  { %942 = vmatpush1.bf16.msra.mxu0 %v4004_v41  ;;  %973 = vmatprep.mubr.bf16.mxu0 %v5170_v32 }
 0x490   :  { %943 = vmatprep.subr.bf16.mxu0 %v4011_v42 }
 0x493   :  { %944 = vmatpush1.bf16.msra.mxu0 %v4019_v43 }
 0x494   :  { %945 = vmatprep.subr.bf16.mxu0 %v4040_v28 }
 0x497   :  { %946 = vmatpush1.bf16.msra.mxu0 %v5173_v25 }
 0x498   :  { %947 = vmatprep.subr.bf16.mxu0 %v5174_v51 }
 0x49b   :  { %948 = vmatpush1.bf16.msra.mxu0 %v5175_v45 }
 0x49c   :  { %949 = vmatprep.subr.bf16.mxu0 %v5176_v61 }
 0x49f   :  { %950 = vmatpush1.bf16.msra.mxu0 %v5177_v53 }
 0x4a0   :  { %951 = vmatprep.subr.bf16.mxu0 %v5178_v23 }
 0x4a3   :  { %952 = vmatpush1.bf16.msra.mxu0 %v5179_v52 }
 0x4a4   :  { %953 = vmatprep.subr.bf16.mxu0 %v5180_v49 }
 0x4a5   :  { %v922_v57 = vpop.permute.xlu1 %921 }
 0x4a6   :  { %v4197_v24 = vsel %vm133_vm2, %v919_v0, %v922_v57 }
 0x4a7   :  { %3134 = vtanh.f32 %v4197_v24  ;;  %954 = vmatpush1.bf16.msra.mxu0 %v5181_v59 }
 0x4a8   :  { %955 = vmatprep.subr.bf16.mxu0 %v5182_v54 }
 0x4ab   :  { %956 = vmatpush1.bf16.msra.mxu0 %v5183_v44 }
 0x4ac   :  { %1050 = vmatprep.subr.bf16.mxu0 %v5184_v30 }
 0x4b1   :  { %v3135_v1 = vpop.eup %3134 }
 0x4b2   :  { %v926_v60 = vrot.slane %v3135_v1, 7  ;;  %v930_v52 = vmul.f32 %v3135_v1, %v3131_v48 }
 0x4b4   :  { %v929_v23 = vmul.f32 %v3129_v31, %v926_v60  ;;  %v932_v53 = vpack.c.bf16 %v930_v52, %v930_v52 }
 0x4b6   :  { %v931_v49 = vpack.c.bf16 %v929_v23, %v929_v23  ;;  %v936_v45 = vunpack.c.l.b16 %v932_v53 }
 0x4b8   :  { %v935_v61 = vunpack.c.l.b16 %v931_v49 }
 0x4ba   :  { %v937_v0 = vrot.slane %v935_v61, 1 }
 0x4bc   :  { %v938_v57 = vsel %vm554_vm1, %v936_v45, %v937_v0 }
 0x4bd   :  { %v939_v51 = vpack.c.b16 %v938_v57, %v938_v57 }
 0x4bf   :  { %974 = vmatmul.mubr.bf16.vlgmr.msra.gmra.mrb[12].mxu0 %v939_v51 }
 0x4c0   :  { %1051 = vmatpush1.bf16.msra.mxu0 %v3797_v6  ;;  %1082 = vmatprep.mubr.bf16.mxu0 %v5170_v32 }
 0x4c1   :  { %1052 = vmatprep.subr.bf16.mxu0 %v3804_v7 }
 0x4c4   :  { %1053 = vmatpush1.bf16.msra.mxu0 %v3810_v8 }
 0x4c5   :  { %1054 = vmatprep.subr.bf16.mxu0 %v3817_v9 }
 0x4c8   :  { %1055 = vmatpush1.bf16.msra.mxu0 %v3823_v10 }
 0x4c9   :  { %1056 = vmatprep.subr.bf16.mxu0 %v3829_v11 }
 0x4cc   :  { %1057 = vmatpush1.bf16.msra.mxu0 %v3836_v13 }
 0x4cd   :  { %1058 = vmatprep.subr.bf16.mxu0 %v3841_v14 }
 0x4d0   :  { %1059 = vmatpush1.bf16.msra.mxu0 %v3848_v15 }
 0x4d1   :  { %1060 = vmatprep.subr.bf16.mxu0 %v3853_v16 }
 0x4d4   :  { %1061 = vmatpush1.bf16.msra.mxu0 %v3860_v17 }
 0x4d5   :  { %1062 = vmatprep.subr.bf16.mxu0 %v3865_v18 }
 0x4d8   :  { %1063 = vmatpush1.bf16.msra.mxu0 %v3873_v19 }
 0x4d9   :  { %1064 = vmatprep.subr.bf16.mxu0 %v3879_v20 }
 0x4dc   :  { %1065 = vmatpush1.bf16.msra.mxu0 %v3885_v21 }
 0x4dd   :  { %1257 = vmatprep.subr.bf16.mxu0 %v3925_v55 }
 0x4df   :  { %1083 = vmatmul.mubr.bf16.vlgmr.msra.gmra.mrb[16].mxu0 %v939_v51 }
 0x4e0   :  { %1258 = vmatpush1.bf16.msra.mxu0 %v3927_v56  ;;  %1289 = vmatprep.mubr.bf16.mxu0 %v5170_v32 }
 0x4e1   :  { %1259 = vmatprep.subr.bf16.mxu0 %v3929_v58 }
 0x4e4   :  { %1260 = vmatpush1.bf16.msra.mxu0 %v3940_v62 }
 0x4e5   :  { %1261 = vmatprep.subr.bf16.mxu0 %v3946_v63 }
 0x4e8   :  { %1262 = vmatpush1.bf16.msra.mxu0 %v3950_v2 }
 0x4e9   :  { %1263 = vmatprep.subr.bf16.mxu0 %v3954_v3 }
 0x4ec   :  { %1264 = vmatpush1.bf16.msra.mxu0 %v3958_v4 }
 0x4ed   :  { %1265 = vmatprep.subr.bf16.mxu0 %v3962_v12 }
 0x4f0   :  { %1266 = vmatpush1.bf16.msra.mxu0 %v3966_v22 }
 0x4f1   :  { %1267 = vmatprep.subr.bf16.mxu0 %v3970_v27 }
 0x4f4   :  { %1268 = vmatpush1.bf16.msra.mxu0 %v3974_v29 }
 0x4f5   :  { %1269 = vmatprep.subr.bf16.mxu0 %v3978_v33 }
 0x4f8   :  { %1270 = vmatpush1.bf16.msra.mxu0 %v3982_v35 }
 0x4f9   :  { %1271 = vmatprep.subr.bf16.mxu0 %v3986_v37 }
 0x4fc   :  { %1272 = vmatpush1.bf16.msra.mxu0 %v3990_v38 }
 0x4fd   :  { %1437 = vmatprep.subr.bf16.mxu0 %v3997_v40 }
 0x561   :  { %v804_v6 = vpop.f32.mrb[8].mxu0 }
 0x562   :  { %v806_v7 = vpop.f32.mrb[9].mxu0 }
 0x563   :  { %v808_v8 = vpop.f32.mrb[10].mxu0 }
 0x564   :  { %v809_v9 = vpop.f32.mrb[11].mxu0 }
 0x592   :  { %v975_v10 = vpop.f32.mrb[12].mxu0 }
 0x593   :  { %v976_v11 = vadd.f32 %v975_v10, %v804_v6  ;;  %v977_v13 = vpop.f32.mrb[13].mxu0 }
 0x594   :  { %v978_v14 = vadd.f32 %v977_v13, %v806_v7  ;;  %v979_v15 = vpop.f32.mrb[14].mxu0 }
 0x595   :  { %v982_v16 = vadd.f32 %v976_v11, %v4156_v5  ;;  %v980_v17 = vpop.f32.mrb[15].mxu0 }
 0x597   :  { %v2839_v18 = vmul.f32 -1.442695, %v982_v16 }
 0x599   :  { %3136 = vpow2.f32 %v2839_v18 }
 0x59a   :  { %3138 = vtanh.f32 %v982_v16 }
 0x5a3   :  { %v3137_v19 = vpop.eup %3136 }
 0x5a4   :  { %v987_v20 = vadd.f32 1.0, %v3137_v19  ;;  %v3139_v21 = vpop.eup %3138 }
 0x5a6   :  { %3140 = vrcp.f32 %v987_v20 }
 0x5b0   :  { %v3141_v31 = vpop.eup %3140 }
 0x5b1   :  { %v991_v48 = vsel %vm133_vm2, %v3141_v31, %v3139_v21  ;;  %v983_v21 = vadd.f32 %v978_v14, %v3899_v26 }
 0x5b2   :  { %v1084_v51 = vpop.f32.mrb[16].mxu0  ;;  %998 = vrot.lane.b32.xlu0 %v991_v48, %s3622_s3 }
 0x5b3   :  { %v1093_v45 = vrot.slane %v1084_v51, 6  ;;  %v1095_v61 = vrot.slane %v1084_v51, 7  ;;  %v1086_v53 = vpop.f32.mrb[17].mxu0  ;;  %v2840_v31 = vmul.f32 -1.442695, %v983_v21 }
 0x5b4   :  { %v1088_v23 = vpop.f32.mrb[18].mxu0 }
 0x5b5   :  { %v1101_v52 = vadd.f32 %v1093_v45, %v3914_v34  ;;  %v1103_v49 = vadd.f32 %v1095_v61, %v3916_v36  ;;  %v1089_v30 = vpop.f32.mrb[19].mxu0  ;;  %v1094_v61 = vrot.slane %v1086_v53, 6  ;;  %v1096_v23 = vrot.slane %v1086_v53, 7 }
 0x5b7   :  { %v2841_v1 = vmul.f32 -1.442695, %v1101_v52  ;;  %v2842_v60 = vmul.f32 -1.442695, %v1103_v49 }
 0x5b9   :  { %3142 = vpow2.f32 %v2841_v1  ;;  %v1104_v1 = vadd.f32 %v1096_v23, %v4029_v46 }
 0x5ba   :  { %3144 = vpow2.f32 %v2842_v60 }
 0x5bb   :  { %3146 = vtanh.f32 %v1101_v52 }
 0x5bc   :  { %3148 = vtanh.f32 %v1103_v49  ;;  %v1102_v49 = vadd.f32 %v1094_v61, %v4032_v47 }
 0x5c3   :  { %v3143_v0 = vpop.eup %3142 }
 0x5c4   :  { %v3145_v57 = vpop.eup %3144  ;;  %v1111_v6 = vadd.f32 1.0, %v3143_v0 }
 0x5c5   :  { %v1112_v7 = vadd.f32 1.0, %v3145_v57  ;;  %v3147_v8 = vpop.eup %3146 }
 0x5c6   :  { %3150 = vrcp.f32 %v1111_v6  ;;  %v3149_v9 = vpop.eup %3148  ;;  %v1127_v11 = vrot.slane %v3147_v8, 2  ;;  %v2843_v6 = vmul.f32 -1.442695, %v1102_v49 }
 0x5c7   :  { %3152 = vrcp.f32 %v1112_v7  ;;  %v1128_v13 = vrot.slane %v3149_v9, 1  ;;  %v2844_v7 = vmul.f32 -1.442695, %v1104_v1  ;;  %v5185_v1 = vld [vmem:[#allocation24_spill] sm:$0xff] }
 0x5c8   :  { %3154 = vpow2.f32 %v2840_v31 }
 0x5c9   :  { %v1129_v19 = vsel %vm554_vm1, %v1128_v13, %v1127_v11 }
 0x5d0   :  { %v3151_v10 = vpop.eup %3150 }
 0x5d1   :  { %v3153_v15 = vpop.eup %3152  ;;  %v1121_v16 = vrot.slane %v3151_v10, 2 }
 0x5d2   :  { %v1122_v17 = vrot.slane %v3153_v15, 1  ;;  %v3155_v51 = vpop.eup %3154  ;;  %v1148_v15 = vrot.slane %v4197_v24, 6 }
 0x5d3   :  { %v995_v45 = vadd.f32 1.0, %v3155_v51 }
 0x5d4   :  { %v1123_v18 = vsel %vm554_vm1, %v1122_v17, %v1121_v16 }
 0x5d5   :  { %v1131_v20 = vsel %vm133_vm2, %v1123_v18, %v1129_v19  ;;  %3156 = vrcp.f32 %v995_v45 }
 0x5d6   :  { %1144 = vrot.lane.b32.xlu1 %v1131_v20, %s3622_s3  ;;  %3158 = vpow2.f32 %v2843_v6  ;;  %v5191_v6 = vld [vmem:[#allocation30_spill] sm:$0xff] }
 0x5d7   :  { %3160 = vpow2.f32 %v2844_v7 }
 0x5df   :  { %v3157_v52 = vpop.eup %3156 }
 0x5e0   :  { %v1001_v60 = vmul.f32 %v3157_v52, %v4179_v39  ;;  %v3159_v14 = vpop.eup %3158  ;;  %v1149_v39 = vrot.slane %v4197_v24, 7 }
 0x5e1   :  { %v3161_v8 = vpop.eup %3160  ;;  %v1138_v9 = vadd.f32 1.0, %v3159_v14 }
 0x5e2   :  { %v1139_v53 = vadd.f32 1.0, %v3161_v8 }
 0x5e3   :  { %3162 = vrcp.f32 %v1138_v9 }
 0x5e4   :  { %3164 = vrcp.f32 %v1139_v53 }
 0x5ed   :  { %v3163_v10 = vpop.eup %3162 }
 0x5ee   :  { %v3165_v11 = vpop.eup %3164  ;;  %v1152_v16 = vmul.f32 %v3163_v10, %v1148_v15 }
 0x5ef   :  { %v1153_v17 = vmul.f32 %v3165_v11, %v1149_v39 }
 0x624   :  { %v999_v30 = vpop.permute.xlu0 %998 }
 0x625   :  { %v1000_v0 = vmul.f32 %v999_v30, %v991_v48 }
 0x627   :  { %v1002_v57 = vadd.f32 %v1001_v60, %v1000_v0  ;;  %v5186_v60 = vld [vmem:[#allocation25_spill] sm:$0xff]  ;;  %v5187_v0 = vld [vmem:[#allocation26_spill] sm:$0xff] }
 0x629   :  { %1003 = vrot.lane.b32.xlu0 %v1002_v57, %s3622_s3 }
 0x648   :  { %v1145_v13 = vpop.permute.xlu1 %1144 }
 0x649   :  { %v1146_v48 = vmul.f32 %v1145_v13, %v1131_v20 }
 0x64b   :  { %v1155_v18 = vrot.slane %v1146_v48, 6  ;;  %v1156_v19 = vrot.slane %v1146_v48, 7 }
 0x64d   :  { %v1159_v21 = vadd.f32 %v1155_v18, %v1152_v16  ;;  %v1160_v31 = vadd.f32 %v1156_v19, %v1153_v17  ;;  %v4295_v19 = vld [vmem:[%s5098_s2] ss:$8 sps:$4 sm:$0xff]  }
 0x64f   :  { %v1163_v51 = vrot.slane %v1159_v21, 2  ;;  %v1164_v45 = vrot.slane %v1160_v31, 1  ;;  %v4314_v21 = vld [vmem:[%s5098_s2 + $0x24] ss:$8 sps:$4 sm:$0xff]   ;;  %v4320_v31 = vld [vmem:[%s5098_s2 + $0x20] ss:$8 sps:$4 sm:$0xff]  }
 0x651   :  { %v1165_v61 = vsel %vm554_vm1, %v1164_v45, %v1163_v51  ;;  %v4326_v51 = vld [vmem:[%s5098_s2 + $0x34] ss:$8 sps:$4 sm:$0xff]   ;;  %v4332_v45 = vld [vmem:[%s5098_s2 + $0x30] ss:$8 sps:$4 sm:$0xff]  }
 0x652   :  { %1167 = vrot.lane.b32.xlu1 %v1165_v61, %s3622_s3 }
 0x69b   :  { %v1004_v23 = vpop.permute.xlu0 %1003 }
 0x69c   :  { %v4261_v49 = vsel %vm133_vm2, %v1002_v57, %v1004_v23  ;;  %v5189_v57 = vld [vmem:[#allocation28_spill] sm:$0xff] }
 0x69d   :  { %3166 = vtanh.f32 %v4261_v49  ;;  %v4344_v23 = vld [vmem:[%s5098_s2 + $0x40] ss:$8 sps:$4 sm:$0xff]  }
 0x6a7   :  { %v3167_v24 = vpop.eup %3166 }
 0x6a8   :  { %v1007_v20 = vmul.f32 %v3167_v24, %v3157_v52  ;;  %v5188_v52 = vld [vmem:[#allocation27_spill] sm:$0xff]  ;;  %v4350_v24 = vld [vmem:[%s5098_s2 + $0x54] ss:$8 sps:$4 sm:$0xff]  }
 0x6aa   :  { %v1008_v30 = vpack.c.bf16 %v1007_v20, %v1007_v20  ;;  %v4356_v20 = vld [vmem:[%s5098_s2 + $0x50] ss:$8 sps:$4 sm:$0xff]  }
 0x6ac   :  { %1042 = vmatmul.mubr.bf16.vlgmr.msra.gmra.mrb[12].mxu1 %v1008_v30  ;;  %v4362_v30 = vld [vmem:[%s5098_s2 + $0x64] ss:$8 sps:$4 sm:$0xff]  }
 0x6ad   :  { %1190 = vmatpush1.bf16.msra.mxu1 %v4004_v41  ;;  %1221 = vmatprep.mubr.bf16.mxu1 %v5170_v32  ;;  %v5190_v41 = vld [vmem:[#allocation29_spill] sm:$0xff] }
 0x6ae   :  { %1191 = vmatprep.subr.bf16.mxu1 %v4011_v42 }
 0x6b1   :  { %1192 = vmatpush1.bf16.msra.mxu1 %v4019_v43 }
 0x6b2   :  { %1193 = vmatprep.subr.bf16.mxu1 %v4040_v28  ;;  %v4288_v28 = vld [vmem:[%s5098_s2 + $0x4] ss:$8 sps:$4 sm:$0xff]  }
 0x6b5   :  { %1194 = vmatpush1.bf16.msra.mxu1 %v5173_v25 }
 0x6b6   :  { %1195 = vmatprep.subr.bf16.mxu1 %v5185_v1  ;;  %v4368_v1 = vld [vmem:[%s5098_s2 + $0x60] ss:$8 sps:$4 sm:$0xff]  }
 0x6b9   :  { %1196 = vmatpush1.bf16.msra.mxu1 %v5186_v60  ;;  %v4374_v60 = vld [vmem:[%s5098_s2 + $0x74] ss:$8 sps:$4 sm:$0xff]  }
 0x6ba   :  { %1197 = vmatprep.subr.bf16.mxu1 %v5187_v0  ;;  %v4380_v0 = vld [vmem:[%s5098_s2 + $0x70] ss:$8 sps:$4 sm:$0xff]  }
 0x6bd   :  { %1198 = vmatpush1.bf16.msra.mxu1 %v5188_v52 }
 0x6be   :  { %1199 = vmatprep.subr.bf16.mxu1 %v5189_v57 }
 0x6c1   :  { %1200 = vmatpush1.bf16.msra.mxu1 %v5190_v41 }
 0x6c2   :  { %1201 = vmatprep.subr.bf16.mxu1 %v5191_v6 }
 0x6c4   :  { %v1168_v42 = vpop.permute.xlu1 %1167 }
 0x6c5   :  { %v4279_v43 = vsel %vm133_vm2, %v1165_v61, %v1168_v42  ;;  %1202 = vmatpush1.bf16.msra.mxu1 %v5181_v59  ;;  %v4338_v61 = vld [vmem:[%s5098_s2 + $0x44] ss:$8 sps:$4 sm:$0xff]  }
 0x6c6   :  { %3168 = vtanh.f32 %v4279_v43  ;;  %1203 = vmatprep.subr.bf16.mxu1 %v5182_v54 }
 0x6c9   :  { %1204 = vmatpush1.bf16.msra.mxu1 %v5183_v44 }
 0x6ca   :  { %1298 = vmatprep.subr.bf16.mxu1 %v4288_v28 }
 0x6d0   :  { %v3169_v25 = vpop.eup %3168 }
 0x6d1   :  { %v1172_v7 = vrot.slane %v3169_v25, 6  ;;  %v1173_v14 = vrot.slane %v3169_v25, 7 }
 0x6d3   :  { %v1176_v8 = vmul.f32 %v3163_v10, %v1172_v7  ;;  %v1177_v9 = vmul.f32 %v3165_v11, %v1173_v14  ;;  %v4302_v10 = vld [vmem:[%s5098_s2 + $0x14] ss:$8 sps:$4 sm:$0xff]   ;;  %v4308_v11 = vld [vmem:[%s5098_s2 + $0x10] ss:$8 sps:$4 sm:$0xff]  }
 0x6d5   :  { %v1178_v53 = vpack.c.bf16 %v1176_v8, %v1176_v8  ;;  %v1179_v13 = vpack.c.bf16 %v1177_v9, %v1177_v9 }
 0x6d7   :  { %v1182_v15 = vunpack.c.l.b16 %v1178_v53  ;;  %v1183_v39 = vunpack.c.l.b16 %v1179_v13 }
 0x6d9   :  { %v1184_v48 = vrot.slane %v1182_v15, 2  ;;  %v1185_v16 = vrot.slane %v1183_v39, 1 }
 0x6db   :  { %v1186_v17 = vsel %vm554_vm1, %v1185_v16, %v1184_v48 }
 0x6dc   :  { %v1187_v18 = vpack.c.b16 %v1186_v17, %v1186_v17 }
 0x6de   :  { %1222 = vmatmul.mubr.bf16.vlgmr.msra.gmra.mrb[16].mxu1 %v1187_v18 }
 0x6df   :  { %1299 = vmatpush1.bf16.msra.mxu1 %v4295_v19  ;;  %1330 = vmatprep.mubr.bf16.mxu1 %v5170_v32 }
 0x6e0   :  { %1300 = vmatprep.subr.bf16.mxu1 %v4302_v10 }
 0x6e3   :  { %1301 = vmatpush1.bf16.msra.mxu1 %v4308_v11 }
 0x6e4   :  { %1302 = vmatprep.subr.bf16.mxu1 %v4314_v21 }
 0x6e7   :  { %1303 = vmatpush1.bf16.msra.mxu1 %v4320_v31 }
 0x6e8   :  { %1304 = vmatprep.subr.bf16.mxu1 %v4326_v51 }
 0x6eb   :  { %1305 = vmatpush1.bf16.msra.mxu1 %v4332_v45 }
 0x6ec   :  { %1306 = vmatprep.subr.bf16.mxu1 %v4338_v61 }
 0x6ef   :  { %1307 = vmatpush1.bf16.msra.mxu1 %v4344_v23 }
 0x6f0   :  { %1308 = vmatprep.subr.bf16.mxu1 %v4350_v24 }
 0x6f3   :  { %1309 = vmatpush1.bf16.msra.mxu1 %v4356_v20 }
 0x6f4   :  { %1310 = vmatprep.subr.bf16.mxu1 %v4362_v30 }
 0x6f7   :  { %1311 = vmatpush1.bf16.msra.mxu1 %v4368_v1 }
 0x6f8   :  { %1312 = vmatprep.subr.bf16.mxu1 %v4374_v60 }
 0x6fb   :  { %1313 = vmatpush1.bf16.msra.mxu1 %v4380_v0 }
 0x6fc   :  { %1505 = vmatprep.subr.bf16.mxu1 %v3925_v55 }
 0x6fe   :  { %1331 = vmatmul.mubr.bf16.vlgmr.msra.gmra.mrb[20].mxu1 %v1187_v18 }
 0x6ff   :  { %1506 = vmatpush1.bf16.msra.mxu1 %v3927_v56  ;;  %1537 = vmatprep.mubr.bf16.mxu1 %v5170_v32 }
 0x700   :  { %1507 = vmatprep.subr.bf16.mxu1 %v3929_v58 }
 0x703   :  { %1508 = vmatpush1.bf16.msra.mxu1 %v3940_v62 }
 0x704   :  { %1509 = vmatprep.subr.bf16.mxu1 %v3946_v63 }
 0x707   :  { %1510 = vmatpush1.bf16.msra.mxu1 %v3950_v2 }
 0x708   :  { %1511 = vmatprep.subr.bf16.mxu1 %v3954_v3 }
 0x70b   :  { %1512 = vmatpush1.bf16.msra.mxu1 %v3958_v4 }
 0x70c   :  { %1513 = vmatprep.subr.bf16.mxu1 %v3962_v12 }
 0x70f   :  { %1514 = vmatpush1.bf16.msra.mxu1 %v3966_v22 }
 0x710   :  { %1515 = vmatprep.subr.bf16.mxu1 %v3970_v27 }
 0x713   :  { %1516 = vmatpush1.bf16.msra.mxu1 %v3974_v29 }
 0x714   :  { %1517 = vmatprep.subr.bf16.mxu1 %v3978_v33 }
 0x717   :  { %1518 = vmatpush1.bf16.msra.mxu1 %v3982_v35 }
 0x718   :  { %1519 = vmatprep.subr.bf16.mxu1 %v3986_v37 }
 0x71b   :  { %1520 = vmatpush1.bf16.msra.mxu1 %v3990_v38 }
 0x71c   :  { %1685 = vmatprep.subr.bf16.mxu1 %v3997_v40 }
 0x77f   :  { %v1043_v55 = vpop.f32.mrb[12].mxu1 }
 0x780   :  { %v1045_v56 = vpop.f32.mrb[13].mxu1 }
 0x781   :  { %v1047_v58 = vpop.f32.mrb[14].mxu1 }
 0x782   :  { %v1048_v62 = vpop.f32.mrb[15].mxu1 }
 0x7b1   :  { %v1223_v63 = vpop.f32.mrb[16].mxu1 }
 0x7b2   :  { %v1224_v2 = vadd.f32 %v1223_v63, %v1043_v55  ;;  %v1225_v3 = vpop.f32.mrb[17].mxu1 }
 0x7b3   :  { %v1226_v4 = vadd.f32 %v1225_v3, %v1045_v56  ;;  %v1227_v12 = vpop.f32.mrb[18].mxu1 }
 0x7b4   :  { %v1230_v22 = vadd.f32 %v1224_v2, %v4156_v5  ;;  %v1228_v27 = vpop.f32.mrb[19].mxu1 }
 0x7b6   :  { %v2845_v29 = vmul.f32 -1.442695, %v1230_v22 }
 0x7b8   :  { %3170 = vpow2.f32 %v2845_v29  ;;  %v1231_v29 = vadd.f32 %v1226_v4, %v3899_v26 }
 0x7b9   :  { %3172 = vtanh.f32 %v1230_v22 }
 0x7c2   :  { %v3171_v33 = vpop.eup %3170 }
 0x7c3   :  { %v1235_v35 = vadd.f32 1.0, %v3171_v33  ;;  %v3173_v37 = vpop.eup %3172  ;;  %v2846_v33 = vmul.f32 -1.442695, %v1231_v29 }
 0x7c5   :  { %3174 = vrcp.f32 %v1235_v35 }
 0x7cf   :  { %v3175_v38 = vpop.eup %3174 }
 0x7d0   :  { %v1239_v40 = vsel %vm133_vm2, %v3175_v38, %v3173_v37 }
 0x7d1   :  { %v1332_v52 = vpop.f32.mrb[20].mxu1  ;;  %1246 = vrot.lane.b32.xlu0 %v1239_v40, %s3622_s3 }
 0x7d2   :  { %v1341_v42 = vrot.slane %v1332_v52, 5  ;;  %v1343_v25 = vrot.slane %v1332_v52, 6  ;;  %v1334_v7 = vpop.f32.mrb[21].mxu1 }
 0x7d3   :  { %v1336_v14 = vpop.f32.mrb[22].mxu1  ;;  %v1342_v38 = vrot.slane %v1334_v7, 5  ;;  %v1344_v52 = vrot.slane %v1334_v7, 6 }
 0x7d4   :  { %v1349_v8 = vadd.f32 %v1341_v42, %v3914_v34  ;;  %v1351_v9 = vadd.f32 %v1343_v25, %v3916_v36  ;;  %v1337_v53 = vpop.f32.mrb[23].mxu1 }
 0x7d5   :  { %v1350_v25 = vadd.f32 %v1342_v38, %v4032_v47 }
 0x7d6   :  { %v2847_v13 = vmul.f32 -1.442695, %v1349_v8  ;;  %v2848_v15 = vmul.f32 -1.442695, %v1351_v9 }
 0x7d8   :  { %3176 = vpow2.f32 %v2847_v13 }
 0x7d9   :  { %3178 = vpow2.f32 %v2848_v15  ;;  %v2849_v15 = vmul.f32 -1.442695, %v1350_v25  ;;  %v4436_v25 = vld [vmem:[%s5100_s4 + $0x14] ss:$8 sps:$4 sm:$0xff]  }
 0x7da   :  { %3180 = vtanh.f32 %v1349_v8  ;;  %v1352_v8 = vadd.f32 %v1344_v52, %v4029_v46  ;;  %v4429_v52 = vld [vmem:[%s5100_s4] ss:$8 sps:$4 sm:$0xff]  }
 0x7db   :  { %3182 = vtanh.f32 %v1351_v9 }
 0x7e2   :  { %v3177_v39 = vpop.eup %3176 }
 0x7e3   :  { %v3179_v48 = vpop.eup %3178  ;;  %v1359_v16 = vadd.f32 1.0, %v3177_v39  ;;  %v2850_v39 = vmul.f32 -1.442695, %v1352_v8  ;;  %v4454_v8 = vld [vmem:[%s5100_s4 + $0x20] ss:$8 sps:$4 sm:$0xff]  }
 0x7e4   :  { %v1360_v17 = vadd.f32 1.0, %v3179_v48  ;;  %v3181_v18 = vpop.eup %3180 }
 0x7e5   :  { %3184 = vrcp.f32 %v1359_v16  ;;  %v3183_v55 = vpop.eup %3182  ;;  %v1375_v58 = vrot.slane %v3181_v18, 3 }
 0x7e6   :  { %3186 = vrcp.f32 %v1360_v17  ;;  %v1376_v62 = vrot.slane %v3183_v55, 2 }
 0x7e7   :  { %3188 = vpow2.f32 %v2846_v33 }
 0x7e8   :  { %v1377_v22 = vsel %vm554_vm1, %v1376_v62, %v1375_v58 }
 0x7ef   :  { %v3185_v56 = vpop.eup %3184 }
 0x7f0   :  { %v3187_v63 = vpop.eup %3186  ;;  %v1369_v2 = vrot.slane %v3185_v56, 3  ;;  %v1396_v56 = vrot.slane %v4279_v43, 5 }
 0x7f1   :  { %v1370_v3 = vrot.slane %v3187_v63, 2  ;;  %v3189_v35 = vpop.eup %3188 }
 0x7f2   :  { %v1243_v37 = vadd.f32 1.0, %v3189_v35 }
 0x7f3   :  { %v1371_v12 = vsel %vm554_vm1, %v1370_v3, %v1369_v2 }
 0x7f4   :  { %v1379_v27 = vsel %vm133_vm2, %v1371_v12, %v1377_v22  ;;  %3190 = vrcp.f32 %v1243_v37 }
 0x7f5   :  { %1392 = vrot.lane.b32.xlu1 %v1379_v27, %s3622_s3  ;;  %3192 = vpow2.f32 %v2849_v15  ;;  %v4478_v15 = vld [vmem:[%s5100_s4 + $0x40] ss:$8 sps:$4 sm:$0xff]  }
 0x7f6   :  { %3194 = vpow2.f32 %v2850_v39 }
 0x7fe   :  { %v3191_v42 = vpop.eup %3190 }
 0x7ff   :  { %v1249_v9 = vmul.f32 %v3191_v42, %v4261_v49  ;;  %v3193_v4 = vpop.eup %3192  ;;  %v1397_v49 = vrot.slane %v4279_v43, 6 }
 0x800   :  { %v3195_v48 = vpop.eup %3194  ;;  %v1386_v16 = vadd.f32 1.0, %v3193_v4 }
 0x801   :  { %v1387_v7 = vadd.f32 1.0, %v3195_v48 }
 0x802   :  { %3196 = vrcp.f32 %v1386_v16 }
 0x803   :  { %3198 = vrcp.f32 %v1387_v7 }
 0x80c   :  { %v3197_v17 = vpop.eup %3196 }
 0x80d   :  { %v3199_v18 = vpop.eup %3198  ;;  %v1400_v58 = vmul.f32 %v3197_v17, %v1396_v56 }
 0x80e   :  { %v1401_v62 = vmul.f32 %v3199_v18, %v1397_v49 }
 0x843   :  { %v1247_v14 = vpop.permute.xlu0 %1246 }
 0x844   :  { %v1248_v53 = vmul.f32 %v1247_v14, %v1239_v40  ;;  %v4448_v14 = vld [vmem:[%s5100_s4 + $0x24] ss:$8 sps:$4 sm:$0xff]  }
 0x846   :  { %v1250_v13 = vadd.f32 %v1249_v9, %v1248_v53  ;;  %v4460_v9 = vld [vmem:[%s5100_s4 + $0x34] ss:$8 sps:$4 sm:$0xff]   ;;  %v4466_v53 = vld [vmem:[%s5100_s4 + $0x30] ss:$8 sps:$4 sm:$0xff]  }
 0x848   :  { %1251 = vrot.lane.b32.xlu0 %v1250_v13, %s3622_s3 }
 0x867   :  { %v1393_v55 = vpop.permute.xlu1 %1392 }
 0x868   :  { %v1394_v40 = vmul.f32 %v1393_v55, %v1379_v27 }
 0x86a   :  { %v1403_v63 = vrot.slane %v1394_v40, 5  ;;  %v1404_v2 = vrot.slane %v1394_v40, 6 }
 0x86c   :  { %v1407_v3 = vadd.f32 %v1403_v63, %v1400_v58  ;;  %v1408_v12 = vadd.f32 %v1404_v2, %v1401_v62  ;;  %v4523_v63 = vld [vmem:[#allocation7 + $0x24] ss:$8 sps:$4 sm:$0xff]   ;;  %v4526_v2 = vld [vmem:[#allocation7 + $0x20] ss:$8 sps:$4 sm:$0xff]  }
 0x86e   :  { %v1411_v22 = vrot.slane %v1407_v3, 3  ;;  %v1412_v29 = vrot.slane %v1408_v12, 2  ;;  %v4529_v3 = vld [vmem:[#allocation7 + $0x34] ss:$8 sps:$4 sm:$0xff]   ;;  %v4532_v12 = vld [vmem:[#allocation7 + $0x30] ss:$8 sps:$4 sm:$0xff]  }
 0x870   :  { %v1413_v33 = vsel %vm554_vm1, %v1412_v29, %v1411_v22  ;;  %v4535_v22 = vld [vmem:[#allocation7 + $0x44] ss:$8 sps:$4 sm:$0xff]   ;;  %v4538_v29 = vld [vmem:[#allocation7 + $0x40] ss:$8 sps:$4 sm:$0xff]  }
 0x871   :  { %1415 = vrot.lane.b32.xlu1 %v1413_v33, %s3622_s3 }
 0x8ba   :  { %v1252_v35 = vpop.permute.xlu0 %1251 }
 0x8bb   :  { %v4423_v37 = vsel %vm133_vm2, %v1250_v13, %v1252_v35  ;;  %v4472_v13 = vld [vmem:[%s5100_s4 + $0x44] ss:$8 sps:$4 sm:$0xff]   ;;  %v4544_v35 = vld [vmem:[#allocation7 + $0x50] ss:$8 sps:$4 sm:$0xff]  }
 0x8bc   :  { %3200 = vtanh.f32 %v4423_v37 }
 0x8c6   :  { %v3201_v43 = vpop.eup %3200 }
 0x8c7   :  { %v1255_v27 = vmul.f32 %v3201_v43, %v3191_v42  ;;  %v4442_v42 = vld [vmem:[%s5100_s4 + $0x10] ss:$8 sps:$4 sm:$0xff]   ;;  %v4547_v43 = vld [vmem:[#allocation7 + $0x64] ss:$8 sps:$4 sm:$0xff]  }
 0x8c8   :  { %5192 = vst [vmem:[#allocation23_spill] sm:$0xff] %v4547_v43 }
 0x8c9   :  { %v1256_v38 = vpack.c.bf16 %v1255_v27, %v1255_v27  ;;  %v4550_v27 = vld [vmem:[#allocation7 + $0x60] ss:$8 sps:$4 sm:$0xff]  }
 0x8ca   :  { %5193 = vst [vmem:[#allocation31_spill] sm:$0xff] %v4550_v27 }
 0x8cb   :  { %1290 = vmatmul.mubr.bf16.vlgmr.msra.gmra.mrb[20].mxu0 %v1256_v38  ;;  %v4553_v38 = vld [vmem:[#allocation7 + $0x74] ss:$8 sps:$4 sm:$0xff]  }
 0x8cc   :  { %1438 = vmatpush1.bf16.msra.mxu0 %v4429_v52  ;;  %1469 = vmatprep.mubr.bf16.mxu0 %v5170_v32  ;;  %5194 = vst [vmem:[#allocation32_spill] sm:$0xff] %v4553_v38 }
 0x8cd   :  { %1439 = vmatprep.subr.bf16.mxu0 %v4436_v25 }
 0x8d0   :  { %1440 = vmatpush1.bf16.msra.mxu0 %v4442_v42 }
 0x8d1   :  { %1441 = vmatprep.subr.bf16.mxu0 %v4448_v14 }
 0x8d4   :  { %1442 = vmatpush1.bf16.msra.mxu0 %v4454_v8 }
 0x8d5   :  { %1443 = vmatprep.subr.bf16.mxu0 %v4460_v9 }
 0x8d8   :  { %1444 = vmatpush1.bf16.msra.mxu0 %v4466_v53 }
 0x8d9   :  { %1445 = vmatprep.subr.bf16.mxu0 %v4472_v13 }
 0x8dc   :  { %1446 = vmatpush1.bf16.msra.mxu0 %v4478_v15 }
 0x8dd   :  { %1447 = vmatprep.subr.bf16.mxu0 %v5189_v57 }
 0x8e0   :  { %1448 = vmatpush1.bf16.msra.mxu0 %v5190_v41 }
 0x8e1   :  { %1449 = vmatprep.subr.bf16.mxu0 %v5191_v6 }
 0x8e3   :  { %v1416_v39 = vpop.permute.xlu1 %1415 }
 0x8e4   :  { %v4486_v4 = vsel %vm133_vm2, %v1413_v33, %v1416_v39  ;;  %1450 = vmatpush1.bf16.msra.mxu0 %v5181_v59  ;;  %v4541_v33 = vld [vmem:[#allocation7 + $0x54] ss:$8 sps:$4 sm:$0xff]   ;;  %v4556_v39 = vld [vmem:[#allocation7 + $0x70] ss:$8 sps:$4 sm:$0xff]  }
 0x8e5   :  { %3202 = vtanh.f32 %v4486_v4  ;;  %1451 = vmatprep.subr.bf16.mxu0 %v5182_v54  ;;  %v4510_v54 = vld [vmem:[#allocation7 + $0x4] ss:$8 sps:$4 sm:$0xff]   ;;  %5195 = vst [vmem:[#allocation33_spill] sm:$0xff] %v4556_v39 }
 0x8e8   :  { %1452 = vmatpush1.bf16.msra.mxu0 %v5183_v44  ;;  %v4513_v44 = vld [vmem:[#allocation7] ss:$8 sps:$4 sm:$0xff]  }
 0x8e9   :  { %1546 = vmatprep.subr.bf16.mxu0 %v4288_v28 }
 0x8ef   :  { %v3203_v57 = vpop.eup %3202 }
 0x8f0   :  { %v1420_v48 = vrot.slane %v3203_v57, 5  ;;  %v1421_v41 = vrot.slane %v3203_v57, 6  ;;  %v4562_v57 = vld [vmem:[%s5100_s4 + $0x4] ss:$8 sps:$4 sm:$0xff]  }
 0x8f1   :  { %5196 = vst [vmem:[#allocation20_spill] sm:$0xff] %v4562_v57 }
 0x8f2   :  { %v1424_v16 = vmul.f32 %v3197_v17, %v1420_v48  ;;  %v1425_v6 = vmul.f32 %v3199_v18, %v1421_v41  ;;  %v4517_v17 = vld [vmem:[#allocation7 + $0x14] ss:$8 sps:$4 sm:$0xff]   ;;  %v4520_v18 = vld [vmem:[#allocation7 + $0x10] ss:$8 sps:$4 sm:$0xff]  }
 0x8f4   :  { %v1426_v7 = vpack.c.bf16 %v1424_v16, %v1424_v16  ;;  %v1427_v55 = vpack.c.bf16 %v1425_v6, %v1425_v6 }
 0x8f6   :  { %v1430_v56 = vunpack.c.l.b16 %v1426_v7  ;;  %v1431_v49 = vunpack.c.l.b16 %v1427_v55 }
 0x8f8   :  { %v1432_v40 = vrot.slane %v1430_v56, 3  ;;  %v1433_v58 = vrot.slane %v1431_v49, 2 }
 0x8fa   :  { %v1434_v59 = vsel %vm554_vm1, %v1433_v58, %v1432_v40 }
 0x8fb   :  { %v1435_v62 = vpack.c.b16 %v1434_v59, %v1434_v59 }
 0x8fd   :  { %1470 = vmatmul.mubr.bf16.vlgmr.msra.gmra.mrb[24].mxu0 %v1435_v62 }
 0x8fe   :  { %1547 = vmatpush1.bf16.msra.mxu0 %v4295_v19  ;;  %1578 = vmatprep.mubr.bf16.mxu0 %v5170_v32 }
 0x8ff   :  { %1548 = vmatprep.subr.bf16.mxu0 %v4302_v10 }
 0x902   :  { %1549 = vmatpush1.bf16.msra.mxu0 %v4308_v11 }
 0x903   :  { %1550 = vmatprep.subr.bf16.mxu0 %v4314_v21 }
 0x906   :  { %1551 = vmatpush1.bf16.msra.mxu0 %v4320_v31 }
 0x907   :  { %1552 = vmatprep.subr.bf16.mxu0 %v4326_v51 }
 0x90a   :  { %1553 = vmatpush1.bf16.msra.mxu0 %v4332_v45 }
 0x90b   :  { %1554 = vmatprep.subr.bf16.mxu0 %v4338_v61 }
 0x90e   :  { %1555 = vmatpush1.bf16.msra.mxu0 %v4344_v23 }
 0x90f   :  { %1556 = vmatprep.subr.bf16.mxu0 %v4350_v24 }
 0x912   :  { %1557 = vmatpush1.bf16.msra.mxu0 %v4356_v20 }
 0x913   :  { %1558 = vmatprep.subr.bf16.mxu0 %v4362_v30 }
 0x916   :  { %1559 = vmatpush1.bf16.msra.mxu0 %v4368_v1 }
 0x917   :  { %1560 = vmatprep.subr.bf16.mxu0 %v4374_v60 }
 0x91a   :  { %1561 = vmatpush1.bf16.msra.mxu0 %v4380_v0 }
 0x91b   :  { %1753 = vmatprep.subr.bf16.mxu0 %v4510_v54 }
 0x91d   :  { %1579 = vmatmul.mubr.bf16.vlgmr.msra.gmra.mrb[28].mxu0 %v1435_v62 }
 0x91e   :  { %1754 = vmatpush1.bf16.msra.mxu0 %v4513_v44  ;;  %1785 = vmatprep.mubr.bf16.mxu0 %v5170_v32 }
 0x91f   :  { %1755 = vmatprep.subr.bf16.mxu0 %v4517_v17 }
 0x922   :  { %1756 = vmatpush1.bf16.msra.mxu0 %v4520_v18 }
 0x923   :  { %1757 = vmatprep.subr.bf16.mxu0 %v4523_v63 }
 0x926   :  { %1758 = vmatpush1.bf16.msra.mxu0 %v4526_v2 }
 0x927   :  { %1759 = vmatprep.subr.bf16.mxu0 %v4529_v3 }
 0x92a   :  { %1760 = vmatpush1.bf16.msra.mxu0 %v4532_v12 }
 0x92b   :  { %1761 = vmatprep.subr.bf16.mxu0 %v4535_v22 }
 0x92e   :  { %1762 = vmatpush1.bf16.msra.mxu0 %v4538_v29 }
 0x92f   :  { %1763 = vmatprep.subr.bf16.mxu0 %v4541_v33 }
 0x932   :  { %1764 = vmatpush1.bf16.msra.mxu0 %v4544_v35 }
 0x933   :  { %1765 = vmatprep.subr.bf16.mxu0 %v4547_v43 }
 0x936   :  { %1766 = vmatpush1.bf16.msra.mxu0 %v4550_v27 }
 0x937   :  { %1767 = vmatprep.subr.bf16.mxu0 %v4553_v38 }
 0x93a   :  { %1768 = vmatpush1.bf16.msra.mxu0 %v4556_v39 }
 0x93b   :  { %1933 = vmatprep.subr.bf16.mxu0 %v4562_v57 }
 0x99e   :  { %v1291_v48 = vpop.f32.mrb[20].mxu0 }
 0x99f   :  { %v1293_v41 = vpop.f32.mrb[21].mxu0 }
 0x9a0   :  { %v1295_v16 = vpop.f32.mrb[22].mxu0 }
 0x9a1   :  { %v1296_v6 = vpop.f32.mrb[23].mxu0 }
 0x9d0   :  { %v1471_v7 = vpop.f32.mrb[24].mxu0 }
 0x9d1   :  { %v1472_v55 = vadd.f32 %v1471_v7, %v1291_v48  ;;  %v1473_v56 = vpop.f32.mrb[25].mxu0 }
 0x9d2   :  { %v1474_v49 = vadd.f32 %v1473_v56, %v1293_v41  ;;  %v1475_v40 = vpop.f32.mrb[26].mxu0 }
 0x9d3   :  { %v1478_v58 = vadd.f32 %v1472_v55, %v4156_v5  ;;  %v1476_v59 = vpop.f32.mrb[27].mxu0 }
 0x9d5   :  { %v2851_v62 = vmul.f32 -1.442695, %v1478_v58 }
 0x9d7   :  { %3204 = vpow2.f32 %v2851_v62 }
 0x9d8   :  { %3206 = vtanh.f32 %v1478_v58 }
 0x9e1   :  { %v3205_v39 = vpop.eup %3204 }
 0x9e2   :  { %v1483_v38 = vadd.f32 1.0, %v3205_v39  ;;  %v3207_v27 = vpop.eup %3206 }
 0x9e4   :  { %3208 = vrcp.f32 %v1483_v38 }
 0x9ee   :  { %v3209_v57 = vpop.eup %3208 }
 0x9ef   :  { %v1487_v16 = vsel %vm133_vm2, %v3209_v57, %v3207_v27 }
 0x9f0   :  { %v1580_v6 = vpop.f32.mrb[28].mxu0  ;;  %1494 = vrot.lane.b32.xlu0 %v1487_v16, %s3622_s3 }
 0x9f1   :  { %v1589_v48 = vrot.slane %v1580_v6, 4  ;;  %v1591_v41 = vrot.slane %v1580_v6, 5  ;;  %v1582_v7 = vpop.f32.mrb[29].mxu0 }
 0x9f2   :  { %v1584_v56 = vpop.f32.mrb[30].mxu0 }
 0x9f3   :  { %v1597_v55 = vadd.f32 %v1589_v48, %v3914_v34  ;;  %v1599_v40 = vadd.f32 %v1591_v41, %v3916_v36  ;;  %v1585_v59 = vpop.f32.mrb[31].mxu0 }
 0x9f5   :  { %v2853_v39 = vmul.f32 -1.442695, %v1597_v55  ;;  %v2854_v58 = vmul.f32 -1.442695, %v1599_v40 }
 0x9f7   :  { %3210 = vpow2.f32 %v2853_v39 }
 0x9f8   :  { %3212 = vpow2.f32 %v2854_v58 }
 0x9f9   :  { %3214 = vtanh.f32 %v1597_v55 }
 0x9fa   :  { %3216 = vtanh.f32 %v1599_v40  ;;  %v1479_v40 = vadd.f32 %v1474_v49, %v3899_v26 }
 0x9fc   :  { %v2852_v58 = vmul.f32 -1.442695, %v1479_v40 }
 0xa01   :  { %v3211_v38 = vpop.eup %3210 }
 0xa02   :  { %v3213_v27 = vpop.eup %3212  ;;  %v1607_v57 = vadd.f32 1.0, %v3211_v38 }
 0xa03   :  { %v1608_v62 = vadd.f32 1.0, %v3213_v27  ;;  %v3215_v6 = vpop.eup %3214 }
 0xa04   :  { %3218 = vrcp.f32 %v1607_v57  ;;  %v3217_v5 = vpop.eup %3216  ;;  %v1623_v43 = vrot.slane %v3215_v6, 4  ;;  %v1592_v57 = vrot.slane %v1582_v7, 5 }
 0xa05   :  { %3220 = vrcp.f32 %v1608_v62  ;;  %v1624_v48 = vrot.slane %v3217_v5, 3  ;;  %v1590_v5 = vrot.slane %v1582_v7, 4 }
 0xa06   :  { %3222 = vpow2.f32 %v2852_v58 }
 0xa07   :  { %v1625_v39 = vsel %vm554_vm1, %v1624_v48, %v1623_v43  ;;  %v1600_v43 = vadd.f32 %v1592_v57, %v4029_v46 }
 0xa0e   :  { %v3219_v56 = vpop.eup %3218 }
 0xa0f   :  { %v3221_v34 = vpop.eup %3220  ;;  %v1617_v41 = vrot.slane %v3219_v56, 4 }
 0xa10   :  { %v1618_v59 = vrot.slane %v3221_v34, 3  ;;  %v3223_v38 = vpop.eup %3222  ;;  %v1598_v34 = vadd.f32 %v1590_v5, %v4032_v47  ;;  %v1644_v5 = vrot.slane %v4486_v4, 4 }
 0xa11   :  { %v1491_v27 = vadd.f32 1.0, %v3223_v38 }
 0xa12   :  { %v1619_v36 = vsel %vm554_vm1, %v1618_v59, %v1617_v41  ;;  %v2855_v41 = vmul.f32 -1.442695, %v1598_v34  ;;  %v2856_v59 = vmul.f32 -1.442695, %v1600_v43 }
 0xa13   :  { %v1627_v55 = vsel %vm133_vm2, %v1619_v36, %v1625_v39  ;;  %3224 = vrcp.f32 %v1491_v27 }
 0xa14   :  { %1640 = vrot.lane.b32.xlu1 %v1627_v55, %s3622_s3  ;;  %3226 = vpow2.f32 %v2855_v41 }
 0xa15   :  { %3228 = vpow2.f32 %v2856_v59 }
 0xa1d   :  { %v3225_v62 = vpop.eup %3224 }
 0xa1e   :  { %v1497_v56 = vmul.f32 %v3225_v62, %v4423_v37  ;;  %v3227_v49 = vpop.eup %3226  ;;  %v1645_v37 = vrot.slane %v4486_v4, 5 }
 0xa1f   :  { %v3229_v39 = vpop.eup %3228  ;;  %v1634_v40 = vadd.f32 1.0, %v3227_v49 }
 0xa20   :  { %v1635_v7 = vadd.f32 1.0, %v3229_v39 }
 0xa21   :  { %3230 = vrcp.f32 %v1634_v40 }
 0xa22   :  { %3232 = vrcp.f32 %v1635_v7 }
 0xa2b   :  { %v3231_v58 = vpop.eup %3230 }
 0xa2c   :  { %v3233_v38 = vpop.eup %3232  ;;  %v1648_v57 = vmul.f32 %v3231_v58, %v1644_v5 }
 0xa2d   :  { %v1649_v34 = vmul.f32 %v3233_v38, %v1645_v37 }
 0xa62   :  { %v1495_v6 = vpop.permute.xlu0 %1494 }
 0xa63   :  { %v1496_v36 = vmul.f32 %v1495_v6, %v1487_v16 }
 0xa65   :  { %v1498_v48 = vadd.f32 %v1497_v56, %v1496_v36 }
 0xa67   :  { %1499 = vrot.lane.b32.xlu0 %v1498_v48, %s3622_s3 }
 0xa86   :  { %v1641_v27 = vpop.permute.xlu1 %1640 }
 0xa87   :  { %v1642_v16 = vmul.f32 %v1641_v27, %v1627_v55  ;;  %v4615_v27 = vld [vmem:[%s5100_s4 + $0x64] ss:$8 sps:$4 sm:$0xff]  }
 0xa89   :  { %v1651_v6 = vrot.slane %v1642_v16, 4  ;;  %v1652_v43 = vrot.slane %v1642_v16, 5  ;;  %v4625_v16 = vld [vmem:[%s5100_s4 + $0x60] ss:$8 sps:$4 sm:$0xff]  }
 0xa8b   :  { %v1655_v56 = vadd.f32 %v1651_v6, %v1648_v57  ;;  %v1656_v36 = vadd.f32 %v1652_v43, %v1649_v34  ;;  %v4632_v57 = vld [vmem:[%s5100_s4 + $0x74] ss:$8 sps:$4 sm:$0xff]   ;;  %v4638_v34 = vld [vmem:[%s5100_s4 + $0x70] ss:$8 sps:$4 sm:$0xff]  }
 0xa8c   :  { %5197 = vst [vmem:[#allocation24_spill] sm:$0xff] %v4632_v57 }
 0xa8d   :  { %v1659_v41 = vrot.slane %v1655_v56, 4  ;;  %v1660_v59 = vrot.slane %v1656_v36, 3 }
 0xa8f   :  { %v1661_v49 = vsel %vm554_vm1, %v1660_v59, %v1659_v41 }
 0xa90   :  { %1663 = vrot.lane.b32.xlu1 %v1661_v49, %s3622_s3 }
 0xad9   :  { %v1500_v39 = vpop.permute.xlu0 %1499 }
 0xada   :  { %v4587_v40 = vsel %vm133_vm2, %v1498_v48, %v1500_v39  ;;  %v4609_v48 = vld [vmem:[%s5100_s4 + $0x50] ss:$8 sps:$4 sm:$0xff]  }
 0xadb   :  { %3234 = vtanh.f32 %v4587_v40 }
 0xae5   :  { %v3235_v4 = vpop.eup %3234 }
 0xae6   :  { %v1503_v55 = vmul.f32 %v3235_v4, %v3225_v62  ;;  %v4603_v62 = vld [vmem:[%s5100_s4 + $0x54] ss:$8 sps:$4 sm:$0xff]  }
 0xae8   :  { %v1504_v7 = vpack.c.bf16 %v1503_v55, %v1503_v55 }
 0xaea   :  { %1538 = vmatmul.mubr.bf16.vlgmr.msra.gmra.mrb[24].mxu1 %v1504_v7 }
 0xaeb   :  { %1686 = vmatpush1.bf16.msra.mxu1 %v4429_v52  ;;  %1717 = vmatprep.mubr.bf16.mxu1 %v5170_v32 }
 0xaec   :  { %1687 = vmatprep.subr.bf16.mxu1 %v4436_v25 }
 0xaef   :  { %1688 = vmatpush1.bf16.msra.mxu1 %v4442_v42 }
 0xaf0   :  { %1689 = vmatprep.subr.bf16.mxu1 %v4448_v14 }
 0xaf3   :  { %1690 = vmatpush1.bf16.msra.mxu1 %v4454_v8 }
 0xaf4   :  { %1691 = vmatprep.subr.bf16.mxu1 %v4460_v9 }
 0xaf7   :  { %1692 = vmatpush1.bf16.msra.mxu1 %v4466_v53 }
 0xaf8   :  { %1693 = vmatprep.subr.bf16.mxu1 %v4472_v13 }
 0xafb   :  { %1694 = vmatpush1.bf16.msra.mxu1 %v4478_v15 }
 0xafc   :  { %1695 = vmatprep.subr.bf16.mxu1 %v4603_v62 }
 0xaff   :  { %1696 = vmatpush1.bf16.msra.mxu1 %v4609_v48 }
 0xb00   :  { %1697 = vmatprep.subr.bf16.mxu1 %v4615_v27 }
 0xb02   :  { %v1664_v5 = vpop.permute.xlu1 %1663 }
 0xb03   :  { %v4620_v37 = vsel %vm133_vm2, %v1661_v49, %v1664_v5  ;;  %1698 = vmatpush1.bf16.msra.mxu1 %v4625_v16 }
 0xb04   :  { %3236 = vtanh.f32 %v4620_v37  ;;  %1699 = vmatprep.subr.bf16.mxu1 %v4632_v57 }
 0xb07   :  { %1700 = vmatpush1.bf16.msra.mxu1 %v4638_v34 }
 0xb08   :  { %1794 = vmatprep.subr.bf16.mxu1 %v4288_v28  ;;  %v5198_v28 = vld [vmem:[#allocation23_spill] sm:$0xff] }
 0xb0e   :  { %v3237_v6 = vpop.eup %3236 }
 0xb0f   :  { %v1668_v43 = vrot.slane %v3237_v6, 4  ;;  %v1669_v56 = vrot.slane %v3237_v6, 5 }
 0xb11   :  { %v1672_v36 = vmul.f32 %v3231_v58, %v1668_v43  ;;  %v1673_v41 = vmul.f32 %v3233_v38, %v1669_v56 }
 0xb13   :  { %v1674_v59 = vpack.c.bf16 %v1672_v36, %v1672_v36  ;;  %v1675_v49 = vpack.c.bf16 %v1673_v41, %v1673_v41 }
 0xb15   :  { %v1678_v39 = vunpack.c.l.b16 %v1674_v59  ;;  %v1679_v4 = vunpack.c.l.b16 %v1675_v49 }
 0xb17   :  { %v1680_v55 = vrot.slane %v1678_v39, 4  ;;  %v1681_v7 = vrot.slane %v1679_v4, 3 }
 0xb19   :  { %v1682_v5 = vsel %vm554_vm1, %v1681_v7, %v1680_v55  ;;  %v5204_v55 = vld [vmem:[#allocation21_spill] sm:$0xff] }
 0xb1a   :  { %v1683_v57 = vpack.c.b16 %v1682_v5, %v1682_v5  ;;  %v5205_v5 = vld [vmem:[#allocation22_spill] sm:$0xff] }
 0xb1c   :  { %1718 = vmatmul.mubr.bf16.vlgmr.msra.gmra.mrb[28].mxu1 %v1683_v57 }
 0xb1d   :  { %1795 = vmatpush1.bf16.msra.mxu1 %v4295_v19  ;;  %1826 = vmatprep.mubr.bf16.mxu1 %v5170_v32  ;;  %v5199_v19 = vld [vmem:[#allocation31_spill] sm:$0xff] }
 0xb1e   :  { %1796 = vmatprep.subr.bf16.mxu1 %v4302_v10  ;;  %v5200_v10 = vld [vmem:[#allocation32_spill] sm:$0xff] }
 0xb21   :  { %1797 = vmatpush1.bf16.msra.mxu1 %v4308_v11  ;;  %v5201_v11 = vld [vmem:[#allocation33_spill] sm:$0xff] }
 0xb22   :  { %1798 = vmatprep.subr.bf16.mxu1 %v4314_v21  ;;  %v5202_v21 = vld [vmem:[#allocation20_spill] sm:$0xff] }
 0xb25   :  { %1799 = vmatpush1.bf16.msra.mxu1 %v4320_v31 }
 0xb26   :  { %1800 = vmatprep.subr.bf16.mxu1 %v4326_v51 }
 0xb29   :  { %1801 = vmatpush1.bf16.msra.mxu1 %v4332_v45 }
 0xb2a   :  { %1802 = vmatprep.subr.bf16.mxu1 %v4338_v61 }
 0xb2d   :  { %1803 = vmatpush1.bf16.msra.mxu1 %v4344_v23 }
 0xb2e   :  { %1804 = vmatprep.subr.bf16.mxu1 %v4350_v24 }
 0xb31   :  { %1805 = vmatpush1.bf16.msra.mxu1 %v4356_v20 }
 0xb32   :  { %1806 = vmatprep.subr.bf16.mxu1 %v4362_v30 }
 0xb35   :  { %1807 = vmatpush1.bf16.msra.mxu1 %v4368_v1 }
 0xb36   :  { %1808 = vmatprep.subr.bf16.mxu1 %v4374_v60  ;;  %v5203_v60 = vld [vmem:[#allocation34_spill] sm:$0xff] }
 0xb39   :  { %1809 = vmatpush1.bf16.msra.mxu1 %v4380_v0 }
 0xb3a   :  { %2001 = vmatprep.subr.bf16.mxu1 %v4510_v54 }
 0xb3c   :  { %1827 = vmatmul.mubr.bf16.vlgmr.msra.gmra.mrb[32].mxu1 %v1683_v57 }
 0xb3d   :  { %2002 = vmatpush1.bf16.msra.mxu1 %v4513_v44  ;;  %2033 = vmatprep.mubr.bf16.mxu1 %v5170_v32 }
 0xb3e   :  { %2003 = vmatprep.subr.bf16.mxu1 %v4517_v17 }
 0xb41   :  { %2004 = vmatpush1.bf16.msra.mxu1 %v4520_v18 }
 0xb42   :  { %2005 = vmatprep.subr.bf16.mxu1 %v4523_v63 }
 0xb45   :  { %2006 = vmatpush1.bf16.msra.mxu1 %v4526_v2 }
 0xb46   :  { %2007 = vmatprep.subr.bf16.mxu1 %v4529_v3 }
 0xb49   :  { %2008 = vmatpush1.bf16.msra.mxu1 %v4532_v12 }
 0xb4a   :  { %2009 = vmatprep.subr.bf16.mxu1 %v4535_v22 }
 0xb4d   :  { %2010 = vmatpush1.bf16.msra.mxu1 %v4538_v29 }
 0xb4e   :  { %2011 = vmatprep.subr.bf16.mxu1 %v4541_v33 }
 0xb51   :  { %2012 = vmatpush1.bf16.msra.mxu1 %v4544_v35 }
 0xb52   :  { %2013 = vmatprep.subr.bf16.mxu1 %v5198_v28 }
 0xb55   :  { %2014 = vmatpush1.bf16.msra.mxu1 %v5199_v19 }
 0xb56   :  { %2015 = vmatprep.subr.bf16.mxu1 %v5200_v10 }
 0xb59   :  { %2016 = vmatpush1.bf16.msra.mxu1 %v5201_v11 }
 0xb5a   :  { %2181 = vmatprep.subr.bf16.mxu1 %v5202_v21 }
 0xbbd   :  { %v1539_v31 = vpop.f32.mrb[24].mxu1 }
 0xbbe   :  { %v1541_v51 = vpop.f32.mrb[25].mxu1 }
 0xbbf   :  { %v1543_v45 = vpop.f32.mrb[26].mxu1 }
 0xbc0   :  { %v1544_v61 = vpop.f32.mrb[27].mxu1 }
 0xbef   :  { %v1719_v23 = vpop.f32.mrb[28].mxu1 }
 0xbf0   :  { %v1720_v24 = vadd.f32 %v1719_v23, %v1539_v31  ;;  %v1721_v20 = vpop.f32.mrb[29].mxu1 }
 0xbf1   :  { %v1722_v30 = vadd.f32 %v1721_v20, %v1541_v51  ;;  %v1723_v1 = vpop.f32.mrb[30].mxu1 }
 0xbf2   :  { %v1726_v0 = vadd.f32 %v1720_v24, %v5203_v60  ;;  %v1724_v58 = vpop.f32.mrb[31].mxu1 }
 0xbf4   :  { %v2857_v38 = vmul.f32 -1.442695, %v1726_v0 }
 0xbf6   :  { %3238 = vpow2.f32 %v2857_v38 }
 0xbf7   :  { %3240 = vtanh.f32 %v1726_v0 }
 0xc00   :  { %v3239_v57 = vpop.eup %3238 }
 0xc01   :  { %v1731_v6 = vadd.f32 1.0, %v3239_v57  ;;  %v3241_v43 = vpop.eup %3240 }
 0xc03   :  { %3242 = vrcp.f32 %v1731_v6 }
 0xc0d   :  { %v3243_v56 = vpop.eup %3242 }
 0xc0e   :  { %v1735_v36 = vsel %vm133_vm2, %v3243_v56, %v3241_v43 }
 0xc0f   :  { %v1828_v41 = vpop.f32.mrb[32].mxu1  ;;  %1742 = vrot.lane.b32.xlu0 %v1735_v36, %s3622_s3 }
 0xc10   :  { %v1837_v59 = vrot.slane %v1828_v41, 3  ;;  %v1839_v49 = vrot.slane %v1828_v41, 4  ;;  %v1830_v39 = vpop.f32.mrb[33].mxu1 }
 0xc11   :  { %v1832_v4 = vpop.f32.mrb[34].mxu1 }
 0xc12   :  { %v1845_v7 = vadd.f32 %v1837_v59, %v5204_v55  ;;  %v1847_v31 = vadd.f32 %v1839_v49, %v5205_v5  ;;  %v1833_v51 = vpop.f32.mrb[35].mxu1 }
 0xc14   :  { %v2859_v45 = vmul.f32 -1.442695, %v1845_v7  ;;  %v2860_v61 = vmul.f32 -1.442695, %v1847_v31 }
 0xc16   :  { %3244 = vpow2.f32 %v2859_v45 }
 0xc17   :  { %3246 = vpow2.f32 %v2860_v61  ;;  %v1838_v61 = vrot.slane %v1830_v39, 3 }
 0xc18   :  { %3248 = vtanh.f32 %v1845_v7  ;;  %v1727_v7 = vadd.f32 %v1722_v30, %v3899_v26 }
 0xc19   :  { %3250 = vtanh.f32 %v1847_v31 }
 0xc1a   :  { %v2858_v31 = vmul.f32 -1.442695, %v1727_v7 }
 0xc20   :  { %v3245_v23 = vpop.eup %3244 }
 0xc21   :  { %v3247_v24 = vpop.eup %3246  ;;  %v1855_v20 = vadd.f32 1.0, %v3245_v23  ;;  %v1840_v23 = vrot.slane %v1830_v39, 4 }
 0xc22   :  { %v1856_v1 = vadd.f32 1.0, %v3247_v24  ;;  %v3249_v0 = vpop.eup %3248 }
 0xc23   :  { %3252 = vrcp.f32 %v1855_v20  ;;  %v3251_v58 = vpop.eup %3250  ;;  %v1871_v57 = vrot.slane %v3249_v0, 5  ;;  %v1846_v20 = vadd.f32 %v1838_v61, %v4032_v47  ;;  %v1848_v0 = vadd.f32 %v1840_v23, %v4029_v46 }
 0xc24   :  { %3254 = vrcp.f32 %v1856_v1  ;;  %v1872_v6 = vrot.slane %v3251_v58, 4 }
 0xc25   :  { %3256 = vpow2.f32 %v2858_v31  ;;  %v1892_v31 = vrot.slane %v4620_v37, 3 }
 0xc26   :  { %v1873_v49 = vsel %vm554_vm1, %v1872_v6, %v1871_v57  ;;  %v2861_v6 = vmul.f32 -1.442695, %v1846_v20 }
 0xc2d   :  { %v3253_v38 = vpop.eup %3252 }
 0xc2e   :  { %v3255_v43 = vpop.eup %3254  ;;  %v1865_v56 = vrot.slane %v3253_v38, 5 }
 0xc2f   :  { %v1866_v41 = vrot.slane %v3255_v43, 4  ;;  %v3257_v51 = vpop.eup %3256  ;;  %v2862_v43 = vmul.f32 -1.442695, %v1848_v0 }
 0xc30   :  { %v1739_v45 = vadd.f32 1.0, %v3257_v51 }
 0xc31   :  { %v1867_v59 = vsel %vm554_vm1, %v1866_v41, %v1865_v56 }
 0xc32   :  { %v1875_v4 = vsel %vm133_vm2, %v1867_v59, %v1873_v49  ;;  %3258 = vrcp.f32 %v1739_v45 }
 0xc33   :  { %1888 = vrot.lane.b32.xlu1 %v1875_v4, %s3622_s3  ;;  %3260 = vpow2.f32 %v2861_v6 }
 0xc34   :  { %3262 = vpow2.f32 %v2862_v43 }
 0xc3c   :  { %v3259_v24 = vpop.eup %3258 }
 0xc3d   :  { %v1745_v58 = vmul.f32 %v3259_v24, %v4587_v40  ;;  %v3261_v30 = vpop.eup %3260  ;;  %v1893_v40 = vrot.slane %v4620_v37, 4 }
 0xc3e   :  { %v3263_v56 = vpop.eup %3262  ;;  %v1882_v41 = vadd.f32 1.0, %v3261_v30 }
 0xc3f   :  { %v1883_v39 = vadd.f32 1.0, %v3263_v56 }
 0xc40   :  { %3264 = vrcp.f32 %v1882_v41 }
 0xc41   :  { %3266 = vrcp.f32 %v1883_v39 }
 0xc4a   :  { %v3265_v59 = vpop.eup %3264 }
 0xc4b   :  { %v3267_v49 = vpop.eup %3266  ;;  %v1896_v51 = vmul.f32 %v3265_v59, %v1892_v31 }
 0xc4c   :  { %v1897_v45 = vmul.f32 %v3267_v49, %v1893_v40 }
 0xc81   :  { %v1743_v1 = vpop.permute.xlu0 %1742 }
 0xc82   :  { %v1744_v38 = vmul.f32 %v1743_v1, %v1735_v36 }
 0xc84   :  { %v1746_v57 = vadd.f32 %v1745_v58, %v1744_v38 }
 0xc86   :  { %1747 = vrot.lane.b32.xlu0 %v1746_v57, %s3622_s3 }
 0xca5   :  { %v1889_v7 = vpop.permute.xlu1 %1888 }
 0xca6   :  { %v1890_v36 = vmul.f32 %v1889_v7, %v1875_v4 }
 0xca8   :  { %v1899_v61 = vrot.slane %v1890_v36, 3  ;;  %v1900_v23 = vrot.slane %v1890_v36, 4  ;;  %v4733_v36 = vld [vmem:[%s5098_s2] ss:$8 sps:$4 sm:$0xff]  }
 0xcaa   :  { %v1903_v20 = vadd.f32 %v1899_v61, %v1896_v51  ;;  %v1904_v1 = vadd.f32 %v1900_v23, %v1897_v45  ;;  %v4752_v51 = vld [vmem:[%s5098_s2 + $0x24] ss:$8 sps:$4 sm:$0xff]   ;;  %v4758_v45 = vld [vmem:[%s5098_s2 + $0x20] ss:$8 sps:$4 sm:$0xff]   ;;  %v4764_v61 = vld [vmem:[%s5098_s2 + $0x34] ss:$8 sps:$4 sm:$0xff]  }
 0xcab   :  { %v4770_v23 = vld [vmem:[%s5098_s2 + $0x30] ss:$8 sps:$4 sm:$0xff]  }
 0xcac   :  { %v1907_v0 = vrot.slane %v1903_v20, 5  ;;  %v1908_v58 = vrot.slane %v1904_v1, 4  ;;  %v4776_v20 = vld [vmem:[%s5098_s2 + $0x44] ss:$8 sps:$4 sm:$0xff]   ;;  %v4782_v1 = vld [vmem:[%s5098_s2 + $0x40] ss:$8 sps:$4 sm:$0xff]  }
 0xcae   :  { %v1909_v38 = vsel %vm554_vm1, %v1908_v58, %v1907_v0  ;;  %v4788_v0 = vld [vmem:[%s5098_s2 + $0x54] ss:$8 sps:$4 sm:$0xff]   ;;  %v4794_v58 = vld [vmem:[%s5098_s2 + $0x50] ss:$8 sps:$4 sm:$0xff]  }
 0xcaf   :  { %1911 = vrot.lane.b32.xlu1 %v1909_v38, %s3622_s3 }
 0xcf8   :  { %v1748_v6 = vpop.permute.xlu0 %1747 }
 0xcf9   :  { %v4699_v43 = vsel %vm133_vm2, %v1746_v57, %v1748_v6  ;;  %v4806_v6 = vld [vmem:[%s5098_s2 + $0x60] ss:$8 sps:$4 sm:$0xff]  }
 0xcfa   :  { %3268 = vtanh.f32 %v4699_v43 }
 0xd04   :  { %v3269_v37 = vpop.eup %3268 }
 0xd05   :  { %v1751_v4 = vmul.f32 %v3269_v37, %v3259_v24  ;;  %v4812_v37 = vld [vmem:[%s5098_s2 + $0x74] ss:$8 sps:$4 sm:$0xff]  }
 0xd07   :  { %v1752_v30 = vpack.c.bf16 %v1751_v4, %v1751_v4  ;;  %v4818_v4 = vld [vmem:[%s5098_s2 + $0x70] ss:$8 sps:$4 sm:$0xff]  }
 0xd09   :  { %1786 = vmatmul.mubr.bf16.vlgmr.msra.gmra.mrb[32].mxu0 %v1752_v30 }
 0xd0a   :  { %1934 = vmatpush1.bf16.msra.mxu0 %v4429_v52  ;;  %1965 = vmatprep.mubr.bf16.mxu0 %v5170_v32 }
 0xd0b   :  { %1935 = vmatprep.subr.bf16.mxu0 %v4436_v25 }
 0xd0e   :  { %1936 = vmatpush1.bf16.msra.mxu0 %v4442_v42  ;;  %v5206_v42 = vld [vmem:[#allocation24_spill] sm:$0xff] }
 0xd0f   :  { %1937 = vmatprep.subr.bf16.mxu0 %v4448_v14  ;;  %v4726_v14 = vld [vmem:[%s5098_s2 + $0x4] ss:$8 sps:$4 sm:$0xff]  }
 0xd12   :  { %1938 = vmatpush1.bf16.msra.mxu0 %v4454_v8 }
 0xd13   :  { %1939 = vmatprep.subr.bf16.mxu0 %v4460_v9 }
 0xd16   :  { %1940 = vmatpush1.bf16.msra.mxu0 %v4466_v53 }
 0xd17   :  { %1941 = vmatprep.subr.bf16.mxu0 %v4472_v13 }
 0xd1a   :  { %1942 = vmatpush1.bf16.msra.mxu0 %v4478_v15 }
 0xd1b   :  { %1943 = vmatprep.subr.bf16.mxu0 %v4603_v62 }
 0xd1e   :  { %1944 = vmatpush1.bf16.msra.mxu0 %v4609_v48 }
 0xd1f   :  { %1945 = vmatprep.subr.bf16.mxu0 %v4615_v27 }
 0xd21   :  { %v1912_v52 = vpop.permute.xlu1 %1911 }
 0xd22   :  { %v4717_v25 = vsel %vm133_vm2, %v1909_v38, %v1912_v52  ;;  %1946 = vmatpush1.bf16.msra.mxu0 %v4625_v16  ;;  %v4800_v38 = vld [vmem:[%s5098_s2 + $0x64] ss:$8 sps:$4 sm:$0xff]  }
 0xd23   :  { %3270 = vtanh.f32 %v4717_v25  ;;  %1947 = vmatprep.subr.bf16.mxu0 %v5206_v42 }
 0xd26   :  { %1948 = vmatpush1.bf16.msra.mxu0 %v4638_v34 }
 0xd27   :  { %2042 = vmatprep.subr.bf16.mxu0 %v4726_v14 }
 0xd2d   :  { %v3271_v8 = vpop.eup %3270 }
 0xd2e   :  { %v1916_v9 = vrot.slane %v3271_v8, 3  ;;  %v1917_v53 = vrot.slane %v3271_v8, 4 }
 0xd30   :  { %v1920_v13 = vmul.f32 %v3265_v59, %v1916_v9  ;;  %v1921_v15 = vmul.f32 %v3267_v49, %v1917_v53  ;;  %v4740_v59 = vld [vmem:[%s5098_s2 + $0x14] ss:$8 sps:$4 sm:$0xff]   ;;  %v4746_v49 = vld [vmem:[%s5098_s2 + $0x10] ss:$8 sps:$4 sm:$0xff]  }
 0xd32   :  { %v1922_v24 = vpack.c.bf16 %v1920_v13, %v1920_v13  ;;  %v1923_v57 = vpack.c.bf16 %v1921_v15, %v1921_v15 }
 0xd34   :  { %v1926_v56 = vunpack.c.l.b16 %v1922_v24  ;;  %v1927_v41 = vunpack.c.l.b16 %v1923_v57 }
 0xd36   :  { %v1928_v39 = vrot.slane %v1926_v56, 5  ;;  %v1929_v7 = vrot.slane %v1927_v41, 4 }
 0xd38   :  { %v1930_v31 = vsel %vm554_vm1, %v1929_v7, %v1928_v39 }
 0xd39   :  { %v1931_v40 = vpack.c.b16 %v1930_v31, %v1930_v31 }
 0xd3b   :  { %1966 = vmatmul.mubr.bf16.vlgmr.msra.gmra.mrb[36].mxu0 %v1931_v40 }
 0xd3c   :  { %2043 = vmatpush1.bf16.msra.mxu0 %v4733_v36  ;;  %2074 = vmatprep.mubr.bf16.mxu0 %v5170_v32 }
 0xd3d   :  { %2044 = vmatprep.subr.bf16.mxu0 %v4740_v59 }
 0xd40   :  { %2045 = vmatpush1.bf16.msra.mxu0 %v4746_v49 }
 0xd41   :  { %2046 = vmatprep.subr.bf16.mxu0 %v4752_v51 }
 0xd44   :  { %2047 = vmatpush1.bf16.msra.mxu0 %v4758_v45 }
 0xd45   :  { %2048 = vmatprep.subr.bf16.mxu0 %v4764_v61 }
 0xd48   :  { %2049 = vmatpush1.bf16.msra.mxu0 %v4770_v23 }
 0xd49   :  { %2050 = vmatprep.subr.bf16.mxu0 %v4776_v20 }
 0xd4c   :  { %2051 = vmatpush1.bf16.msra.mxu0 %v4782_v1 }
 0xd4d   :  { %2052 = vmatprep.subr.bf16.mxu0 %v4788_v0 }
 0xd50   :  { %2053 = vmatpush1.bf16.msra.mxu0 %v4794_v58 }
 0xd51   :  { %2054 = vmatprep.subr.bf16.mxu0 %v4800_v38 }
 0xd54   :  { %2055 = vmatpush1.bf16.msra.mxu0 %v4806_v6 }
 0xd55   :  { %2056 = vmatprep.subr.bf16.mxu0 %v4812_v37 }
 0xd58   :  { %2057 = vmatpush1.bf16.msra.mxu0 %v4818_v4 }
 0xd59   :  { %2249 = vmatprep.subr.bf16.mxu0 %v4510_v54 }
 0xd5b   :  { %2075 = vmatmul.mubr.bf16.vlgmr.msra.gmra.mrb[40].mxu0 %v1931_v40 }
 0xd5c   :  { %2250 = vmatpush1.bf16.msra.mxu0 %v4513_v44  ;;  %2281 = vmatprep.mubr.bf16.mxu0 %v5170_v32 }
 0xd5d   :  { %2251 = vmatprep.subr.bf16.mxu0 %v4517_v17 }
 0xd60   :  { %2252 = vmatpush1.bf16.msra.mxu0 %v4520_v18 }
 0xd61   :  { %2253 = vmatprep.subr.bf16.mxu0 %v4523_v63 }
 0xd64   :  { %2254 = vmatpush1.bf16.msra.mxu0 %v4526_v2 }
 0xd65   :  { %2255 = vmatprep.subr.bf16.mxu0 %v4529_v3 }
 0xd68   :  { %2256 = vmatpush1.bf16.msra.mxu0 %v4532_v12 }
 0xd69   :  { %2257 = vmatprep.subr.bf16.mxu0 %v4535_v22 }
 0xd6c   :  { %2258 = vmatpush1.bf16.msra.mxu0 %v4538_v29 }
 0xd6d   :  { %2259 = vmatprep.subr.bf16.mxu0 %v4541_v33 }
 0xd70   :  { %2260 = vmatpush1.bf16.msra.mxu0 %v4544_v35 }
 0xd71   :  { %2261 = vmatprep.subr.bf16.mxu0 %v5198_v28 }
 0xd74   :  { %2262 = vmatpush1.bf16.msra.mxu0 %v5199_v19 }
 0xd75   :  { %2263 = vmatprep.subr.bf16.mxu0 %v5200_v10 }
 0xd78   :  { %2264 = vmatpush1.bf16.msra.mxu0 %v5201_v11 }
 0xd79   :  { %2429 = vmatprep.subr.bf16.mxu0 %v5202_v21 }
 0xddc   :  { %v1787_v54 = vpop.f32.mrb[32].mxu0 }
 0xddd   :  { %v1789_v44 = vpop.f32.mrb[33].mxu0 }
 0xdde   :  { %v1791_v17 = vpop.f32.mrb[34].mxu0 }
 0xddf   :  { %v1792_v18 = vpop.f32.mrb[35].mxu0 }
 0xe0e   :  { %v1967_v63 = vpop.f32.mrb[36].mxu0 }
 0xe0f   :  { %v1968_v2 = vadd.f32 %v1967_v63, %v1787_v54  ;;  %v1969_v3 = vpop.f32.mrb[37].mxu0 }
 0xe10   :  { %v1970_v12 = vadd.f32 %v1969_v3, %v1789_v44  ;;  %v1971_v22 = vpop.f32.mrb[38].mxu0 }
 0xe11   :  { %v1974_v29 = vadd.f32 %v1968_v2, %v5203_v60  ;;  %v1972_v33 = vpop.f32.mrb[39].mxu0 }
 0xe13   :  { %v2863_v35 = vmul.f32 -1.442695, %v1974_v29 }
 0xe15   :  { %3272 = vpow2.f32 %v2863_v35  ;;  %v1975_v35 = vadd.f32 %v1970_v12, %v3899_v26 }
 0xe16   :  { %3274 = vtanh.f32 %v1974_v29 }
 0xe1f   :  { %v3273_v28 = vpop.eup %3272 }
 0xe20   :  { %v1979_v19 = vadd.f32 1.0, %v3273_v28  ;;  %v3275_v10 = vpop.eup %3274  ;;  %v2864_v28 = vmul.f32 -1.442695, %v1975_v35 }
 0xe22   :  { %3276 = vrcp.f32 %v1979_v19 }
 0xe2c   :  { %v3277_v11 = vpop.eup %3276 }
 0xe2d   :  { %v1983_v21 = vsel %vm133_vm2, %v3277_v11, %v3275_v10 }
 0xe2e   :  { %v2076_v30 = vpop.f32.mrb[40].mxu0  ;;  %1990 = vrot.lane.b32.xlu0 %v1983_v21, %s3622_s3 }
 0xe2f   :  { %v2085_v52 = vrot.slane %v2076_v30, 2  ;;  %v2087_v8 = vrot.slane %v2076_v30, 3  ;;  %v2078_v9 = vpop.f32.mrb[41].mxu0 }
 0xe30   :  { %v2080_v53 = vpop.f32.mrb[42].mxu0  ;;  %v2086_v11 = vrot.slane %v2078_v9, 2  ;;  %v2088_v30 = vrot.slane %v2078_v9, 3 }
 0xe31   :  { %v2093_v13 = vadd.f32 %v2085_v52, %v5204_v55  ;;  %v2095_v15 = vadd.f32 %v2087_v8, %v5205_v5  ;;  %v2081_v24 = vpop.f32.mrb[43].mxu0 }
 0xe32   :  { %v2094_v8 = vadd.f32 %v2086_v11, %v4032_v47 }
 0xe33   :  { %v2865_v57 = vmul.f32 -1.442695, %v2093_v13  ;;  %v2866_v56 = vmul.f32 -1.442695, %v2095_v15 }
 0xe35   :  { %3278 = vpow2.f32 %v2865_v57 }
 0xe36   :  { %3280 = vpow2.f32 %v2866_v56  ;;  %v2867_v56 = vmul.f32 -1.442695, %v2094_v8  ;;  %v4874_v8 = vld [vmem:[%s5100_s4 + $0x14] ss:$8 sps:$4 sm:$0xff]  }
 0xe37   :  { %3282 = vtanh.f32 %v2093_v13  ;;  %v2096_v13 = vadd.f32 %v2088_v30, %v4029_v46  ;;  %v4867_v30 = vld [vmem:[%s5100_s4] ss:$8 sps:$4 sm:$0xff]  }
 0xe38   :  { %3284 = vtanh.f32 %v2095_v15 }
 0xe3f   :  { %v3279_v41 = vpop.eup %3278 }
 0xe40   :  { %v3281_v39 = vpop.eup %3280  ;;  %v2103_v7 = vadd.f32 1.0, %v3279_v41  ;;  %v2868_v41 = vmul.f32 -1.442695, %v2096_v13  ;;  %v4892_v13 = vld [vmem:[%s5100_s4 + $0x20] ss:$8 sps:$4 sm:$0xff]  }
 0xe41   :  { %v2104_v31 = vadd.f32 1.0, %v3281_v39  ;;  %v3283_v40 = vpop.eup %3282 }
 0xe42   :  { %3286 = vrcp.f32 %v2103_v7  ;;  %v3285_v54 = vpop.eup %3284  ;;  %v2119_v17 = vrot.slane %v3283_v40, 6 }
 0xe43   :  { %3288 = vrcp.f32 %v2104_v31  ;;  %v2120_v18 = vrot.slane %v3285_v54, 5 }
 0xe44   :  { %3290 = vpow2.f32 %v2864_v28 }
 0xe45   :  { %v2121_v29 = vsel %vm554_vm1, %v2120_v18, %v2119_v17 }
 0xe4c   :  { %v3287_v44 = vpop.eup %3286 }
 0xe4d   :  { %v3289_v63 = vpop.eup %3288  ;;  %v2113_v2 = vrot.slane %v3287_v44, 6  ;;  %v2140_v44 = vrot.slane %v4717_v25, 2 }
 0xe4e   :  { %v2114_v3 = vrot.slane %v3289_v63, 5  ;;  %v3291_v19 = vpop.eup %3290 }
 0xe4f   :  { %v1987_v10 = vadd.f32 1.0, %v3291_v19 }
 0xe50   :  { %v2115_v22 = vsel %vm554_vm1, %v2114_v3, %v2113_v2 }
 0xe51   :  { %v2123_v33 = vsel %vm133_vm2, %v2115_v22, %v2121_v29  ;;  %3292 = vrcp.f32 %v1987_v10 }
 0xe52   :  { %2136 = vrot.lane.b32.xlu1 %v2123_v33, %s3622_s3  ;;  %3294 = vpow2.f32 %v2867_v56  ;;  %v4916_v56 = vld [vmem:[%s5100_s4 + $0x40] ss:$8 sps:$4 sm:$0xff]  }
 0xe53   :  { %3296 = vpow2.f32 %v2868_v41 }
 0xe5b   :  { %v3293_v52 = vpop.eup %3292 }
 0xe5c   :  { %v1993_v15 = vmul.f32 %v3293_v52, %v4699_v43  ;;  %v3295_v12 = vpop.eup %3294  ;;  %v2141_v43 = vrot.slane %v4717_v25, 3 }
 0xe5d   :  { %v3297_v39 = vpop.eup %3296  ;;  %v2130_v7 = vadd.f32 1.0, %v3295_v12 }
 0xe5e   :  { %v2131_v9 = vadd.f32 1.0, %v3297_v39 }
 0xe5f   :  { %3298 = vrcp.f32 %v2130_v7 }
 0xe60   :  { %3300 = vrcp.f32 %v2131_v9 }
 0xe69   :  { %v3299_v31 = vpop.eup %3298 }
 0xe6a   :  { %v3301_v40 = vpop.eup %3300  ;;  %v2144_v17 = vmul.f32 %v3299_v31, %v2140_v44 }
 0xe6b   :  { %v2145_v18 = vmul.f32 %v3301_v40, %v2141_v43 }
 0xea0   :  { %v1991_v53 = vpop.permute.xlu0 %1990 }
 0xea1   :  { %v1992_v24 = vmul.f32 %v1991_v53, %v1983_v21  ;;  %v4886_v53 = vld [vmem:[%s5100_s4 + $0x24] ss:$8 sps:$4 sm:$0xff]  }
 0xea3   :  { %v1994_v57 = vadd.f32 %v1993_v15, %v1992_v24  ;;  %v4898_v15 = vld [vmem:[%s5100_s4 + $0x34] ss:$8 sps:$4 sm:$0xff]   ;;  %v4904_v24 = vld [vmem:[%s5100_s4 + $0x30] ss:$8 sps:$4 sm:$0xff]  }
 0xea5   :  { %1995 = vrot.lane.b32.xlu0 %v1994_v57, %s3622_s3 }
 0xec4   :  { %v2137_v54 = vpop.permute.xlu1 %2136 }
 0xec5   :  { %v2138_v21 = vmul.f32 %v2137_v54, %v2123_v33 }
 0xec7   :  { %v2147_v63 = vrot.slane %v2138_v21, 2  ;;  %v2148_v2 = vrot.slane %v2138_v21, 3 }
 0xec9   :  { %v2151_v3 = vadd.f32 %v2147_v63, %v2144_v17  ;;  %v2152_v22 = vadd.f32 %v2148_v2, %v2145_v18 }
 0xecb   :  { %v2155_v29 = vrot.slane %v2151_v3, 6  ;;  %v2156_v35 = vrot.slane %v2152_v22, 5 }
 0xecd   :  { %v2157_v28 = vsel %vm554_vm1, %v2156_v35, %v2155_v29 }
 0xece   :  { %2159 = vrot.lane.b32.xlu1 %v2157_v28, %s3622_s3 }
 0xf17   :  { %v1996_v19 = vpop.permute.xlu0 %1995 }
 0xf18   :  { %v4861_v10 = vsel %vm133_vm2, %v1994_v57, %v1996_v19  ;;  %v4910_v57 = vld [vmem:[%s5100_s4 + $0x44] ss:$8 sps:$4 sm:$0xff]  }
 0xf19   :  { %3302 = vtanh.f32 %v4861_v10 }
 0xf23   :  { %v3303_v25 = vpop.eup %3302 }
 0xf24   :  { %v1999_v33 = vmul.f32 %v3303_v25, %v3293_v52  ;;  %v4880_v52 = vld [vmem:[%s5100_s4 + $0x10] ss:$8 sps:$4 sm:$0xff]  }
 0xf26   :  { %v2000_v11 = vpack.c.bf16 %v1999_v33, %v1999_v33 }
 0xf28   :  { %2034 = vmatmul.mubr.bf16.vlgmr.msra.gmra.mrb[36].mxu1 %v2000_v11 }
 0xf29   :  { %2182 = vmatpush1.bf16.msra.mxu1 %v4867_v30  ;;  %2213 = vmatprep.mubr.bf16.mxu1 %v5170_v32 }
 0xf2a   :  { %2183 = vmatprep.subr.bf16.mxu1 %v4874_v8 }
 0xf2d   :  { %2184 = vmatpush1.bf16.msra.mxu1 %v4880_v52 }
 0xf2e   :  { %2185 = vmatprep.subr.bf16.mxu1 %v4886_v53 }
 0xf31   :  { %2186 = vmatpush1.bf16.msra.mxu1 %v4892_v13 }
 0xf32   :  { %2187 = vmatprep.subr.bf16.mxu1 %v4898_v15 }
 0xf35   :  { %2188 = vmatpush1.bf16.msra.mxu1 %v4904_v24 }
 0xf36   :  { %2189 = vmatprep.subr.bf16.mxu1 %v4910_v57 }
 0xf39   :  { %2190 = vmatpush1.bf16.msra.mxu1 %v4916_v56 }
 0xf3a   :  { %2191 = vmatprep.subr.bf16.mxu1 %v4603_v62 }
 0xf3d   :  { %2192 = vmatpush1.bf16.msra.mxu1 %v4609_v48 }
 0xf3e   :  { %2193 = vmatprep.subr.bf16.mxu1 %v4615_v27 }
 0xf40   :  { %v2160_v41 = vpop.permute.xlu1 %2159 }
 0xf41   :  { %v4924_v12 = vsel %vm133_vm2, %v2157_v28, %v2160_v41  ;;  %2194 = vmatpush1.bf16.msra.mxu1 %v4625_v16 }
 0xf42   :  { %3304 = vtanh.f32 %v4924_v12  ;;  %2195 = vmatprep.subr.bf16.mxu1 %v5206_v42 }
 0xf45   :  { %2196 = vmatpush1.bf16.msra.mxu1 %v4638_v34 }
 0xf46   :  { %2290 = vmatprep.subr.bf16.mxu1 %v4726_v14 }
 0xf4c   :  { %v3305_v39 = vpop.eup %3304 }
 0xf4d   :  { %v2164_v7 = vrot.slane %v3305_v39, 2  ;;  %v2165_v9 = vrot.slane %v3305_v39, 3 }
 0xf4f   :  { %v2168_v54 = vmul.f32 %v3299_v31, %v2164_v7  ;;  %v2169_v44 = vmul.f32 %v3301_v40, %v2165_v9 }
 0xf51   :  { %v2170_v43 = vpack.c.bf16 %v2168_v54, %v2168_v54  ;;  %v2171_v21 = vpack.c.bf16 %v2169_v44, %v2169_v44 }
 0xf53   :  { %v2174_v17 = vunpack.c.l.b16 %v2170_v43  ;;  %v2175_v18 = vunpack.c.l.b16 %v2171_v21 }
 0xf55   :  { %v2176_v63 = vrot.slane %v2174_v17, 6  ;;  %v2177_v2 = vrot.slane %v2175_v18, 5 }
 0xf57   :  { %v2178_v3 = vsel %vm554_vm1, %v2177_v2, %v2176_v63 }
 0xf58   :  { %v2179_v22 = vpack.c.b16 %v2178_v3, %v2178_v3 }
 0xf5a   :  { %2214 = vmatmul.mubr.bf16.vlgmr.msra.gmra.mrb[40].mxu1 %v2179_v22 }
 0xf5b   :  { %2291 = vmatpush1.bf16.msra.mxu1 %v4733_v36  ;;  %2322 = vmatprep.mubr.bf16.mxu1 %v5170_v32 }
 0xf5c   :  { %2292 = vmatprep.subr.bf16.mxu1 %v4740_v59 }
 0xf5f   :  { %2293 = vmatpush1.bf16.msra.mxu1 %v4746_v49 }
 0xf60   :  { %2294 = vmatprep.subr.bf16.mxu1 %v4752_v51 }
 0xf63   :  { %2295 = vmatpush1.bf16.msra.mxu1 %v4758_v45 }
 0xf64   :  { %2296 = vmatprep.subr.bf16.mxu1 %v4764_v61 }
 0xf67   :  { %2297 = vmatpush1.bf16.msra.mxu1 %v4770_v23 }
 0xf68   :  { %2298 = vmatprep.subr.bf16.mxu1 %v4776_v20 }
 0xf6b   :  { %2299 = vmatpush1.bf16.msra.mxu1 %v4782_v1 }
 0xf6c   :  { %2300 = vmatprep.subr.bf16.mxu1 %v4788_v0 }
 0xf6f   :  { %2301 = vmatpush1.bf16.msra.mxu1 %v4794_v58 }
 0xf70   :  { %2302 = vmatprep.subr.bf16.mxu1 %v4800_v38 }
 0xf73   :  { %2303 = vmatpush1.bf16.msra.mxu1 %v4806_v6 }
 0xf74   :  { %2304 = vmatprep.subr.bf16.mxu1 %v4812_v37 }
 0xf77   :  { %2305 = vmatpush1.bf16.msra.mxu1 %v4818_v4 }
 0xf7a   :  { %2323 = vmatmul.mubr.bf16.vlgmr.msra.gmra.mrb[44].mxu1 %v2179_v22 }
 0xffb   :  { %v2035_v14 = vpop.f32.mrb[36].mxu1 }
 0xffc   :  { %v2037_v36 = vpop.f32.mrb[37].mxu1 }
 0xffd   :  { %v2039_v59 = vpop.f32.mrb[38].mxu1 }
 0xffe   :  { %v2040_v49 = vpop.f32.mrb[39].mxu1 }
0x102d   :  { %v2215_v51 = vpop.f32.mrb[40].mxu1 }
0x102e   :  { %v2216_v45 = vadd.f32 %v2215_v51, %v2035_v14  ;;  %v2217_v61 = vpop.f32.mrb[41].mxu1 }
0x102f   :  { %v2218_v23 = vadd.f32 %v2217_v61, %v2037_v36  ;;  %v2219_v20 = vpop.f32.mrb[42].mxu1 }
0x1030   :  { %v2222_v1 = vadd.f32 %v2216_v45, %v5203_v60  ;;  %v2220_v0 = vpop.f32.mrb[43].mxu1 }
0x1031   :  { %v2223_v36 = vadd.f32 %v2218_v23, %v3899_v26 }
0x1032   :  { %v2869_v58 = vmul.f32 -1.442695, %v2222_v1 }
0x1033   :  { %v2870_v59 = vmul.f32 -1.442695, %v2223_v36 }
0x1034   :  { %3306 = vpow2.f32 %v2869_v58 }
0x1035   :  { %3308 = vtanh.f32 %v2222_v1 }
0x103e   :  { %v3307_v38 = vpop.eup %3306 }
0x103f   :  { %v2227_v6 = vadd.f32 1.0, %v3307_v38  ;;  %v3309_v37 = vpop.eup %3308 }
0x1041   :  { %3310 = vrcp.f32 %v2227_v6 }
0x104b   :  { %v3311_v4 = vpop.eup %3310 }
0x104c   :  { %v2231_v31 = vsel %vm133_vm2, %v3311_v4, %v3309_v37 }
0x104d   :  { %v2324_v40 = vpop.f32.mrb[44].mxu1  ;;  %2238 = vrot.lane.b32.xlu0 %v2231_v31, %s3622_s3 }
0x104e   :  { %v2333_v29 = vrot.slane %v2324_v40, 1  ;;  %v2335_v35 = vrot.slane %v2324_v40, 2  ;;  %v2326_v28 = vpop.f32.mrb[45].mxu1 }
0x104f   :  { %v2328_v19 = vpop.f32.mrb[46].mxu1  ;;  %v2334_v45 = vrot.slane %v2326_v28, 1  ;;  %v2336_v61 = vrot.slane %v2326_v28, 2 }
0x1050   :  { %v2341_v25 = vadd.f32 %v2333_v29, %v5204_v55  ;;  %v2343_v33 = vadd.f32 %v2335_v35, %v5205_v5  ;;  %v2329_v11 = vpop.f32.mrb[47].mxu1 }
0x1051   :  { %v2342_v1 = vadd.f32 %v2334_v45, %v4032_v47  ;;  %v2344_v58 = vadd.f32 %v2336_v61, %v4029_v46  ;;  %v2388_v46 = vrot.slane %v4924_v12, 1 }
0x1052   :  { %v2871_v41 = vmul.f32 -1.442695, %v2341_v25  ;;  %v2872_v39 = vmul.f32 -1.442695, %v2343_v33 }
0x1053   :  { %v2873_v4 = vmul.f32 -1.442695, %v2342_v1  ;;  %v2874_v40 = vmul.f32 -1.442695, %v2344_v58  ;;  %v2496_v1 = vld [vmem:[%s5103_s7] sm:$0xff]  ;;  %v2498_v58 = vld [vmem:[%s5103_s7 + $0x10] sm:$0xff] }
0x1054   :  { %3312 = vpow2.f32 %v2871_v41 }
0x1055   :  { %3314 = vpow2.f32 %v2872_v39 }
0x1056   :  { %3316 = vtanh.f32 %v2341_v25 }
0x1057   :  { %3318 = vtanh.f32 %v2343_v33 }
0x105e   :  { %v3313_v7 = vpop.eup %3312 }
0x105f   :  { %v3315_v9 = vpop.eup %3314  ;;  %v2351_v54 = vadd.f32 1.0, %v3313_v7 }
0x1060   :  { %v2352_v44 = vadd.f32 1.0, %v3315_v9  ;;  %v3317_v43 = vpop.eup %3316 }
0x1061   :  { %3320 = vrcp.f32 %v2351_v54  ;;  %v3319_v21 = vpop.eup %3318  ;;  %v2367_v18 = vrot.slane %v3317_v43, 7 }
0x1062   :  { %3322 = vrcp.f32 %v2352_v44  ;;  %v2368_v55 = vrot.slane %v3319_v21, 6 }
0x1063   :  { %3324 = vpow2.f32 %v2870_v59 }
0x1064   :  { %v2369_v22 = vsel %vm554_vm1, %v2368_v55, %v2367_v18 }
0x106b   :  { %v3321_v17 = vpop.eup %3320 }
0x106c   :  { %v3323_v63 = vpop.eup %3322  ;;  %v2361_v5 = vrot.slane %v3321_v17, 7 }
0x106d   :  { %v2362_v2 = vrot.slane %v3323_v63, 6  ;;  %v3325_v49 = vpop.eup %3324 }
0x106e   :  { %v2235_v51 = vadd.f32 1.0, %v3325_v49 }
0x106f   :  { %v2363_v3 = vsel %vm554_vm1, %v2362_v2, %v2361_v5 }
0x1070   :  { %v2371_v14 = vsel %vm133_vm2, %v2363_v3, %v2369_v22  ;;  %3326 = vrcp.f32 %v2235_v51 }
0x1071   :  { %2384 = vrot.lane.b32.xlu1 %v2371_v14, %s3622_s3  ;;  %3328 = vpow2.f32 %v2873_v4  ;;  %v2500_v4 = vld [vmem:[%s5103_s7 + $0x20] sm:$0xff] }
0x1072   :  { %3330 = vpow2.f32 %v2874_v40  ;;  %v2501_v40 = vld [vmem:[%s5103_s7 + $0x28] sm:$0xff] }
0x107a   :  { %v3327_v20 = vpop.eup %3326 }
0x107b   :  { %v2241_v38 = vmul.f32 %v3327_v20, %v4861_v10  ;;  %v3329_v23 = vpop.eup %3328  ;;  %v2389_v10 = vrot.slane %v4924_v12, 2 }
0x107c   :  { %v3331_v29 = vpop.eup %3330  ;;  %v2378_v35 = vadd.f32 1.0, %v3329_v23 }
0x107d   :  { %v2379_v28 = vadd.f32 1.0, %v3331_v29 }
0x107e   :  { %3332 = vrcp.f32 %v2378_v35  ;;  %v2967_v35 = vpack.c.bf16 %v2501_v40, %v2500_v4 }
0x107f   :  { %3334 = vrcp.f32 %v2379_v28 }
0x1088   :  { %v3333_v47 = vpop.eup %3332 }
0x1089   :  { %v3335_v19 = vpop.eup %3334  ;;  %v2392_v33 = vmul.f32 %v3333_v47, %v2388_v46  ;;  %v2504_v46 = vld [vmem:[%s5103_s7 + $0x40] sm:$0xff] }
0x108a   :  { %v2393_v11 = vmul.f32 %v3335_v19, %v2389_v10  ;;  %v2505_v10 = vld [vmem:[%s5103_s7 + $0x48] sm:$0xff] }
0x10bf   :  { %v2239_v0 = vpop.permute.xlu0 %2238 }
0x10c0   :  { %v2240_v6 = vmul.f32 %v2239_v0, %v2231_v31  ;;  %v2497_v0 = vld [vmem:[%s5103_s7 + $0x8] sm:$0xff] }
0x10c2   :  { %v2242_v37 = vadd.f32 %v2241_v38, %v2240_v6  ;;  %v2961_v38 = vpack.c.bf16 %v2497_v0, %v2496_v1  ;;  %v2499_v6 = vld [vmem:[%s5103_s7 + $0x18] sm:$0xff] }
0x10c4   :  { %2243 = vrot.lane.b32.xlu0 %v2242_v37, %s3622_s3 }
0x10e3   :  { %v2385_v25 = vpop.permute.xlu1 %2384 }
0x10e4   :  { %v2386_v31 = vmul.f32 %v2385_v25, %v2371_v14 }
0x10e6   :  { %v2395_v41 = vrot.slane %v2386_v31, 1  ;;  %v2396_v39 = vrot.slane %v2386_v31, 2  ;;  %v2973_v31 = vpack.c.bf16 %v2505_v10, %v2504_v46 }
0x10e8   :  { %v2399_v7 = vadd.f32 %v2395_v41, %v2392_v33  ;;  %v2400_v9 = vadd.f32 %v2396_v39, %v2393_v11 }
0x10ea   :  { %v2403_v54 = vrot.slane %v2399_v7, 7  ;;  %v2404_v44 = vrot.slane %v2400_v9, 6  ;;  %v2506_v7 = vld [vmem:[%s5103_s7 + $0x50] sm:$0xff]  ;;  %v2507_v9 = vld [vmem:[%s5103_s7 + $0x58] sm:$0xff] }
0x10ec   :  { %v2405_v43 = vsel %vm554_vm1, %v2404_v44, %v2403_v54  ;;  %v2508_v54 = vld [vmem:[%s5103_s7 + $0x60] sm:$0xff]  ;;  %v2976_v44 = vpack.c.bf16 %v2507_v9, %v2506_v7 }
0x10ed   :  { %2407 = vrot.lane.b32.xlu1 %v2405_v43, %s3622_s3 }
0x1136   :  { %v2244_v21 = vpop.permute.xlu0 %2243 }
0x1137   :  { %v4970_v17 = vsel %vm133_vm2, %v2242_v37, %v2244_v21  ;;  %v2964_v37 = vpack.c.bf16 %v2499_v6, %v2498_v58 }
0x1138   :  { %3336 = vtanh.f32 %v4970_v17 }
0x1142   :  { %v3337_v12 = vpop.eup %3336 }
0x1143   :  { %v2247_v18 = vmul.f32 %v3337_v12, %v3327_v20  ;;  %v2510_v12 = vld [vmem:[%s5103_s7 + $0x70] sm:$0xff] }
0x1145   :  { %v2248_v55 = vpack.c.bf16 %v2247_v18, %v2247_v18  ;;  %v2511_v18 = vld [vmem:[%s5103_s7 + $0x78] sm:$0xff] }
0x1147   :  { %2282 = vmatmul.mubr.bf16.vlgmr.msra.gmra.mrb[44].mxu0 %v2248_v55 }
0x1148   :  { %2430 = vmatpush1.bf16.msra.mxu0 %v4867_v30  ;;  %2461 = vmatprep.mubr.bf16.mxu0 %v5170_v32 }
0x1149   :  { %2431 = vmatprep.subr.bf16.mxu0 %v4874_v8 }
0x114c   :  { %2432 = vmatpush1.bf16.msra.mxu0 %v4880_v52 }
0x114d   :  { %2433 = vmatprep.subr.bf16.mxu0 %v4886_v53 }
0x1150   :  { %2434 = vmatpush1.bf16.msra.mxu0 %v4892_v13 }
0x1151   :  { %2435 = vmatprep.subr.bf16.mxu0 %v4898_v15 }
0x1154   :  { %2436 = vmatpush1.bf16.msra.mxu0 %v4904_v24 }
0x1155   :  { %2437 = vmatprep.subr.bf16.mxu0 %v4910_v57 }
0x1158   :  { %2438 = vmatpush1.bf16.msra.mxu0 %v4916_v56 }
0x1159   :  { %2439 = vmatprep.subr.bf16.mxu0 %v4603_v62 }
0x115c   :  { %2440 = vmatpush1.bf16.msra.mxu0 %v4609_v48 }
0x115d   :  { %2441 = vmatprep.subr.bf16.mxu0 %v4615_v27 }
0x115f   :  { %v2408_v32 = vpop.permute.xlu1 %2407 }
0x1160   :  { %v2409_v30 = vsel %vm133_vm2, %v2405_v43, %v2408_v32  ;;  %2442 = vmatpush1.bf16.msra.mxu0 %v4625_v16  ;;  %v5207_v43 = vmov 0.0  }
0x1161   :  { %3338 = vtanh.f32 %v2409_v30  ;;  %2443 = vmatprep.subr.bf16.mxu0 %v5206_v42  ;;  %2939 = vmatprep.mubr.msk.f32.mxu1 %vm3624_vm3, %v5207_v43  ;;  %v2982_v30 = vpack.c.bf16 %v2511_v18, %v2510_v12 }
0x1164   :  { %2444 = vmatpush1.bf16.msra.mxu0 %v4638_v34 }
0x116b   :  { %v3339_v8 = vpop.eup %3338 }
0x116c   :  { %v2412_v52 = vrot.slane %v3339_v8, 1  ;;  %v2413_v53 = vrot.slane %v3339_v8, 2 }
0x116e   :  { %v2416_v13 = vmul.f32 %v3333_v47, %v2412_v52  ;;  %v2417_v62 = vmul.f32 %v3335_v19, %v2413_v53  ;;  %v2502_v47 = vld [vmem:[%s5103_s7 + $0x30] sm:$0xff]  ;;  %v2503_v19 = vld [vmem:[%s5103_s7 + $0x38] sm:$0xff] }
0x116f   :  { %v2970_v25 = vpack.c.bf16 %v2503_v19, %v2502_v47 }
0x1170   :  { %v2418_v15 = vpack.c.bf16 %v2416_v13, %v2416_v13  ;;  %v2419_v48 = vpack.c.bf16 %v2417_v62, %v2417_v62  ;;  %v2590_v13 = vld [vmem:[%s5105_s9] sm:$0xff]  ;;  %v2591_v62 = vld [vmem:[%s5105_s9 + $0x8] sm:$0xff] }
0x1172   :  { %v2422_v24 = vunpack.c.l.b16 %v2418_v15  ;;  %v2423_v27 = vunpack.c.l.b16 %v2419_v48  ;;  %v2985_v15 = vpack.c.bf16 %v2591_v62, %v2590_v13 }
0x1174   :  { %v2424_v57 = vrot.slane %v2422_v24, 7  ;;  %v2425_v56 = vrot.slane %v2423_v27, 6 }
0x1176   :  { %v2426_v63 = vsel %vm554_vm1, %v2425_v56, %v2424_v57  ;;  %v2592_v57 = vld [vmem:[%s5105_s9 + $0x10] sm:$0xff]  ;;  %v2593_v56 = vld [vmem:[%s5105_s9 + $0x18] sm:$0xff] }
0x1177   :  { %v2427_v5 = vpack.c.b16 %v2426_v63, %v2426_v63  ;;  %v2988_v63 = vpack.c.bf16 %v2593_v56, %v2592_v57 }
0x1179   :  { %2462 = vmatmul.mubr.bf16.vlgmr.msra.gmra.mrb[48].mxu0 %v2427_v5  ;;  %v2877_v5 = vld [vmem:[#allocation10] ss:$0 sm:$0xff] }
0x117a   :  { %2950 = vmatprep.mubr.msk.f32.mxu0 %vm3624_vm3, %v5207_v43 }
0x121a   :  { %v2283_v16 = vpop.f32.mrb[44].mxu0 }
0x121b   :  { %v2285_v2 = vpop.f32.mrb[45].mxu0 }
0x121c   :  { %v2287_v42 = vpop.f32.mrb[46].mxu0 }
0x121d   :  { %v2288_v3 = vpop.f32.mrb[47].mxu0 }
0x121e   :  { %v2676_v3 = vld [vmem:[%s5107_s11] sm:$0xff] }
0x124c   :  { %v2463_v34 = vpop.f32.mrb[48].mxu0 }
0x124d   :  { %v2464_v22 = vadd.f32 %v2463_v34, %v2283_v16  ;;  %v2465_v14 = vpop.f32.mrb[49].mxu0  ;;  %v2677_v34 = vld [vmem:[%s5107_s11 + $0x8] sm:$0xff] }
0x124e   :  { %v2466_v36 = vadd.f32 %v2465_v14, %v2285_v2  ;;  %v2467_v59 = vpop.f32.mrb[50].mxu0  ;;  %v2878_v14 = vld [vmem:[#allocation11] ss:$0 sm:$0xff] }
0x124f   :  { %v2470_v49 = vadd.f32 %v2464_v22, %v5203_v60  ;;  %v2468_v51 = vpop.f32.mrb[51].mxu0  ;;  %v3623_v60 = vmov 0.0|0.0   ;;  %v2991_v22 = vpack.c.bf16 %v2677_v34, %v2676_v3 }
0x1250   :  { %2960 = vmatprep.subr.bf16.mxu1 %v3623_v60  ;;  %2984 = vmatprep.subr.bf16.mxu0 %v3623_v60  ;;  %v2471_v33 = vadd.f32 %v2466_v36, %v3899_v26  ;;  %v2509_v26 = vld [vmem:[%s5103_s7 + $0x68] sm:$0xff] }
0x1251   :  { %v2875_v45 = vmul.f32 -1.442695, %v2470_v49  ;;  %2962 = vmatpush3.bf16.msra.mxu1 %v2961_v38  ;;  %v2979_v21 = vpack.c.bf16 %v2509_v26, %v2508_v54  ;;  %2986 = vmatpush3.bf16.msra.mxu0 %v2985_v15 }
0x1252   :  { %2963 = vmatprep.subr.bf16.mxu1 %v3623_v60  ;;  %v2876_v11 = vmul.f32 -1.442695, %v2471_v33  ;;  %2987 = vmatprep.subr.bf16.mxu0 %v3623_v60 }
0x1253   :  { %3340 = vpow2.f32 %v2875_v45  ;;  %v2880_v45 = vld [vmem:[#allocation13] ss:$0 sm:$0xff] }
0x1254   :  { %3342 = vtanh.f32 %v2470_v49 }
0x1255   :  { %2965 = vmatpush3.bf16.msra.mxu1 %v2964_v37  ;;  %2989 = vmatpush3.bf16.msra.mxu0 %v2988_v63 }
0x1256   :  { %2966 = vmatprep.subr.bf16.mxu1 %v3623_v60  ;;  %2990 = vmatprep.subr.bf16.mxu0 %v3623_v60 }
0x1259   :  { %2968 = vmatpush3.bf16.msra.mxu1 %v2967_v35 }
0x125a   :  { %2969 = vmatprep.subr.bf16.mxu1 %v3623_v60 }
0x125d   :  { %v3341_v61 = vpop.eup %3340  ;;  %2971 = vmatpush3.bf16.msra.mxu1 %v2970_v25 }
0x125e   :  { %v2475_v20 = vadd.f32 1.0, %v3341_v61  ;;  %v3343_v23 = vpop.eup %3342  ;;  %2972 = vmatprep.subr.bf16.mxu1 %v3623_v60 }
0x1260   :  { %3344 = vrcp.f32 %v2475_v20 }
0x1261   :  { %2974 = vmatpush3.bf16.msra.mxu1 %v2973_v31  ;;  %3346 = vpow2.f32 %v2876_v11 }
0x1262   :  { %2975 = vmatprep.subr.bf16.mxu1 %v3623_v60 }
0x1265   :  { %2977 = vmatpush3.bf16.msra.mxu1 %v2976_v44 }
0x1266   :  { %2978 = vmatprep.subr.bf16.mxu1 %v3623_v60 }
0x1269   :  { %2980 = vmatpush3.bf16.msra.mxu1 %v2979_v21 }
0x126a   :  { %v3345_v29 = vpop.eup %3344  ;;  %2981 = vmatprep.subr.bf16.mxu1 %v3623_v60 }
0x126b   :  { %v2479_v28 = vsel %vm133_vm2, %v3345_v29, %v3343_v23  ;;  %v3347_v41 = vpop.eup %3346 }
0x126c   :  { %2486 = vrot.lane.b32.xlu0 %v2479_v28, %s3622_s3  ;;  %v2483_v39 = vadd.f32 1.0, %v3347_v41 }
0x126d   :  { %2983 = vmatpush3.bf16.msra.mxu1 %v2982_v30 }
0x126e   :  { %3348 = vrcp.f32 %v2483_v39 }
0x1278   :  { %v3349_v55 = vpop.eup %3348 }
0x1279   :  { %v2489_v8 = vmul.f32 %v3349_v55, %v4970_v17 }
0x12de   :  { %v2487_v32 = vpop.permute.xlu0 %2486 }
0x12df   :  { %v2488_v52 = vmul.f32 %v2487_v32, %v2479_v28 }
0x12e1   :  { %v2490_v53 = vadd.f32 %v2489_v8, %v2488_v52 }
0x12e3   :  { %2491 = vrot.lane.b32.xlu1 %v2490_v53, %s3622_s3 }
0x1355   :  { %v2492_v17 = vpop.permute.xlu1 %2491 }
0x1356   :  { %v2493_v48 = vsel %vm133_vm2, %v2490_v53, %v2492_v17 }
0x1357   :  { %3350 = vtanh.f32 %v2493_v48 }
0x1361   :  { %v3351_v24 = vpop.eup %3350 }
0x1362   :  { %v2495_v27 = vmul.f32 %v3351_v24, %v3349_v55 }
0x1364   :  { %2940 = vmatmul.mubr.f32.vlgmr.msra.gmra.mrb[48].mxu1 %v2495_v27 }
0x1437   :  { %v2585_v16 = vpop.f32.mrb[48].mxu1 }
0x1438   :  { %v2586_v50 = vadd.f32 %v2877_v5, %v2585_v16  ;;  %v2941_v2 = vpop.f32.mrb[49].mxu1 }
0x143a   :  { %v2589_v42 = vmax.f32 %v2586_v50, 0.0 }
0x143c   :  { %2951 = vmatmul.mubr.msk.f32.vlgmr.msra.gmra.mrb[52].mxu0 %vm2601_vm4, %v2589_v42 }
0x143d   :  { %2957 = vmatprep.mubr.msk.f32.mxu0 %vm3624_vm3, %v5207_v43  ;;  %2992 = vmatpush3.bf16.msra.mxu0 %v2991_v22 }
0x150f   :  { %v2671_v36 = vpop.f32.mrb[52].mxu0 }
0x1510   :  { %v2672_v59 = vadd.f32 %v2878_v14, %v2671_v36  ;;  %v2952_v49 = vpop.f32.mrb[53].mxu0 }
0x1512   :  { %v2675_v51 = vmax.f32 %v2672_v59, 0.0 }
0x1514   :  { %2958 = vmatmul.mubr.msk.f32.vlgmr.msra.gmra.mrb[54].mxu0 %vm2685_vm5, %v2675_v51 }
0x15e7   :  { %v2755_v61 = vpop.f32.mrb[54].mxu0 }
0x15e8   :  { %v2756_v20 = vadd.f32 %v2880_v45, %v2755_v61  ;;  %v2959_v1 = vpop.f32.mrb[55].mxu0 }
0x15ea   :  { %2760 = vst.msk [vmem:[#allocation14] sm:$0x3] %vm2759_vm6, %v2756_v20 }
0x15eb   :  { %3590 = shalt.err (!%p3587_p4)
}
0x15ec   :  { %s3591_s22 = scalar_lea.hbm %s5109_s13, 32 }
0x15ed   :  { %p3592_p5 = scmp.ne.s32.totalorder %s5109_s13, %s3591_s22  ;;  %p3595_p6 = scmp.lt.u32.totalorder %s3591_s22, %s5109_s13 }
0x15ef   :  { %p3597_p7 = pnand %p3595_p6, %p3592_p5 }
0x15f1   :  { %3600 = shalt.err (!%p3597_p7)
}
0x15f2   :  { %2770 = dma.vmem_to_hbm [thread:$0]  %s2768_s19, 32, %s5109_s13, [#allocation4]  }
0x15f3   :  { %3609 = dma.done.wait [#allocation4], 32  }
0x15f4   :  { %3610 = vsyncadd [#allocation4], 4294967264 }
0x15f5   :  { %2774 = vsyncpa [#allocation3], 1 }
0x15f6   :  { %2775 = vsyncpa [#allocation6], 1 }
0x15f7   :  { %2776 = vsyncpa [#allocation9], 1 }
0x15f8   :  { %2777 = vsyncpa [#allocation12], 1 }
0x15f9   :  { %2778 = vsyncpa [#allocation4], 1 }

</bundles_post_ra>
